<compile_context>
chip_gen: v7x
topology: tpu7x:2x2x1
jax: 0.10.0
libtpu: 0.0.40
codegen_flags: <defaults>
</compile_context>

<pallas_src>
import jax
import jax.numpy as jnp
from jax.experimental import pallas as pl
from jax.experimental.pallas import tpu as pltpu


def add_conv1x1_kernel(a_ref, b_ref, w_ref, o_ref):
    # Fused elementwise add (VPU) + matmul (MXU).
    # a/b: (Cin, M), w tile: (tn, Cin)  ->  out tile: (tn, M)
    x = a_ref[...] + b_ref[...]
    o_ref[...] = jnp.dot(
        w_ref[...], x, preferred_element_type=jnp.float32
    ).astype(o_ref.dtype)


def add_conv1x1(x814_nchw, x799_nchw, w_oihw, *, tn=1152):
    """(x814 + x799) -> Conv2d(Cin, Cout, k=1, bias=False), NCHW in/out."""
    N, Cin, H, W = x814_nchw.shape
    Cout = w_oihw.shape[0]
    assert w_oihw.shape == (Cout, Cin, 1, 1)
    assert N == 1, "kernel layout assumes batch == 1 (as in the source module)"
    assert Cout % tn == 0

    M = H * W  # 49 for the reference shapes

    # Zero-copy layout changes (no transposes, no HBM copies):
    a = x814_nchw.reshape(Cin, M)          # NCHW with N=1 -> (Cin, M)
    b = x799_nchw.reshape(Cin, M)
    w = w_oihw.reshape(Cout, Cin)          # (Cout, Cin, 1, 1) -> (Cout, Cin)

    grid = (Cout // tn,)

    cost = pl.CostEstimate(
        flops=2 * M * Cin * Cout,
        transcendentals=0,
        bytes_accessed=(2 * Cin * M + Cin * Cout + Cout * M) * 4,
    )

    out = pl.pallas_call(
        add_conv1x1_kernel,
        out_shape=jax.ShapeDtypeStruct((Cout, M), x814_nchw.dtype),
        grid_spec=pltpu.PrefetchScalarGridSpec(
            num_scalar_prefetch=0,
            grid=grid,
            in_specs=[
                pl.BlockSpec((Cin, M), lambda j: (0, 0)),   # a: full block
                pl.BlockSpec((Cin, M), lambda j: (0, 0)),   # b: full block
                pl.BlockSpec((tn, Cin), lambda j: (j, 0)),  # weight tile along Cout
            ],
            out_specs=pl.BlockSpec((tn, M), lambda j: (j, 0)),
        ),
        compiler_params=pltpu.CompilerParams(
            dimension_semantics=("parallel",),
        ),
        cost_estimate=cost,
    )(a, b, w)

    # (Cout, M) -> NCHW, zero-copy.
    return out.reshape(N, Cout, H, W)


if __name__ == "__main__":
    key = jax.random.PRNGKey(0)
    k1, k2, k3 = jax.random.split(key, 3)

    # Shapes implied by the module: Conv2d(384 -> 2304, 1x1), inputs (1, 384, 7, 7)
    x814 = jax.random.normal(k1, (1, 384, 7, 7), dtype=jnp.float32)
    x799 = jax.random.normal(k2, (1, 384, 7, 7), dtype=jnp.float32)
    # Deterministic synthetic weight (Kaiming-ish scale), shape (Cout, Cin, 1, 1)
    w = jax.random.normal(k3, (2304, 384, 1, 1), dtype=jnp.float32) * (1.0 / 384.0) ** 0.5

    out = add_conv1x1(x814, x799, w)
    jax.block_until_ready(out)

    # Reference check (plain JAX): 1x1 conv == matmul over channels.
    xsum = (x814 + x799).reshape(384, 49)
    ref = (w.reshape(2304, 384) @ xsum).reshape(1, 2304, 7, 7)
    assert out.shape == (1, 2304, 7, 7)
    assert jnp.allclose(out, ref, atol=1e-4, rtol=1e-4)

    print("KERNEL_OK")
</pallas_src>

<mosaic_0001>
module attributes {stable_mosaic.version = 11 : i64} {
  func.func @add_conv1x1_kernel(%arg0: i32, %arg1: memref<384x49xf32, #tpu.memory_space<vmem>>, %arg2: memref<384x49xf32, #tpu.memory_space<vmem>>, %arg3: memref<1152x384xf32, #tpu.memory_space<vmem>>, %arg4: memref<1152x49xf32, #tpu.memory_space<vmem>>) attributes {dimension_semantics = [#tpu.dimension_semantics<parallel>], iteration_bounds = array<i64: 2>, scalar_prefetch = 0 : i64, scratch_operands = 0 : i64, tpu.core_type = #tpu.core_type<tc>, window_params = [{pipeline_mode = #tpu.pipeline_mode<synchronous>, transform_indices = @transform_0, window_bounds = array<i64: 384, 49>}, {pipeline_mode = #tpu.pipeline_mode<synchronous>, transform_indices = @transform_1, window_bounds = array<i64: 384, 49>}, {transform_indices = @transform_2, window_bounds = array<i64: 1152, 384>}, {transform_indices = @transform_3, window_bounds = array<i64: 1152, 49>}]} {
    %c0 = arith.constant 0 : index
    %c0_0 = arith.constant 0 : index
    %0 = vector.load %arg1[%c0, %c0_0] : memref<384x49xf32, #tpu.memory_space<vmem>>, vector<384x49xf32>
    %c0_1 = arith.constant 0 : index
    %c0_2 = arith.constant 0 : index
    %1 = vector.load %arg2[%c0_1, %c0_2] : memref<384x49xf32, #tpu.memory_space<vmem>>, vector<384x49xf32>
    %2 = arith.addf %0, %1 : vector<384x49xf32>
    %c0_3 = arith.constant 0 : index
    %c0_4 = arith.constant 0 : index
    %3 = vector.load %arg3[%c0_3, %c0_4] : memref<1152x384xf32, #tpu.memory_space<vmem>>, vector<1152x384xf32>
    %cst = arith.constant dense<0.000000e+00> : vector<1152x49xf32>
    %4 = tpu.matmul %3, %2, %cst {dimension_numbers = #tpu.dot_dimension_numbers<[1], [0], [0], [1], [0, 0, 1, 1], [], []>} : vector<1152x384xf32>, vector<384x49xf32>, vector<1152x49xf32> -> vector<1152x49xf32>
    %c0_5 = arith.constant 0 : index
    %c0_6 = arith.constant 0 : index
    %5 = vector.load %arg4[%c0_5, %c0_6] : memref<1152x49xf32, #tpu.memory_space<vmem>>, vector<1152x49xf32>
    tpu.vector_store %arg4[%c0_5, %c0_6], %4 {strides = array<i32>} : memref<1152x49xf32, #tpu.memory_space<vmem>>, vector<1152x49xf32>,
    return
  }
  func.func @transform_0(%arg0: i32) -> (i32, i32) {
    %c0_i32 = arith.constant 0 : i32
    %c0_i32_0 = arith.constant 0 : i32
    %c0_i32_1 = arith.constant 0 : i32
    return %c0_i32, %c0_i32_0 : i32, i32
  }
  func.func @transform_1(%arg0: i32) -> (i32, i32) {
    %c0_i32 = arith.constant 0 : i32
    %c0_i32_0 = arith.constant 0 : i32
    %c0_i32_1 = arith.constant 0 : i32
    return %c0_i32, %c0_i32_0 : i32, i32
  }
  func.func @transform_2(%arg0: i32) -> (i32, i32) {
    %c0_i32 = arith.constant 0 : i32
    %c0_i32_0 = arith.constant 0 : i32
    return %arg0, %c0_i32 : i32, i32
  }
  func.func @transform_3(%arg0: i32) -> (i32, i32) {
    %c0_i32 = arith.constant 0 : i32
    %c0_i32_0 = arith.constant 0 : i32
    return %arg0, %c0_i32 : i32, i32
  }
}

</mosaic_0001>

<bundles_post_ra>
// kernel: tpu_custom_call.1
= control target key start
LH: loop header
LB: loop body
LE: loop exit
PB: predicated region body
PF: predicated region fallthrough
CT: control target
= control target key end

     0   :  { %8 = vsyncpa [#allocation3], 0  ;;  %s4696_s0 = inlined_call_operand.vmem [shape: f32[384,49], index: 0, kind: input, shape index: {}]   ;;  %s4697_s1 = inlined_call_operand.vmem [shape: f32[384,49], index: 1, kind: input, shape index: {}]   ;;  %s4698_s2 = inlined_call_operand.hbm [shape: f32[2304,384], index: 2, kind: input, shape index: {}]   ;;  %s4699_s3 = inlined_call_operand.vmem [shape: f32[2304,49], index: 3, kind: output, shape index: {}]  }
   0x1   :  { %10 = vsyncpa [#allocation3 + $0x1], 0  ;;  %s3217_s12 = smov 0   ;;  %s3219_s13 = smov 0  }
   0x2   :  { %s3221_s14 = smov 0   ;;  %s3223_s15 = smov 0  }
   0x3 LB: > { %s2552_s16 = sadd.s32 4294967295, %s3191_s15   ;;  %s3237_s17 = sadd.s32 1, %s3191_s15   ;;  %s3191_s15 = sphi %s3223_s15, %s4749_s15   ;;  %s3187_s14 = sphi %s3221_s14, %s4748_s14   ;;  %s3183_s13 = sphi %s3219_s13, %s4747_s13   ;;  %s3179_s12 = sphi %s3217_s12, %s4746_s12  }
   0x4   : > { %s62_s18 = ssub.s32 %s3191_s15, %s3237_s17  ;;  %s65_s19 = sadd.s32 1, %s3187_s14 }
   0x5   : > { %p63_p0 = scmp.eq.s32.totalorder %s62_s18, 0  ;;  %p72_p1 = scmp.ne.s32.totalorder %s3187_s14, %s3183_s13 }
   0x6   : > { %p73_p2 = scmp.eq.s32.totalorder %s3191_s15, 0  ;;  %p78_p3 = scmp.ne.s32.totalorder %s3183_s13, %s3179_s12 }
   0x7   : > { %s3247_s20 = scalar_select %p63_p0, %s3187_s14, %s65_s19  }
   0x8   : > { %p74_p4 = por %p73_p2, %p72_p1  ;;  %p79_p5 = scmp.eq.s32.totalorder %s2552_s16, 0 }
   0x9   : > { %p3090_p6 = scmp.lt.s32.totalorder %s3191_s15, 2  ;;  %s134_s22 = sand.u32 1, %s3187_s14  }
   0xa   : > { %p3252_p7 = por %p79_p5, %p78_p3  ;;  %s3081_s23 = smul.u32 3456, %s134_s22 }
   0xb   : > { %p3257_p8 = pnand %p3090_p6, %p74_p4  ;;  %s3091_s25 = smul.u32 55296, %s3191_s15 }
   0xc   : > { %s138_s26 = scalar_lea.vmem [#allocation2], %s3081_s23  ;;  %s3269_s4 = scalar_lea.sflag [#allocation3], %s134_s22 }
   0xd   : > { %s146_s27 = sshll.u32 %s138_s26, 4  ;;  %s3265_s30 = scalar_lea.hbm %s4698_s2, %s3091_s25  ;;  %s3267_s27 = int_to_ptr.vmem [resolvable:$true] %s146_s27 }
   0xe   : > { %s3127_s5 = scalar_lea.hbm %s3265_s30, 55296  ;;  %p3129_p10 = pneg %p3257_p8 }
   0xf   : > { %p3128_p9 = scmp.ne.s32.totalorder %s3265_s30, %s3127_s5  ;;  %s3132_s8 = scalar_lea.hbm %s4698_s2, 110592 }
  0x10   : > { %p3133_p13 = scmp.lt.u32.totalorder %s3265_s30, %s4698_s2  ;;  %p3134_p0 = scmp.lt.u32.totalorder %s3132_s8, %s3127_s5 }
  0x11   : > { %p3130_p11 = pnand %p3129_p10, %p3128_p9  ;;  %p3136_p2 = scmp.lt.u32.totalorder %s3127_s5, %s3265_s30 }
  0x12   : > { %p3135_p1 = por %p3134_p0, %p3133_p13 }
  0x13   : > { %p3131_p12 = pneg %p3130_p11 }
  0x14   : > { %p3137_p3 = por %p3136_p2, %p3135_p1 }
  0x16   : > { %p3138_p4 = pnand %p3137_p3, %p3131_p12 }
  0x18   : > { %3141 = shalt.err (!%p3138_p4)
}
  0x19   : > { %s3142_s11 = scalar_lea.vmem %s3267_s27, 55296  ;;  %s3193_s12 = smov [#allocation2]  }
  0x1a   : > { %p3143_p5 = scmp.ne.s32.totalorder %s3267_s27, %s3142_s11  ;;  %s3147_s18 = sshll.u32 %s3193_s12, 4  ;;  %s3148_s18 = int_to_ptr.vmem [resolvable:$false] %s3147_s18 }
  0x1b   : > { %s3149_s19 = scalar_lea.vmem %s3148_s18, 110592  ;;  %p3150_p11 = scmp.lt.s32.totalorder %s3267_s27, %s3148_s18 }
  0x1c   : > { %p3145_p6 = pnand %p3143_p5, %p3129_p10  ;;  %p3151_p13 = scmp.lt.s32.totalorder %s3149_s19, %s3142_s11 }
  0x1e   : > { %p3146_p9 = pneg %p3145_p6  ;;  %p3152_p0 = por %p3151_p13, %p3150_p11 }
  0x20   : > { %p3153_p1 = pnand %p3152_p0, %p3146_p9 }
  0x22   : > { %3156 = shalt.err (!%p3153_p1)
}
  0x23   : > { %s3194_s22 = smov 384   ;;  %s3195_s23 = smov 24  }
  0x24   : > { %3089 = dma.hbm_to_vmem [thread:$0]  (!%p3257_p8), %s3265_s30, 55296, %s3267_s27, %s3269_s4, %s3194_s22, %s3194_s22, %s3195_s23  }
  0x25   : > { %p2557_p10 = scmp.ge.s32.totalorder %s3191_s15, 1  ;;  %p154_p12 = scmp.lt.s32.totalorder %s3191_s15, 3 }
  0x27   : > { %p155_p2 = pnand %p2557_p10, %p154_p12 }
  0x29   : > { %158 = sbr.rel (%p155_p2) target bundleno = 766 (0x2fe), region = 32 }
  0x30   : > { %s160_s25 = sand.u32 1, %s3183_s13  }
  0x31   : > { %s3083_s26 = smul.u32 3456, %s160_s25  ;;  %s161_s28 = scalar_lea.sflag [#allocation3], %s160_s25 }
  0x33   : > { %s3300_s29 = scalar_lea.vmem [#allocation2], %s3083_s26 }
  0x34   : > { %3174 = dma.done.wait (%p3252_p7), %s161_s28, 55296  }
  0x35   : > { %3176 = vsyncadd (%p3252_p7), %s161_s28, 4294912000  ;;  %v3196_v0 = vmov 0.0|0.0   ;;  %v194_v1 = vld [vmem:[%s4696_s0] sm:$0xff]  ;;  %v195_v2 = vld [vmem:[%s4696_s0 + $0x8] sm:$0xff]  ;;  %s188_s12 = smul.u32 144, %s2552_s16  ;;  %vm2340_vm0 = vcmask 400384  }
  0x36   : > { %2969 = vmatprep.subr.bf16.mxu0 %v3196_v0  ;;  %3049 = vmatprep.subr.bf16.mxu1 %v3196_v0  ;;  %v242_v3 = vld [vmem:[%s4697_s1] sm:$0xff]  ;;  %v243_v4 = vld [vmem:[%s4697_s1 + $0x8] sm:$0xff]  ;;  %v196_v6 = vld [vmem:[%s4696_s0 + $0x10] sm:$0xff] }
  0x37   : > { %v290_v5 = vadd.f32 %v242_v3, %v194_v1  ;;  %v197_v7 = vld [vmem:[%s4696_s0 + $0x18] sm:$0xff]  ;;  %v291_v8 = vadd.f32 %v243_v4, %v195_v2  ;;  %v244_v9 = vld [vmem:[%s4697_s1 + $0x10] sm:$0xff]  ;;  %v198_v11 = vld [vmem:[%s4696_s0 + $0x20] sm:$0xff]  ;;  %p189_p7 = scmp.lt.s32.totalorder %s188_s12, 287 }
  0x38   : > { %v245_v10 = vld [vmem:[%s4697_s1 + $0x18] sm:$0xff]  ;;  %v292_v12 = vadd.f32 %v244_v9, %v196_v6  ;;  %v199_v14 = vld [vmem:[%s4696_s0 + $0x28] sm:$0xff]  ;;  %v246_v15 = vld [vmem:[%s4697_s1 + $0x20] sm:$0xff] }
  0x39   : > { %v293_v13 = vadd.f32 %v245_v10, %v197_v7  ;;  %v247_v16 = vld [vmem:[%s4697_s1 + $0x28] sm:$0xff]  ;;  %v2970_v17 = vpack.c.bf16 %v291_v8, %v290_v5  ;;  %v294_v19 = vadd.f32 %v246_v15, %v198_v11  ;;  %v200_v21 = vld [vmem:[%s4696_s0 + $0x30] sm:$0xff]  ;;  %v201_v22 = vld [vmem:[%s4696_s0 + $0x38] sm:$0xff]  ;;  %s4751_s12 = smov (!%p189_p7, %s188_s12), 287 }
  0x3a   : > { %v295_v20 = vadd.f32 %v247_v16, %v199_v14  ;;  %v248_v23 = vld [vmem:[%s4697_s1 + $0x30] sm:$0xff]  ;;  %v249_v24 = vld [vmem:[%s4697_s1 + $0x38] sm:$0xff]  ;;  %v202_v28 = vld [vmem:[%s4696_s0 + $0x40] sm:$0xff]  ;;  %s2558_s15 = sshll.u32 %s4751_s12, 3 }
  0x3b   : > { %2971 = vmatpush1.bf16.msra.mxu0 %v2970_v17  ;;  %3065 = vmatpush1.bf16.msra.mxu1 %v2970_v17  ;;  %v2973_v18 = vpack.c.bf16 %v293_v13, %v292_v12  ;;  %v296_v26 = vadd.f32 %v248_v23, %v200_v21  ;;  %v297_v27 = vadd.f32 %v249_v24, %v201_v22  ;;  %v203_v29 = vld [vmem:[%s4696_s0 + $0x48] sm:$0xff]  ;;  %v250_v30 = vld [vmem:[%s4697_s1 + $0x40] sm:$0xff]  ;;  %v204_v35 = vld [vmem:[%s4696_s0 + $0x50] sm:$0xff]  ;;  %s4137_s19 = scalar_lea.vmem %s4699_s3, %s2558_s15 }
  0x3c   : > { %2972 = vmatprep.subr.bf16.mxu0 %v3196_v0  ;;  %3050 = vmatprep.subr.bf16.mxu1 %v3196_v0  ;;  %v2976_v25 = vpack.c.bf16 %v295_v20, %v294_v19  ;;  %v251_v31 = vld [vmem:[%s4697_s1 + $0x48] sm:$0xff]  ;;  %v298_v33 = vadd.f32 %v250_v30, %v202_v28  ;;  %v205_v36 = vld [vmem:[%s4696_s0 + $0x58] sm:$0xff]  ;;  %v252_v37 = vld [vmem:[%s4697_s1 + $0x50] sm:$0xff] }
  0x3d   : > { %v2979_v32 = vpack.c.bf16 %v297_v27, %v296_v26  ;;  %v299_v34 = vadd.f32 %v251_v31, %v203_v29  ;;  %v253_v38 = vld [vmem:[%s4697_s1 + $0x58] sm:$0xff]  ;;  %v300_v40 = vadd.f32 %v252_v37, %v204_v35  ;;  %v206_v42 = vld [vmem:[%s4696_s0 + $0x60] sm:$0xff]  ;;  %v207_v43 = vld [vmem:[%s4696_s0 + $0x68] sm:$0xff] }
  0x3e   : > { %v301_v41 = vadd.f32 %v253_v38, %v205_v36  ;;  %v254_v44 = vld [vmem:[%s4697_s1 + $0x60] sm:$0xff]  ;;  %v255_v45 = vld [vmem:[%s4697_s1 + $0x68] sm:$0xff]  ;;  %v208_v51 = vld [vmem:[%s4696_s0 + $0x70] sm:$0xff] }
  0x3f   : > { %2974 = vmatpush1.bf16.msra.mxu0 %v2973_v18  ;;  %3066 = vmatpush1.bf16.msra.mxu1 %v2973_v18  ;;  %v2982_v39 = vpack.c.bf16 %v299_v34, %v298_v33  ;;  %v339_v46 = vld [vmem:[%s3300_s29 + $0x8] sm:$0xff]  ;;  %v302_v49 = vadd.f32 %v254_v44, %v206_v42  ;;  %v303_v50 = vadd.f32 %v255_v45, %v207_v43  ;;  %v209_v52 = vld [vmem:[%s4696_s0 + $0x78] sm:$0xff]  ;;  %v256_v53 = vld [vmem:[%s4697_s1 + $0x70] sm:$0xff] }
  0x40   : > { %2975 = vmatprep.subr.bf16.mxu0 %v3196_v0  ;;  %3051 = vmatprep.subr.bf16.mxu1 %v3196_v0  ;;  %v663_v47 = vld [vmem:[%s3300_s29 + $0xa28] sm:$0xff]  ;;  %v2985_v48 = vpack.c.bf16 %v301_v41, %v300_v40  ;;  %v257_v54 = vld [vmem:[%s4697_s1 + $0x78] sm:$0xff]  ;;  %v304_v56 = vadd.f32 %v256_v53, %v208_v51  ;;  %v210_v58 = vld [vmem:[%s4696_s0 + $0x80] sm:$0xff] }
  0x41   : > { %834 = vmatprep.mubr.f32.mxu0 %v339_v46  ;;  %1374 = vmatprep.mubr.f32.mxu1 %v663_v47  ;;  %v2988_v55 = vpack.c.bf16 %v303_v50, %v302_v49  ;;  %v305_v57 = vadd.f32 %v257_v54, %v209_v52  ;;  %v211_v59 = vld [vmem:[%s4696_s0 + $0x88] sm:$0xff]  ;;  %v258_v60 = vld [vmem:[%s4697_s1 + $0x80] sm:$0xff]  ;;  %v212_v2 = vld [vmem:[%s4696_s0 + $0x90] sm:$0xff] }
  0x42   : > { %v259_v61 = vld [vmem:[%s4697_s1 + $0x88] sm:$0xff]  ;;  %v306_v63 = vadd.f32 %v258_v60, %v210_v58  ;;  %v213_v3 = vld [vmem:[%s4696_s0 + $0x98] sm:$0xff]  ;;  %v260_v4 = vld [vmem:[%s4697_s1 + $0x90] sm:$0xff] }
  0x43   : > { %2977 = vmatpush1.bf16.msra.mxu0 %v2976_v25  ;;  %3067 = vmatpush1.bf16.msra.mxu1 %v2976_v25  ;;  %v2991_v62 = vpack.c.bf16 %v305_v57, %v304_v56  ;;  %v307_v1 = vadd.f32 %v259_v61, %v211_v59  ;;  %v261_v5 = vld [vmem:[%s4697_s1 + $0x98] sm:$0xff]  ;;  %v308_v7 = vadd.f32 %v260_v4, %v212_v2  ;;  %v214_v9 = vld [vmem:[%s4696_s0 + $0xa0] sm:$0xff]  ;;  %v215_v10 = vld [vmem:[%s4696_s0 + $0xa8] sm:$0xff] }
  0x44   : > { %2978 = vmatprep.subr.bf16.mxu0 %v3196_v0  ;;  %3052 = vmatprep.subr.bf16.mxu1 %v3196_v0  ;;  %v309_v8 = vadd.f32 %v261_v5, %v213_v3  ;;  %v262_v11 = vld [vmem:[%s4697_s1 + $0xa0] sm:$0xff]  ;;  %v263_v12 = vld [vmem:[%s4697_s1 + $0xa8] sm:$0xff]  ;;  %v216_v16 = vld [vmem:[%s4696_s0 + $0xb0] sm:$0xff] }
  0x45   : > { %v2994_v6 = vpack.c.bf16 %v307_v1, %v306_v63  ;;  %v310_v14 = vadd.f32 %v262_v11, %v214_v9  ;;  %v311_v15 = vadd.f32 %v263_v12, %v215_v10  ;;  %v217_v17 = vld [vmem:[%s4696_s0 + $0xb8] sm:$0xff]  ;;  %v264_v18 = vld [vmem:[%s4697_s1 + $0xb0] sm:$0xff]  ;;  %v218_v23 = vld [vmem:[%s4696_s0 + $0xc0] sm:$0xff] }
  0x46   : > { %v2997_v13 = vpack.c.bf16 %v309_v8, %v308_v7  ;;  %v265_v19 = vld [vmem:[%s4697_s1 + $0xb8] sm:$0xff]  ;;  %v312_v21 = vadd.f32 %v264_v18, %v216_v16  ;;  %v219_v24 = vld [vmem:[%s4696_s0 + $0xc8] sm:$0xff]  ;;  %v266_v25 = vld [vmem:[%s4697_s1 + $0xc0] sm:$0xff] }
  0x47   : > { %2980 = vmatpush1.bf16.msra.mxu0 %v2979_v32  ;;  %3068 = vmatpush1.bf16.msra.mxu1 %v2979_v32  ;;  %v3000_v20 = vpack.c.bf16 %v311_v15, %v310_v14  ;;  %v313_v22 = vadd.f32 %v265_v19, %v217_v17  ;;  %v267_v26 = vld [vmem:[%s4697_s1 + $0xc8] sm:$0xff]  ;;  %v314_v28 = vadd.f32 %v266_v25, %v218_v23  ;;  %v220_v30 = vld [vmem:[%s4696_s0 + $0xd0] sm:$0xff]  ;;  %v221_v31 = vld [vmem:[%s4696_s0 + $0xd8] sm:$0xff] }
  0x48   : > { %2981 = vmatprep.subr.bf16.mxu0 %v3196_v0  ;;  %3053 = vmatprep.subr.bf16.mxu1 %v3196_v0  ;;  %v315_v29 = vadd.f32 %v267_v26, %v219_v24  ;;  %v268_v32 = vld [vmem:[%s4697_s1 + $0xd0] sm:$0xff]  ;;  %v269_v33 = vld [vmem:[%s4697_s1 + $0xd8] sm:$0xff]  ;;  %v222_v37 = vld [vmem:[%s4696_s0 + $0xe0] sm:$0xff] }
  0x49   : > { %v3003_v27 = vpack.c.bf16 %v313_v22, %v312_v21  ;;  %v316_v35 = vadd.f32 %v268_v32, %v220_v30  ;;  %v317_v36 = vadd.f32 %v269_v33, %v221_v31  ;;  %v223_v38 = vld [vmem:[%s4696_s0 + $0xe8] sm:$0xff]  ;;  %v224_v44 = vld [vmem:[%s4696_s0 + $0xf0] sm:$0xff]  ;;  %v225_v45 = vld [vmem:[%s4696_s0 + $0xf8] sm:$0xff] }
  0x4a   : > { %v3006_v34 = vpack.c.bf16 %v315_v29, %v314_v28  ;;  %v271_v40 = vld [vmem:[%s4697_s1 + $0xe8] sm:$0xff]  ;;  %v272_v46 = vld [vmem:[%s4697_s1 + $0xf0] sm:$0xff]  ;;  %v273_v47 = vld [vmem:[%s4697_s1 + $0xf8] sm:$0xff] }
  0x4b   : > { %2983 = vmatpush1.bf16.msra.mxu0 %v2982_v39  ;;  %3069 = vmatpush1.bf16.msra.mxu1 %v2982_v39  ;;  %v270_v39 = vld [vmem:[%s4697_s1 + $0xe0] sm:$0xff]  ;;  %v3009_v41 = vpack.c.bf16 %v317_v36, %v316_v35  ;;  %v319_v43 = vadd.f32 %v271_v40, %v223_v38  ;;  %v227_v49 = vld [vmem:[%s4696_s0 + $0x108] sm:$0xff]  ;;  %v320_v53 = vadd.f32 %v272_v46, %v224_v44  ;;  %v228_v57 = vld [vmem:[%s4696_s0 + $0x110] sm:$0xff] }
  0x4c   : > { %2984 = vmatprep.subr.bf16.mxu0 %v3196_v0  ;;  %3054 = vmatprep.subr.bf16.mxu1 %v3196_v0  ;;  %v318_v42 = vadd.f32 %v270_v39, %v222_v37  ;;  %v274_v50 = vld [vmem:[%s4697_s1 + $0x100] sm:$0xff]  ;;  %v275_v51 = vld [vmem:[%s4697_s1 + $0x108] sm:$0xff]  ;;  %v321_v54 = vadd.f32 %v273_v47, %v225_v45  ;;  %v229_v58 = vld [vmem:[%s4696_s0 + $0x118] sm:$0xff] }
  0x4d   : > { %v323_v56 = vadd.f32 %v275_v51, %v227_v49  ;;  %v276_v59 = vld [vmem:[%s4697_s1 + $0x110] sm:$0xff]  ;;  %v277_v60 = vld [vmem:[%s4697_s1 + $0x118] sm:$0xff]  ;;  %v230_v2 = vld [vmem:[%s4696_s0 + $0x120] sm:$0xff] }
  0x4e   : > { %v3012_v52 = vpack.c.bf16 %v319_v43, %v318_v42  ;;  %v3015_v61 = vpack.c.bf16 %v321_v54, %v320_v53  ;;  %v324_v63 = vadd.f32 %v276_v59, %v228_v57  ;;  %v325_v1 = vadd.f32 %v277_v60, %v229_v58  ;;  %v231_v3 = vld [vmem:[%s4696_s0 + $0x128] sm:$0xff]  ;;  %v278_v4 = vld [vmem:[%s4697_s1 + $0x120] sm:$0xff]  ;;  %v232_v12 = vld [vmem:[%s4696_s0 + $0x130] sm:$0xff] }
  0x4f   : > { %2986 = vmatpush1.bf16.msra.mxu0 %v2985_v48  ;;  %3070 = vmatpush1.bf16.msra.mxu1 %v2985_v48  ;;  %v226_v48 = vld [vmem:[%s4696_s0 + $0x100] sm:$0xff]  ;;  %v279_v5 = vld [vmem:[%s4697_s1 + $0x128] sm:$0xff]  ;;  %v326_v10 = vadd.f32 %v278_v4, %v230_v2  ;;  %v280_v14 = vld [vmem:[%s4697_s1 + $0x130] sm:$0xff] }
  0x50   : > { %2987 = vmatprep.subr.bf16.mxu0 %v3196_v0  ;;  %3055 = vmatprep.subr.bf16.mxu1 %v3196_v0  ;;  %v342_v7 = vld [vmem:[%s3300_s29 + $0x20] sm:$0xff]  ;;  %v3021_v8 = vpack.c.bf16 %v325_v1, %v324_v63  ;;  %v327_v11 = vadd.f32 %v279_v5, %v231_v3  ;;  %v281_v15 = vld [vmem:[%s4697_s1 + $0x138] sm:$0xff]  ;;  %v328_v21 = vadd.f32 %v280_v14, %v232_v12  ;;  %v235_v24 = vld [vmem:[%s4696_s0 + $0x148] sm:$0xff] }
  0x51   : > { %v666_v9 = vld [vmem:[%s3300_s29 + $0xa40] sm:$0xff]  ;;  %v341_v16 = vld [vmem:[%s3300_s29 + $0x18] sm:$0xff]  ;;  %v283_v26 = vld [vmem:[%s4697_s1 + $0x148] sm:$0xff] }
  0x52   : > { %v665_v17 = vld [vmem:[%s3300_s29 + $0xa38] sm:$0xff]  ;;  %v234_v23 = vld [vmem:[%s4696_s0 + $0x140] sm:$0xff]  ;;  %v668_v28 = vld [vmem:[%s3300_s29 + $0xa50] sm:$0xff]  ;;  %v331_v33 = vadd.f32 %v283_v26, %v235_v24 }
  0x53   : > { %2989 = vmatpush1.bf16.msra.mxu0 %v2988_v55  ;;  %3071 = vmatpush1.bf16.msra.mxu1 %v2988_v55  ;;  %v322_v55 = vadd.f32 %v274_v50, %v226_v48  ;;  %v345_v18 = vld [vmem:[%s3300_s29 + $0x38] sm:$0xff]  ;;  %v282_v25 = vld [vmem:[%s4697_s1 + $0x140] sm:$0xff]  ;;  %v348_v29 = vld [vmem:[%s3300_s29 + $0x50] sm:$0xff] }
  0x54   : > { %2990 = vmatprep.subr.bf16.mxu0 %v3196_v0  ;;  %3056 = vmatprep.subr.bf16.mxu1 %v3196_v0  ;;  %v669_v19 = vld [vmem:[%s3300_s29 + $0xa58] sm:$0xff]  ;;  %v672_v30 = vld [vmem:[%s3300_s29 + $0xa70] sm:$0xff]  ;;  %v330_v32 = vadd.f32 %v282_v25, %v234_v23  ;;  %v347_v38 = vld [vmem:[%s3300_s29 + $0x48] sm:$0xff] }
  0x55   : > { %v237_v35 = vld [vmem:[%s4696_s0 + $0x158] sm:$0xff]  ;;  %v284_v36 = vld [vmem:[%s4697_s1 + $0x150] sm:$0xff]  ;;  %v671_v39 = vld [vmem:[%s3300_s29 + $0xa68] sm:$0xff] }
  0x56   : > { %v285_v37 = vld [vmem:[%s4697_s1 + $0x158] sm:$0xff]  ;;  %v351_v40 = vld [vmem:[%s3300_s29 + $0x68] sm:$0xff]  ;;  %v3033_v42 = vpack.c.bf16 %v331_v33, %v330_v32  ;;  %v238_v45 = vld [vmem:[%s4696_s0 + $0x160] sm:$0xff] }
  0x57   : > { %2992 = vmatpush1.bf16.msra.mxu0 %v2991_v62  ;;  %3072 = vmatpush1.bf16.msra.mxu1 %v2991_v62  ;;  %v3017_v62 = vpack.c.bf16 %v323_v56, %v322_v55  ;;  %v333_v44 = vadd.f32 %v285_v37, %v237_v35  ;;  %v239_v46 = vld [vmem:[%s4696_s0 + $0x168] sm:$0xff]  ;;  %v286_v47 = vld [vmem:[%s4697_s1 + $0x160] sm:$0xff]  ;;  %v240_v56 = vld [vmem:[%s4696_s0 + $0x170] sm:$0xff] }
  0x58   : > { %2993 = vmatprep.subr.bf16.mxu0 %v3196_v0  ;;  %3057 = vmatprep.subr.bf16.mxu1 %v3196_v0  ;;  %v287_v48 = vld [vmem:[%s4697_s1 + $0x168] sm:$0xff]  ;;  %v350_v49 = vld [vmem:[%s3300_s29 + $0x60] sm:$0xff]  ;;  %v334_v54 = vadd.f32 %v286_v47, %v238_v45  ;;  %v241_v57 = vld [vmem:[%s4696_s0 + $0x178] sm:$0xff] }
  0x59   : > { %v674_v50 = vld [vmem:[%s3300_s29 + $0xa80] sm:$0xff]  ;;  %v335_v55 = vadd.f32 %v287_v48, %v239_v46  ;;  %v288_v58 = vld [vmem:[%s4697_s1 + $0x170] sm:$0xff]  ;;  %v289_v59 = vld [vmem:[%s4697_s1 + $0x178] sm:$0xff] }
  0x5a   : > { %v354_v51 = vld [vmem:[%s3300_s29 + $0x80] sm:$0xff]  ;;  %v353_v60 = vld [vmem:[%s3300_s29 + $0x78] sm:$0xff]  ;;  %v336_v2 = vadd.f32 %v288_v58, %v240_v56  ;;  %v337_v3 = vadd.f32 %v289_v59, %v241_v57  ;;  %v356_v4 = vld [vmem:[%s3300_s29 + $0x90] sm:$0xff] }
  0x5b   : > { %2995 = vmatpush1.bf16.msra.mxu0 %v2994_v6  ;;  %3073 = vmatpush1.bf16.msra.mxu1 %v2994_v6  ;;  %v662_v6 = vld [vmem:[%s3300_s29 + $0xa20] sm:$0xff]  ;;  %v681_v63 = vld [vmem:[%s3300_s29 + $0xab8] sm:$0xff]  ;;  %v3041_v1 = vpack.c.bf16 %v335_v55, %v334_v54  ;;  %v680_v5 = vld [vmem:[%s3300_s29 + $0xab0] sm:$0xff] }
  0x5c   : > { %2996 = vmatprep.subr.bf16.mxu0 %v3196_v0  ;;  %3058 = vmatprep.subr.bf16.mxu1 %v3196_v0  ;;  %v362_v12 = vld [vmem:[%s3300_s29 + $0xc0] sm:$0xff]  ;;  %v696_v23 = vld [vmem:[%s3300_s29 + $0xb30] sm:$0xff]  ;;  %v371_v24 = vld [vmem:[%s3300_s29 + $0x108] sm:$0xff] }
  0x5d   : > { %v366_v14 = vld [vmem:[%s3300_s29 + $0xe0] sm:$0xff]  ;;  %v695_v25 = vld [vmem:[%s3300_s29 + $0xb28] sm:$0xff]  ;;  %v377_v32 = vld [vmem:[%s3300_s29 + $0x138] sm:$0xff] }
  0x5e   : > { %v375_v26 = vld [vmem:[%s3300_s29 + $0x128] sm:$0xff]  ;;  %v701_v33 = vld [vmem:[%s3300_s29 + $0xb58] sm:$0xff]  ;;  %v704_v37 = vld [vmem:[%s3300_s29 + $0xb70] sm:$0xff] }
  0x5f   : > { %2998 = vmatpush1.bf16.msra.mxu0 %v2997_v13  ;;  %3074 = vmatpush1.bf16.msra.mxu1 %v2997_v13  ;;  %v233_v13 = vld [vmem:[%s4696_s0 + $0x138] sm:$0xff]  ;;  %v710_v45 = vld [vmem:[%s3300_s29 + $0xba0] sm:$0xff]  ;;  %v396_v54 = vld [vmem:[%s3300_s29 + $0x1d0] sm:$0xff] }
  0x60   : > { %2999 = vmatprep.subr.bf16.mxu0 %v3196_v0  ;;  %3059 = vmatprep.subr.bf16.mxu1 %v3196_v0  ;;  %v329_v22 = vadd.f32 %v281_v15, %v233_v13  ;;  %v686_v13 = vld [vmem:[%s3300_s29 + $0xae0] sm:$0xff]  ;;  %v705_v35 = vld [vmem:[%s3300_s29 + $0xb78] sm:$0xff]  ;;  %v720_v55 = vld [vmem:[%s3300_s29 + $0xbf0] sm:$0xff] }
  0x61   : > { %v690_v15 = vld [vmem:[%s3300_s29 + $0xb00] sm:$0xff]  ;;  %v389_v48 = vld [vmem:[%s3300_s29 + $0x198] sm:$0xff]  ;;  %v395_v56 = vld [vmem:[%s3300_s29 + $0x1c8] sm:$0xff] }
  0x62   : > { %v3029_v31 = vpack.c.bf16 %v329_v22, %v328_v21  ;;  %v692_v21 = vld [vmem:[%s3300_s29 + $0xb10] sm:$0xff]  ;;  %v390_v46 = vld [vmem:[%s3300_s29 + $0x1a0] sm:$0xff]  ;;  %v719_v57 = vld [vmem:[%s3300_s29 + $0xbe8] sm:$0xff] }
  0x63   : > { %3001 = vmatpush1.bf16.msra.mxu0 %v3000_v20  ;;  %3075 = vmatpush1.bf16.msra.mxu1 %v3000_v20  ;;  %v3025_v20 = vpack.c.bf16 %v327_v11, %v326_v10  ;;  %v363_v10 = vld [vmem:[%s3300_s29 + $0xc8] sm:$0xff]  ;;  %v372_v22 = vld [vmem:[%s3300_s29 + $0x110] sm:$0xff]  ;;  %v714_v47 = vld [vmem:[%s3300_s29 + $0xbc0] sm:$0xff] }
  0x64   : > { %3002 = vmatprep.subr.bf16.mxu0 %v3196_v0  ;;  %3060 = vmatprep.subr.bf16.mxu1 %v3196_v0  ;;  %v687_v11 = vld [vmem:[%s3300_s29 + $0xae8] sm:$0xff] }
  0x65   : > { %v399_v58 = vld [vmem:[%s3300_s29 + $0x1e8] sm:$0xff] }
  0x66   : > { %v723_v59 = vld [vmem:[%s3300_s29 + $0xc08] sm:$0xff] }
  0x67   : > { %3004 = vmatpush1.bf16.msra.mxu0 %v3003_v27  ;;  %3076 = vmatpush1.bf16.msra.mxu1 %v3003_v27  ;;  %v344_v27 = vld [vmem:[%s3300_s29 + $0x30] sm:$0xff] }
  0x68   : > { %3005 = vmatprep.subr.bf16.mxu0 %v3196_v0  ;;  %3061 = vmatprep.subr.bf16.mxu1 %v3196_v0 }
  0x6b   : > { %3007 = vmatpush1.bf16.msra.mxu0 %v3006_v34  ;;  %3077 = vmatpush1.bf16.msra.mxu1 %v3006_v34  ;;  %v236_v34 = vld [vmem:[%s4696_s0 + $0x150] sm:$0xff] }
  0x6c   : > { %3008 = vmatprep.subr.bf16.mxu0 %v3196_v0  ;;  %3062 = vmatprep.subr.bf16.mxu1 %v3196_v0  ;;  %v332_v43 = vadd.f32 %v284_v36, %v236_v34  ;;  %v381_v34 = vld [vmem:[%s3300_s29 + $0x158] sm:$0xff]  ;;  %v380_v36 = vld [vmem:[%s3300_s29 + $0x150] sm:$0xff] }
  0x6e   : > { %v3037_v53 = vpack.c.bf16 %v333_v44, %v332_v43  ;;  %v711_v43 = vld [vmem:[%s3300_s29 + $0xba8] sm:$0xff]  ;;  %v386_v44 = vld [vmem:[%s3300_s29 + $0x180] sm:$0xff] }
  0x6f   : > { %3010 = vmatpush1.bf16.msra.mxu0 %v3009_v41  ;;  %3078 = vmatpush1.bf16.msra.mxu1 %v3009_v41  ;;  %v675_v41 = vld [vmem:[%s3300_s29 + $0xa88] sm:$0xff] }
  0x70   : > { %3011 = vmatprep.subr.bf16.mxu0 %v3196_v0  ;;  %3063 = vmatprep.subr.bf16.mxu1 %v3196_v0 }
  0x73   : > { %3013 = vmatpush1.bf16.msra.mxu0 %v3012_v52  ;;  %3079 = vmatpush1.bf16.msra.mxu1 %v3012_v52  ;;  %v678_v52 = vld [vmem:[%s3300_s29 + $0xaa0] sm:$0xff] }
  0x74   : > { %3014 = vmatprep.subr.bf16.mxu0 %v3196_v0  ;;  %3064 = vmatprep.subr.bf16.mxu1 %v3196_v0  ;;  %v338_v0 = vld [vmem:[%s3300_s29] sm:$0xff] }
  0x77   : > { %3016 = vmatpush1.bf16.msra.mxu0 %v3015_v61  ;;  %3080 = vmatpush1.bf16.msra.mxu1 %v3015_v61  ;;  %v677_v61 = vld [vmem:[%s3300_s29 + $0xa98] sm:$0xff] }
  0x78   : > { %3018 = vmatprep.subr.bf16.mxu1 %v3017_v62 }
  0x7a   : > { %835 = vmatmul.mubr.f32.vlgmr.msra.gmra.mrb[0].mxu0 %v338_v0  ;;  %1375 = vmatmul.mubr.f32.vlgmr.msra.gmra.mrb[0].mxu1 %v662_v6  ;;  %v360_v0 = vld [vmem:[%s3300_s29 + $0xb0] sm:$0xff] }
  0x7b   : > { %3020 = vmatpush3.bf16.msra.mxu1 %v3017_v62  ;;  %839 = vmatprep.mubr.f32.mxu0 %v342_v7  ;;  %v357_v62 = vld [vmem:[%s3300_s29 + $0x98] sm:$0xff]  ;;  %v684_v6 = vld [vmem:[%s3300_s29 + $0xad0] sm:$0xff]  ;;  %v3045_v7 = vpack.c.bf16 %v337_v3, %v336_v2 }
  0x7c   : > { %1379 = vmatprep.mubr.f32.mxu1 %v666_v9  ;;  %3022 = vmatprep.subr.bf16.mxu1 %v3021_v8  ;;  %v683_v9 = vld [vmem:[%s3300_s29 + $0xac8] sm:$0xff]  ;;  %v725_v2 = vld [vmem:[%s3300_s29 + $0xc18] sm:$0xff] }
  0x7d   : > { %v405_v3 = vld [vmem:[%s3300_s29 + $0x218] sm:$0xff] }
  0x7e   : > { %840 = vmatmul.mubr.f32.gmra.mrb[2].mxu0 %v341_v16  ;;  %1380 = vmatmul.mubr.f32.gmra.mrb[2].mxu1 %v665_v17  ;;  %v365_v16 = vld [vmem:[%s3300_s29 + $0xd8] sm:$0xff] }
  0x7f   : > { %844 = vmatprep.mubr.f32.mxu0 %v345_v18  ;;  %1384 = vmatprep.mubr.f32.mxu1 %v669_v19  ;;  %v689_v17 = vld [vmem:[%s3300_s29 + $0xaf8] sm:$0xff] }
  0x80   : > { %3024 = vmatpush3.bf16.msra.mxu1 %v3021_v8  ;;  %v359_v8 = vld [vmem:[%s3300_s29 + $0xa8] sm:$0xff]  ;;  %v369_v18 = vld [vmem:[%s3300_s29 + $0xf8] sm:$0xff] }
  0x81   : > { %3026 = vmatprep.subr.bf16.mxu1 %v3025_v20  ;;  %v693_v19 = vld [vmem:[%s3300_s29 + $0xb18] sm:$0xff] }
  0x82   : > { %845 = vmatmul.mubr.f32.gmra.mrb[4].mxu0 %v344_v27  ;;  %1385 = vmatmul.mubr.f32.gmra.mrb[4].mxu1 %v668_v28  ;;  %v699_v27 = vld [vmem:[%s3300_s29 + $0xb48] sm:$0xff]  ;;  %v374_v28 = vld [vmem:[%s3300_s29 + $0x120] sm:$0xff] }
  0x83   : > { %849 = vmatprep.mubr.f32.mxu0 %v348_v29  ;;  %1389 = vmatprep.mubr.f32.mxu1 %v672_v30  ;;  %v698_v29 = vld [vmem:[%s3300_s29 + $0xb40] sm:$0xff] }
  0x84   : > { %3028 = vmatpush3.bf16.msra.mxu1 %v3025_v20  ;;  %v368_v20 = vld [vmem:[%s3300_s29 + $0xf0] sm:$0xff]  ;;  %v378_v30 = vld [vmem:[%s3300_s29 + $0x140] sm:$0xff] }
  0x85   : > { %3030 = vmatprep.subr.bf16.mxu1 %v3029_v31 }
  0x86   : > { %850 = vmatmul.mubr.f32.gmra.mrb[6].mxu0 %v347_v38  ;;  %1390 = vmatmul.mubr.f32.gmra.mrb[6].mxu1 %v671_v39  ;;  %v384_v38 = vld [vmem:[%s3300_s29 + $0x170] sm:$0xff] }
  0x87   : > { %854 = vmatprep.mubr.f32.mxu0 %v351_v40  ;;  %1394 = vmatprep.mubr.f32.mxu1 %v675_v41  ;;  %v708_v39 = vld [vmem:[%s3300_s29 + $0xb90] sm:$0xff]  ;;  %v383_v40 = vld [vmem:[%s3300_s29 + $0x168] sm:$0xff] }
  0x88   : > { %3032 = vmatpush3.bf16.msra.mxu1 %v3029_v31  ;;  %v702_v31 = vld [vmem:[%s3300_s29 + $0xb60] sm:$0xff]  ;;  %v707_v41 = vld [vmem:[%s3300_s29 + $0xb88] sm:$0xff] }
  0x89   : > { %3034 = vmatprep.subr.bf16.mxu1 %v3033_v42 }
  0x8a   : > { %855 = vmatmul.mubr.f32.gmra.mrb[8].mxu0 %v350_v49  ;;  %1395 = vmatmul.mubr.f32.gmra.mrb[8].mxu1 %v674_v50  ;;  %v713_v49 = vld [vmem:[%s3300_s29 + $0xbb8] sm:$0xff] }
  0x8b   : > { %859 = vmatprep.mubr.f32.mxu0 %v354_v51  ;;  %1399 = vmatprep.mubr.f32.mxu1 %v678_v52  ;;  %v393_v50 = vld [vmem:[%s3300_s29 + $0x1b8] sm:$0xff]  ;;  %v392_v52 = vld [vmem:[%s3300_s29 + $0x1b0] sm:$0xff] }
  0x8c   : > { %3036 = vmatpush3.bf16.msra.mxu1 %v3033_v42  ;;  %v387_v42 = vld [vmem:[%s3300_s29 + $0x188] sm:$0xff]  ;;  %v717_v51 = vld [vmem:[%s3300_s29 + $0xbd8] sm:$0xff] }
  0x8d   : > { %3038 = vmatprep.subr.bf16.mxu1 %v3037_v53 }
  0x8e   : > { %860 = vmatmul.mubr.f32.gmra.mrb[10].mxu0 %v353_v60  ;;  %1400 = vmatmul.mubr.f32.gmra.mrb[10].mxu1 %v677_v61  ;;  %v398_v60 = vld [vmem:[%s3300_s29 + $0x1e0] sm:$0xff] }
  0x8f   : > { %864 = vmatprep.mubr.f32.mxu0 %v357_v62  ;;  %1404 = vmatprep.mubr.f32.mxu1 %v681_v63  ;;  %v722_v61 = vld [vmem:[%s3300_s29 + $0xc00] sm:$0xff] }
  0x90   : > { %3040 = vmatpush3.bf16.msra.mxu1 %v3037_v53  ;;  %v716_v53 = vld [vmem:[%s3300_s29 + $0xbd0] sm:$0xff]  ;;  %v402_v62 = vld [vmem:[%s3300_s29 + $0x200] sm:$0xff] }
  0x91   : > { %3042 = vmatprep.subr.bf16.mxu1 %v3041_v1  ;;  %v726_v63 = vld [vmem:[%s3300_s29 + $0xc20] sm:$0xff] }
  0x92   : > { %865 = vmatmul.mubr.f32.gmra.mrb[12].mxu0 %v356_v4  ;;  %1405 = vmatmul.mubr.f32.gmra.mrb[12].mxu1 %v680_v5  ;;  %v729_v4 = vld [vmem:[%s3300_s29 + $0xc38] sm:$0xff]  ;;  %v404_v5 = vld [vmem:[%s3300_s29 + $0x210] sm:$0xff] }
  0x93   : > { %869 = vmatprep.mubr.f32.mxu0 %v360_v0  ;;  %1409 = vmatprep.mubr.f32.mxu1 %v684_v6  ;;  %v728_v0 = vld [vmem:[%s3300_s29 + $0xc30] sm:$0xff] }
  0x94   : > { %3044 = vmatpush3.bf16.msra.mxu1 %v3041_v1  ;;  %v401_v1 = vld [vmem:[%s3300_s29 + $0x1f8] sm:$0xff]  ;;  %v408_v6 = vld [vmem:[%s3300_s29 + $0x230] sm:$0xff] }
  0x95   : > { %3046 = vmatprep.subr.bf16.mxu1 %v3045_v7 }
  0x96   : > { %870 = vmatmul.mubr.f32.gmra.mrb[14].mxu0 %v359_v8  ;;  %1410 = vmatmul.mubr.f32.gmra.mrb[14].mxu1 %v683_v9  ;;  %v407_v8 = vld [vmem:[%s3300_s29 + $0x228] sm:$0xff] }
  0x97   : > { %874 = vmatprep.mubr.f32.mxu0 %v363_v10  ;;  %1414 = vmatprep.mubr.f32.mxu1 %v687_v11  ;;  %v731_v9 = vld [vmem:[%s3300_s29 + $0xc48] sm:$0xff] }
  0x98   : > { %3048 = vmatpush3.bf16.msra.mxu1 %v3045_v7  ;;  %v732_v7 = vld [vmem:[%s3300_s29 + $0xc50] sm:$0xff]  ;;  %v411_v10 = vld [vmem:[%s3300_s29 + $0x248] sm:$0xff] }
  0x99   : > { %v735_v11 = vld [vmem:[%s3300_s29 + $0xc68] sm:$0xff] }
  0x9a   : > { %875 = vmatmul.mubr.f32.gmra.mrb[16].mxu0 %v362_v12  ;;  %1415 = vmatmul.mubr.f32.gmra.mrb[16].mxu1 %v686_v13  ;;  %v410_v12 = vld [vmem:[%s3300_s29 + $0x240] sm:$0xff] }
  0x9b   : > { %879 = vmatprep.mubr.f32.mxu0 %v366_v14  ;;  %1419 = vmatprep.mubr.f32.mxu1 %v690_v15  ;;  %v734_v13 = vld [vmem:[%s3300_s29 + $0xc60] sm:$0xff] }
  0x9c   : > { %v414_v14 = vld [vmem:[%s3300_s29 + $0x260] sm:$0xff] }
  0x9d   : > { %v738_v15 = vld [vmem:[%s3300_s29 + $0xc80] sm:$0xff] }
  0x9e   : > { %880 = vmatmul.mubr.f32.gmra.mrb[18].mxu0 %v365_v16  ;;  %1420 = vmatmul.mubr.f32.gmra.mrb[18].mxu1 %v689_v17  ;;  %v413_v16 = vld [vmem:[%s3300_s29 + $0x258] sm:$0xff] }
  0x9f   : > { %884 = vmatprep.mubr.f32.mxu0 %v369_v18  ;;  %1424 = vmatprep.mubr.f32.mxu1 %v693_v19  ;;  %v737_v17 = vld [vmem:[%s3300_s29 + $0xc78] sm:$0xff] }
  0xa0   : > { %v417_v18 = vld [vmem:[%s3300_s29 + $0x278] sm:$0xff] }
  0xa1   : > { %v741_v19 = vld [vmem:[%s3300_s29 + $0xc98] sm:$0xff] }
  0xa2   : > { %885 = vmatmul.mubr.f32.gmra.mrb[20].mxu0 %v368_v20  ;;  %1425 = vmatmul.mubr.f32.gmra.mrb[20].mxu1 %v692_v21  ;;  %v416_v20 = vld [vmem:[%s3300_s29 + $0x270] sm:$0xff] }
  0xa3   : > { %889 = vmatprep.mubr.f32.mxu0 %v372_v22  ;;  %1429 = vmatprep.mubr.f32.mxu1 %v696_v23  ;;  %v740_v21 = vld [vmem:[%s3300_s29 + $0xc90] sm:$0xff] }
  0xa4   : > { %v420_v22 = vld [vmem:[%s3300_s29 + $0x290] sm:$0xff] }
  0xa5   : > { %v744_v23 = vld [vmem:[%s3300_s29 + $0xcb0] sm:$0xff] }
  0xa6   : > { %890 = vmatmul.mubr.f32.gmra.mrb[22].mxu0 %v371_v24  ;;  %1430 = vmatmul.mubr.f32.gmra.mrb[22].mxu1 %v695_v25  ;;  %v419_v24 = vld [vmem:[%s3300_s29 + $0x288] sm:$0xff] }
  0xa7   : > { %894 = vmatprep.mubr.f32.mxu0 %v375_v26  ;;  %1434 = vmatprep.mubr.f32.mxu1 %v699_v27  ;;  %v743_v25 = vld [vmem:[%s3300_s29 + $0xca8] sm:$0xff] }
  0xa8   : > { %v423_v26 = vld [vmem:[%s3300_s29 + $0x2a8] sm:$0xff] }
  0xa9   : > { %v747_v27 = vld [vmem:[%s3300_s29 + $0xcc8] sm:$0xff] }
  0xaa   : > { %895 = vmatmul.mubr.f32.gmra.mrb[24].mxu0 %v374_v28  ;;  %1435 = vmatmul.mubr.f32.gmra.mrb[24].mxu1 %v698_v29  ;;  %v422_v28 = vld [vmem:[%s3300_s29 + $0x2a0] sm:$0xff] }
  0xab   : > { %899 = vmatprep.mubr.f32.mxu0 %v378_v30  ;;  %1439 = vmatprep.mubr.f32.mxu1 %v702_v31  ;;  %v746_v29 = vld [vmem:[%s3300_s29 + $0xcc0] sm:$0xff] }
  0xac   : > { %v426_v30 = vld [vmem:[%s3300_s29 + $0x2c0] sm:$0xff] }
  0xad   : > { %v750_v31 = vld [vmem:[%s3300_s29 + $0xce0] sm:$0xff] }
  0xae   : > { %900 = vmatmul.mubr.f32.gmra.mrb[26].mxu0 %v377_v32  ;;  %1440 = vmatmul.mubr.f32.gmra.mrb[26].mxu1 %v701_v33  ;;  %v425_v32 = vld [vmem:[%s3300_s29 + $0x2b8] sm:$0xff] }
  0xaf   : > { %904 = vmatprep.mubr.f32.mxu0 %v381_v34  ;;  %1444 = vmatprep.mubr.f32.mxu1 %v705_v35  ;;  %v749_v33 = vld [vmem:[%s3300_s29 + $0xcd8] sm:$0xff] }
  0xb0   : > { %v429_v34 = vld [vmem:[%s3300_s29 + $0x2d8] sm:$0xff] }
  0xb1   : > { %v753_v35 = vld [vmem:[%s3300_s29 + $0xcf8] sm:$0xff] }
  0xb2   : > { %905 = vmatmul.mubr.f32.gmra.mrb[28].mxu0 %v380_v36  ;;  %1445 = vmatmul.mubr.f32.gmra.mrb[28].mxu1 %v704_v37  ;;  %v428_v36 = vld [vmem:[%s3300_s29 + $0x2d0] sm:$0xff] }
  0xb3   : > { %909 = vmatprep.mubr.f32.mxu0 %v384_v38  ;;  %1449 = vmatprep.mubr.f32.mxu1 %v708_v39  ;;  %v752_v37 = vld [vmem:[%s3300_s29 + $0xcf0] sm:$0xff] }
  0xb4   : > { %v432_v38 = vld [vmem:[%s3300_s29 + $0x2f0] sm:$0xff] }
  0xb5   : > { %v756_v39 = vld [vmem:[%s3300_s29 + $0xd10] sm:$0xff] }
  0xb6   : > { %910 = vmatmul.mubr.f32.gmra.mrb[30].mxu0 %v383_v40  ;;  %1450 = vmatmul.mubr.f32.gmra.mrb[30].mxu1 %v707_v41  ;;  %v431_v40 = vld [vmem:[%s3300_s29 + $0x2e8] sm:$0xff] }
  0xb7   : > { %914 = vmatprep.mubr.f32.mxu0 %v387_v42  ;;  %1454 = vmatprep.mubr.f32.mxu1 %v711_v43  ;;  %v755_v41 = vld [vmem:[%s3300_s29 + $0xd08] sm:$0xff] }
  0xb8   : > { %v435_v42 = vld [vmem:[%s3300_s29 + $0x308] sm:$0xff] }
  0xb9   : > { %v759_v43 = vld [vmem:[%s3300_s29 + $0xd28] sm:$0xff] }
  0xba   : > { %915 = vmatmul.mubr.f32.gmra.mrb[32].mxu0 %v386_v44  ;;  %1455 = vmatmul.mubr.f32.gmra.mrb[32].mxu1 %v710_v45  ;;  %v434_v44 = vld [vmem:[%s3300_s29 + $0x300] sm:$0xff] }
  0xbb   : > { %919 = vmatprep.mubr.f32.mxu0 %v390_v46  ;;  %1459 = vmatprep.mubr.f32.mxu1 %v714_v47  ;;  %v758_v45 = vld [vmem:[%s3300_s29 + $0xd20] sm:$0xff] }
  0xbc   : > { %v438_v46 = vld [vmem:[%s3300_s29 + $0x320] sm:$0xff] }
  0xbd   : > { %v762_v47 = vld [vmem:[%s3300_s29 + $0xd40] sm:$0xff] }
  0xbe   : > { %920 = vmatmul.mubr.f32.gmra.mrb[34].mxu0 %v389_v48  ;;  %1460 = vmatmul.mubr.f32.gmra.mrb[34].mxu1 %v713_v49  ;;  %v437_v48 = vld [vmem:[%s3300_s29 + $0x318] sm:$0xff] }
  0xbf   : > { %924 = vmatprep.mubr.f32.mxu0 %v393_v50  ;;  %1464 = vmatprep.mubr.f32.mxu1 %v717_v51  ;;  %v761_v49 = vld [vmem:[%s3300_s29 + $0xd38] sm:$0xff] }
  0xc0   : > { %v441_v50 = vld [vmem:[%s3300_s29 + $0x338] sm:$0xff] }
  0xc1   : > { %v765_v51 = vld [vmem:[%s3300_s29 + $0xd58] sm:$0xff] }
  0xc2   : > { %925 = vmatmul.mubr.f32.gmra.mrb[36].mxu0 %v392_v52  ;;  %1465 = vmatmul.mubr.f32.gmra.mrb[36].mxu1 %v716_v53  ;;  %v440_v52 = vld [vmem:[%s3300_s29 + $0x330] sm:$0xff] }
  0xc3   : > { %929 = vmatprep.mubr.f32.mxu0 %v396_v54  ;;  %1469 = vmatprep.mubr.f32.mxu1 %v720_v55  ;;  %v764_v53 = vld [vmem:[%s3300_s29 + $0xd50] sm:$0xff] }
  0xc4   : > { %v444_v54 = vld [vmem:[%s3300_s29 + $0x350] sm:$0xff] }
  0xc5   : > { %v768_v55 = vld [vmem:[%s3300_s29 + $0xd70] sm:$0xff] }
  0xc6   : > { %930 = vmatmul.mubr.f32.gmra.mrb[38].mxu0 %v395_v56  ;;  %1470 = vmatmul.mubr.f32.gmra.mrb[38].mxu1 %v719_v57  ;;  %v443_v56 = vld [vmem:[%s3300_s29 + $0x348] sm:$0xff] }
  0xc7   : > { %934 = vmatprep.mubr.f32.mxu0 %v399_v58  ;;  %1474 = vmatprep.mubr.f32.mxu1 %v723_v59  ;;  %v767_v57 = vld [vmem:[%s3300_s29 + $0xd68] sm:$0xff]  ;;  %v340_v59 = vld [vmem:[%s3300_s29 + $0x10] sm:$0xff] }
  0xc8   : > { %v447_v58 = vld [vmem:[%s3300_s29 + $0x368] sm:$0xff] }
  0xca   : > { %935 = vmatmul.mubr.f32.gmra.mrb[40].mxu0 %v398_v60  ;;  %1475 = vmatmul.mubr.f32.gmra.mrb[40].mxu1 %v722_v61  ;;  %v446_v60 = vld [vmem:[%s3300_s29 + $0x360] sm:$0xff]  ;;  %v343_v61 = vld [vmem:[%s3300_s29 + $0x28] sm:$0xff] }
  0xcb   : > { %939 = vmatprep.mubr.f32.mxu0 %v402_v62  ;;  %1479 = vmatprep.mubr.f32.mxu1 %v726_v63  ;;  %v450_v62 = vld [vmem:[%s3300_s29 + $0x380] sm:$0xff] }
  0xcc   : > { %v346_v63 = vld [vmem:[%s3300_s29 + $0x40] sm:$0xff] }
  0xce   : > { %940 = vmatmul.mubr.f32.gmra.mrb[42].mxu0 %v401_v1  ;;  %1480 = vmatmul.mubr.f32.gmra.mrb[42].mxu1 %v725_v2  ;;  %v449_v1 = vld [vmem:[%s3300_s29 + $0x378] sm:$0xff] }
  0xcf   : > { %944 = vmatprep.mubr.f32.mxu0 %v405_v3  ;;  %1484 = vmatprep.mubr.f32.mxu1 %v729_v4  ;;  %v349_v2 = vld [vmem:[%s3300_s29 + $0x58] sm:$0xff]  ;;  %v352_v4 = vld [vmem:[%s3300_s29 + $0x70] sm:$0xff] }
  0xd0   : > { %v453_v3 = vld [vmem:[%s3300_s29 + $0x398] sm:$0xff] }
  0xd2   : > { %945 = vmatmul.mubr.f32.gmra.mrb[44].mxu0 %v404_v5  ;;  %1485 = vmatmul.mubr.f32.gmra.mrb[44].mxu1 %v728_v0  ;;  %v452_v5 = vld [vmem:[%s3300_s29 + $0x390] sm:$0xff]  ;;  %v355_v0 = vld [vmem:[%s3300_s29 + $0x88] sm:$0xff] }
  0xd3   : > { %949 = vmatprep.mubr.f32.mxu0 %v408_v6  ;;  %1489 = vmatprep.mubr.f32.mxu1 %v732_v7  ;;  %v456_v6 = vld [vmem:[%s3300_s29 + $0x3b0] sm:$0xff]  ;;  %v358_v7 = vld [vmem:[%s3300_s29 + $0xa0] sm:$0xff] }
  0xd6   : > { %950 = vmatmul.mubr.f32.gmra.mrb[46].mxu0 %v407_v8  ;;  %1490 = vmatmul.mubr.f32.gmra.mrb[46].mxu1 %v731_v9  ;;  %v455_v8 = vld [vmem:[%s3300_s29 + $0x3a8] sm:$0xff]  ;;  %v361_v9 = vld [vmem:[%s3300_s29 + $0xb8] sm:$0xff] }
  0xd7   : > { %954 = vmatprep.mubr.f32.mxu0 %v411_v10  ;;  %1494 = vmatprep.mubr.f32.mxu1 %v735_v11  ;;  %v459_v10 = vld [vmem:[%s3300_s29 + $0x3c8] sm:$0xff]  ;;  %v364_v11 = vld [vmem:[%s3300_s29 + $0xd0] sm:$0xff] }
  0xda   : > { %955 = vmatmul.mubr.f32.gmra.mrb[48].mxu0 %v410_v12  ;;  %1495 = vmatmul.mubr.f32.gmra.mrb[48].mxu1 %v734_v13  ;;  %v458_v12 = vld [vmem:[%s3300_s29 + $0x3c0] sm:$0xff]  ;;  %v367_v13 = vld [vmem:[%s3300_s29 + $0xe8] sm:$0xff] }
  0xdb   : > { %959 = vmatprep.mubr.f32.mxu0 %v414_v14  ;;  %1499 = vmatprep.mubr.f32.mxu1 %v738_v15  ;;  %v462_v14 = vld [vmem:[%s3300_s29 + $0x3e0] sm:$0xff] }
  0xdc   : > { %v370_v15 = vld [vmem:[%s3300_s29 + $0x100] sm:$0xff] }
  0xde   : > { %960 = vmatmul.mubr.f32.gmra.mrb[50].mxu0 %v413_v16  ;;  %1500 = vmatmul.mubr.f32.gmra.mrb[50].mxu1 %v737_v17  ;;  %v461_v16 = vld [vmem:[%s3300_s29 + $0x3d8] sm:$0xff] }
  0xdf   : > { %964 = vmatprep.mubr.f32.mxu0 %v417_v18  ;;  %1504 = vmatprep.mubr.f32.mxu1 %v741_v19  ;;  %v373_v17 = vld [vmem:[%s3300_s29 + $0x118] sm:$0xff]  ;;  %v376_v19 = vld [vmem:[%s3300_s29 + $0x130] sm:$0xff] }
  0xe0   : > { %v465_v18 = vld [vmem:[%s3300_s29 + $0x3f8] sm:$0xff] }
  0xe2   : > { %965 = vmatmul.mubr.f32.gmra.mrb[52].mxu0 %v416_v20  ;;  %1505 = vmatmul.mubr.f32.gmra.mrb[52].mxu1 %v740_v21  ;;  %v464_v20 = vld [vmem:[%s3300_s29 + $0x3f0] sm:$0xff]  ;;  %v379_v21 = vld [vmem:[%s3300_s29 + $0x148] sm:$0xff] }
  0xe3   : > { %969 = vmatprep.mubr.f32.mxu0 %v420_v22  ;;  %1509 = vmatprep.mubr.f32.mxu1 %v744_v23  ;;  %v468_v22 = vld [vmem:[%s3300_s29 + $0x410] sm:$0xff]  ;;  %v382_v23 = vld [vmem:[%s3300_s29 + $0x160] sm:$0xff] }
  0xe6   : > { %970 = vmatmul.mubr.f32.gmra.mrb[54].mxu0 %v419_v24  ;;  %1510 = vmatmul.mubr.f32.gmra.mrb[54].mxu1 %v743_v25  ;;  %v467_v24 = vld [vmem:[%s3300_s29 + $0x408] sm:$0xff]  ;;  %v385_v25 = vld [vmem:[%s3300_s29 + $0x178] sm:$0xff] }
  0xe7   : > { %974 = vmatprep.mubr.f32.mxu0 %v423_v26  ;;  %1514 = vmatprep.mubr.f32.mxu1 %v747_v27  ;;  %v471_v26 = vld [vmem:[%s3300_s29 + $0x428] sm:$0xff]  ;;  %v388_v27 = vld [vmem:[%s3300_s29 + $0x190] sm:$0xff] }
  0xea   : > { %975 = vmatmul.mubr.f32.gmra.mrb[56].mxu0 %v422_v28  ;;  %1515 = vmatmul.mubr.f32.gmra.mrb[56].mxu1 %v746_v29  ;;  %v470_v28 = vld [vmem:[%s3300_s29 + $0x420] sm:$0xff]  ;;  %v391_v29 = vld [vmem:[%s3300_s29 + $0x1a8] sm:$0xff] }
  0xeb   : > { %979 = vmatprep.mubr.f32.mxu0 %v426_v30  ;;  %1519 = vmatprep.mubr.f32.mxu1 %v750_v31  ;;  %v474_v30 = vld [vmem:[%s3300_s29 + $0x440] sm:$0xff] }
  0xec   : > { %v394_v31 = vld [vmem:[%s3300_s29 + $0x1c0] sm:$0xff] }
  0xee   : > { %980 = vmatmul.mubr.f32.gmra.mrb[58].mxu0 %v425_v32  ;;  %1520 = vmatmul.mubr.f32.gmra.mrb[58].mxu1 %v749_v33  ;;  %v473_v32 = vld [vmem:[%s3300_s29 + $0x438] sm:$0xff] }
  0xef   : > { %984 = vmatprep.mubr.f32.mxu0 %v429_v34  ;;  %1524 = vmatprep.mubr.f32.mxu1 %v753_v35  ;;  %v397_v33 = vld [vmem:[%s3300_s29 + $0x1d8] sm:$0xff]  ;;  %v400_v35 = vld [vmem:[%s3300_s29 + $0x1f0] sm:$0xff] }
  0xf0   : > { %v477_v34 = vld [vmem:[%s3300_s29 + $0x458] sm:$0xff] }
  0xf2   : > { %985 = vmatmul.mubr.f32.gmra.mrb[60].mxu0 %v428_v36  ;;  %1525 = vmatmul.mubr.f32.gmra.mrb[60].mxu1 %v752_v37  ;;  %v476_v36 = vld [vmem:[%s3300_s29 + $0x450] sm:$0xff]  ;;  %v403_v37 = vld [vmem:[%s3300_s29 + $0x208] sm:$0xff] }
  0xf3   : > { %989 = vmatprep.mubr.f32.mxu0 %v432_v38  ;;  %1529 = vmatprep.mubr.f32.mxu1 %v756_v39  ;;  %v480_v38 = vld [vmem:[%s3300_s29 + $0x470] sm:$0xff]  ;;  %v406_v39 = vld [vmem:[%s3300_s29 + $0x220] sm:$0xff] }
  0xf6   : > { %990 = vmatmul.mubr.f32.gmra.mrb[62].mxu0 %v431_v40  ;;  %1530 = vmatmul.mubr.f32.gmra.mrb[62].mxu1 %v755_v41  ;;  %v479_v40 = vld [vmem:[%s3300_s29 + $0x468] sm:$0xff]  ;;  %v409_v41 = vld [vmem:[%s3300_s29 + $0x238] sm:$0xff] }
  0xf7   : > { %994 = vmatprep.mubr.f32.mxu0 %v435_v42  ;;  %1534 = vmatprep.mubr.f32.mxu1 %v759_v43  ;;  %v483_v42 = vld [vmem:[%s3300_s29 + $0x488] sm:$0xff]  ;;  %v412_v43 = vld [vmem:[%s3300_s29 + $0x250] sm:$0xff] }
  0xfa   : > { %995 = vmatmul.mubr.f32.gmra.mrb[64].mxu0 %v434_v44  ;;  %1535 = vmatmul.mubr.f32.gmra.mrb[64].mxu1 %v758_v45  ;;  %v482_v44 = vld [vmem:[%s3300_s29 + $0x480] sm:$0xff]  ;;  %v415_v45 = vld [vmem:[%s3300_s29 + $0x268] sm:$0xff] }
  0xfb   : > { %999 = vmatprep.mubr.f32.mxu0 %v438_v46  ;;  %1539 = vmatprep.mubr.f32.mxu1 %v762_v47  ;;  %v486_v46 = vld [vmem:[%s3300_s29 + $0x4a0] sm:$0xff] }
  0xfc   : > { %v418_v47 = vld [vmem:[%s3300_s29 + $0x280] sm:$0xff] }
  0xfe   : > { %1000 = vmatmul.mubr.f32.gmra.mrb[66].mxu0 %v437_v48  ;;  %1540 = vmatmul.mubr.f32.gmra.mrb[66].mxu1 %v761_v49  ;;  %v485_v48 = vld [vmem:[%s3300_s29 + $0x498] sm:$0xff] }
  0xff   : > { %1004 = vmatprep.mubr.f32.mxu0 %v441_v50  ;;  %1544 = vmatprep.mubr.f32.mxu1 %v765_v51  ;;  %v421_v49 = vld [vmem:[%s3300_s29 + $0x298] sm:$0xff]  ;;  %v424_v51 = vld [vmem:[%s3300_s29 + $0x2b0] sm:$0xff] }
 0x100   : > { %v489_v50 = vld [vmem:[%s3300_s29 + $0x4b8] sm:$0xff] }
 0x102   : > { %1005 = vmatmul.mubr.f32.gmra.mrb[68].mxu0 %v440_v52  ;;  %1545 = vmatmul.mubr.f32.gmra.mrb[68].mxu1 %v764_v53  ;;  %v488_v52 = vld [vmem:[%s3300_s29 + $0x4b0] sm:$0xff]  ;;  %v427_v53 = vld [vmem:[%s3300_s29 + $0x2c8] sm:$0xff] }
 0x103   : > { %1009 = vmatprep.mubr.f32.mxu0 %v444_v54  ;;  %1549 = vmatprep.mubr.f32.mxu1 %v768_v55  ;;  %v492_v54 = vld [vmem:[%s3300_s29 + $0x4d0] sm:$0xff]  ;;  %v430_v55 = vld [vmem:[%s3300_s29 + $0x2e0] sm:$0xff] }
 0x106   : > { %1010 = vmatmul.mubr.f32.gmra.mrb[70].mxu0 %v443_v56  ;;  %1550 = vmatmul.mubr.f32.gmra.mrb[70].mxu1 %v767_v57  ;;  %v491_v56 = vld [vmem:[%s3300_s29 + $0x4c8] sm:$0xff]  ;;  %v433_v57 = vld [vmem:[%s3300_s29 + $0x2f8] sm:$0xff] }
 0x107   : > { %1014 = vmatprep.mubr.f32.mxu0 %v447_v58  ;;  %2753 = vmatprep.mubr.f32.mxu1 %v340_v59  ;;  %v495_v58 = vld [vmem:[%s3300_s29 + $0x4e8] sm:$0xff]  ;;  %v436_v59 = vld [vmem:[%s3300_s29 + $0x310] sm:$0xff] }
 0x10a   : > { %1015 = vmatmul.mubr.f32.gmra.mrb[72].mxu0 %v446_v60  ;;  %2754 = vmatmul.mubr.f32.vlgmr.msra.gmra.mrb[72].mxu1 %v343_v61  ;;  %v494_v60 = vld [vmem:[%s3300_s29 + $0x4e0] sm:$0xff]  ;;  %v439_v61 = vld [vmem:[%s3300_s29 + $0x328] sm:$0xff] }
 0x10b   : > { %1019 = vmatprep.mubr.f32.mxu0 %v450_v62  ;;  %2756 = vmatprep.mubr.f32.mxu1 %v346_v63  ;;  %v498_v62 = vld [vmem:[%s3300_s29 + $0x500] sm:$0xff] }
 0x10c   : > { %v442_v63 = vld [vmem:[%s3300_s29 + $0x340] sm:$0xff] }
 0x10e   : > { %1020 = vmatmul.mubr.f32.gmra.mrb[74].mxu0 %v449_v1  ;;  %2757 = vmatmul.mubr.f32.gmra.mrb[74].mxu1 %v349_v2  ;;  %v497_v1 = vld [vmem:[%s3300_s29 + $0x4f8] sm:$0xff] }
 0x10f   : > { %1024 = vmatprep.mubr.f32.mxu0 %v453_v3  ;;  %2759 = vmatprep.mubr.f32.mxu1 %v352_v4  ;;  %v445_v2 = vld [vmem:[%s3300_s29 + $0x358] sm:$0xff]  ;;  %v448_v4 = vld [vmem:[%s3300_s29 + $0x370] sm:$0xff] }
 0x110   : > { %v501_v3 = vld [vmem:[%s3300_s29 + $0x518] sm:$0xff] }
 0x112   : > { %1025 = vmatmul.mubr.f32.gmra.mrb[76].mxu0 %v452_v5  ;;  %2760 = vmatmul.mubr.f32.gmra.mrb[76].mxu1 %v355_v0 }
 0x113   : > { %1029 = vmatprep.mubr.f32.mxu0 %v456_v6  ;;  %2762 = vmatprep.mubr.f32.mxu1 %v358_v7 }
 0x116   : > { %1030 = vmatmul.mubr.f32.gmra.mrb[78].mxu0 %v455_v8  ;;  %2763 = vmatmul.mubr.f32.gmra.mrb[78].mxu1 %v361_v9  ;;  %v500_v8 = vld [vmem:[%s3300_s29 + $0x510] sm:$0xff]  ;;  %v451_v9 = vld [vmem:[%s3300_s29 + $0x388] sm:$0xff] }
 0x117   : > { %1034 = vmatprep.mubr.f32.mxu0 %v459_v10  ;;  %2765 = vmatprep.mubr.f32.mxu1 %v364_v11  ;;  %v504_v10 = vld [vmem:[%s3300_s29 + $0x530] sm:$0xff]  ;;  %v454_v11 = vld [vmem:[%s3300_s29 + $0x3a0] sm:$0xff] }
 0x11a   : > { %1035 = vmatmul.mubr.f32.gmra.mrb[80].mxu0 %v458_v12  ;;  %2766 = vmatmul.mubr.f32.gmra.mrb[80].mxu1 %v367_v13 }
 0x11b   : > { %1039 = vmatprep.mubr.f32.mxu0 %v462_v14  ;;  %2768 = vmatprep.mubr.f32.mxu1 %v370_v15 }
 0x11e   : > { %1040 = vmatmul.mubr.f32.gmra.mrb[82].mxu0 %v461_v16  ;;  %2769 = vmatmul.mubr.f32.gmra.mrb[82].mxu1 %v373_v17  ;;  %v503_v16 = vld [vmem:[%s3300_s29 + $0x528] sm:$0xff]  ;;  %v457_v17 = vld [vmem:[%s3300_s29 + $0x3b8] sm:$0xff] }
 0x11f   : > { %1044 = vmatprep.mubr.f32.mxu0 %v465_v18  ;;  %2771 = vmatprep.mubr.f32.mxu1 %v376_v19  ;;  %v507_v18 = vld [vmem:[%s3300_s29 + $0x548] sm:$0xff]  ;;  %v460_v19 = vld [vmem:[%s3300_s29 + $0x3d0] sm:$0xff] }
 0x122   : > { %1045 = vmatmul.mubr.f32.gmra.mrb[84].mxu0 %v464_v20  ;;  %2772 = vmatmul.mubr.f32.gmra.mrb[84].mxu1 %v379_v21 }
 0x123   : > { %1049 = vmatprep.mubr.f32.mxu0 %v468_v22  ;;  %2774 = vmatprep.mubr.f32.mxu1 %v382_v23 }
 0x126   : > { %1050 = vmatmul.mubr.f32.gmra.mrb[86].mxu0 %v467_v24  ;;  %2775 = vmatmul.mubr.f32.gmra.mrb[86].mxu1 %v385_v25  ;;  %v506_v24 = vld [vmem:[%s3300_s29 + $0x540] sm:$0xff]  ;;  %v463_v25 = vld [vmem:[%s3300_s29 + $0x3e8] sm:$0xff] }
 0x127   : > { %1054 = vmatprep.mubr.f32.mxu0 %v471_v26  ;;  %2777 = vmatprep.mubr.f32.mxu1 %v388_v27  ;;  %v510_v26 = vld [vmem:[%s3300_s29 + $0x560] sm:$0xff] }
 0x128   : > { %v466_v27 = vld [vmem:[%s3300_s29 + $0x400] sm:$0xff] }
 0x12a   : > { %1055 = vmatmul.mubr.f32.gmra.mrb[88].mxu0 %v470_v28  ;;  %2778 = vmatmul.mubr.f32.gmra.mrb[88].mxu1 %v391_v29 }
 0x12b   : > { %1059 = vmatprep.mubr.f32.mxu0 %v474_v30  ;;  %2780 = vmatprep.mubr.f32.mxu1 %v394_v31 }
 0x12e   : > { %1060 = vmatmul.mubr.f32.gmra.mrb[90].mxu0 %v473_v32  ;;  %2781 = vmatmul.mubr.f32.gmra.mrb[90].mxu1 %v397_v33  ;;  %v509_v32 = vld [vmem:[%s3300_s29 + $0x558] sm:$0xff] }
 0x12f   : > { %1064 = vmatprep.mubr.f32.mxu0 %v477_v34  ;;  %2783 = vmatprep.mubr.f32.mxu1 %v400_v35  ;;  %v469_v33 = vld [vmem:[%s3300_s29 + $0x418] sm:$0xff]  ;;  %v472_v35 = vld [vmem:[%s3300_s29 + $0x430] sm:$0xff] }
 0x130   : > { %v513_v34 = vld [vmem:[%s3300_s29 + $0x578] sm:$0xff] }
 0x132   : > { %1065 = vmatmul.mubr.f32.gmra.mrb[92].mxu0 %v476_v36  ;;  %2784 = vmatmul.mubr.f32.gmra.mrb[92].mxu1 %v403_v37 }
 0x133   : > { %1069 = vmatprep.mubr.f32.mxu0 %v480_v38  ;;  %2786 = vmatprep.mubr.f32.mxu1 %v406_v39 }
 0x136   : > { %1070 = vmatmul.mubr.f32.gmra.mrb[94].mxu0 %v479_v40  ;;  %2787 = vmatmul.mubr.f32.gmra.mrb[94].mxu1 %v409_v41  ;;  %v512_v40 = vld [vmem:[%s3300_s29 + $0x570] sm:$0xff]  ;;  %v475_v41 = vld [vmem:[%s3300_s29 + $0x448] sm:$0xff] }
 0x137   : > { %1074 = vmatprep.mubr.f32.mxu0 %v483_v42  ;;  %2789 = vmatprep.mubr.f32.mxu1 %v412_v43  ;;  %v516_v42 = vld [vmem:[%s3300_s29 + $0x590] sm:$0xff]  ;;  %v478_v43 = vld [vmem:[%s3300_s29 + $0x460] sm:$0xff] }
 0x13a   : > { %1075 = vmatmul.mubr.f32.gmra.mrb[96].mxu0 %v482_v44  ;;  %2790 = vmatmul.mubr.f32.gmra.mrb[96].mxu1 %v415_v45 }
 0x13b   : > { %1079 = vmatprep.mubr.f32.mxu0 %v486_v46  ;;  %2792 = vmatprep.mubr.f32.mxu1 %v418_v47 }
 0x13e   : > { %1080 = vmatmul.mubr.f32.gmra.mrb[98].mxu0 %v485_v48  ;;  %2793 = vmatmul.mubr.f32.gmra.mrb[98].mxu1 %v421_v49  ;;  %v515_v48 = vld [vmem:[%s3300_s29 + $0x588] sm:$0xff]  ;;  %v481_v49 = vld [vmem:[%s3300_s29 + $0x478] sm:$0xff] }
 0x13f   : > { %1084 = vmatprep.mubr.f32.mxu0 %v489_v50  ;;  %2795 = vmatprep.mubr.f32.mxu1 %v424_v51  ;;  %v519_v50 = vld [vmem:[%s3300_s29 + $0x5a8] sm:$0xff]  ;;  %v484_v51 = vld [vmem:[%s3300_s29 + $0x490] sm:$0xff] }
 0x142   : > { %1085 = vmatmul.mubr.f32.gmra.mrb[100].mxu0 %v488_v52  ;;  %2796 = vmatmul.mubr.f32.gmra.mrb[100].mxu1 %v427_v53 }
 0x143   : > { %1089 = vmatprep.mubr.f32.mxu0 %v492_v54  ;;  %2798 = vmatprep.mubr.f32.mxu1 %v430_v55 }
 0x146   : > { %1090 = vmatmul.mubr.f32.gmra.mrb[102].mxu0 %v491_v56  ;;  %2799 = vmatmul.mubr.f32.gmra.mrb[102].mxu1 %v433_v57  ;;  %v518_v56 = vld [vmem:[%s3300_s29 + $0x5a0] sm:$0xff]  ;;  %v487_v57 = vld [vmem:[%s3300_s29 + $0x4a8] sm:$0xff] }
 0x147   : > { %1094 = vmatprep.mubr.f32.mxu0 %v495_v58  ;;  %2801 = vmatprep.mubr.f32.mxu1 %v436_v59  ;;  %v522_v58 = vld [vmem:[%s3300_s29 + $0x5c0] sm:$0xff] }
 0x148   : > { %v490_v59 = vld [vmem:[%s3300_s29 + $0x4c0] sm:$0xff] }
 0x14a   : > { %1095 = vmatmul.mubr.f32.gmra.mrb[104].mxu0 %v494_v60  ;;  %2802 = vmatmul.mubr.f32.gmra.mrb[104].mxu1 %v439_v61 }
 0x14b   : > { %1099 = vmatprep.mubr.f32.mxu0 %v498_v62  ;;  %2804 = vmatprep.mubr.f32.mxu1 %v442_v63 }
 0x14d   : > { %v3844_v5 = vpop.f32.mrb[0].mxu1  ;;  %v3846_v0 = vpop.f32.mrb[0].mxu0 }
 0x14e   : > { %1100 = vmatmul.mubr.f32.gmra.mrb[106].mxu0 %v497_v1  ;;  %v1378_v6 = vpop.f32.mrb[1].mxu1  ;;  %2805 = vmatmul.mubr.f32.gmra.mrb[106].mxu1 %v445_v2  ;;  %v838_v7 = vpop.f32.mrb[1].mxu0  ;;  %v521_v1 = vld [vmem:[%s3300_s29 + $0x5b8] sm:$0xff] }
 0x14f   : > { %1104 = vmatprep.mubr.f32.mxu0 %v501_v3  ;;  %2807 = vmatprep.mubr.f32.mxu1 %v448_v4  ;;  %v493_v2 = vld [vmem:[%s3300_s29 + $0x4d8] sm:$0xff]  ;;  %v496_v4 = vld [vmem:[%s3300_s29 + $0x4f0] sm:$0xff] }
 0x150   : > { %v525_v3 = vld [vmem:[%s3300_s29 + $0x5d8] sm:$0xff] }
 0x151   : > { %v3852_v12 = vpop.f32.mrb[2].mxu1  ;;  %v3854_v13 = vpop.f32.mrb[2].mxu0 }
 0x152   : > { %1105 = vmatmul.mubr.f32.gmra.mrb[108].mxu0 %v500_v8  ;;  %v1383_v14 = vpop.f32.mrb[3].mxu1  ;;  %2808 = vmatmul.mubr.f32.gmra.mrb[108].mxu1 %v451_v9  ;;  %v843_v15 = vpop.f32.mrb[3].mxu0 }
 0x153   : > { %1109 = vmatprep.mubr.f32.mxu0 %v504_v10  ;;  %2810 = vmatprep.mubr.f32.mxu1 %v454_v11  ;;  %v524_v10 = vld [vmem:[%s3300_s29 + $0x5d0] sm:$0xff]  ;;  %v499_v11 = vld [vmem:[%s3300_s29 + $0x508] sm:$0xff]  ;;  %v502_v15 = vld [vmem:[%s3300_s29 + $0x520] sm:$0xff] }
 0x154   : > { %v528_v14 = vld [vmem:[%s3300_s29 + $0x5f0] sm:$0xff] }
 0x155   : > { %v3860_v20 = vpop.f32.mrb[4].mxu1  ;;  %v3862_v21 = vpop.f32.mrb[4].mxu0 }
 0x156   : > { %1110 = vmatmul.mubr.f32.gmra.mrb[110].mxu0 %v503_v16  ;;  %v1388_v22 = vpop.f32.mrb[5].mxu1  ;;  %2811 = vmatmul.mubr.f32.gmra.mrb[110].mxu1 %v457_v17  ;;  %v848_v23 = vpop.f32.mrb[5].mxu0 }
 0x157   : > { %1114 = vmatprep.mubr.f32.mxu0 %v507_v18  ;;  %2813 = vmatprep.mubr.f32.mxu1 %v460_v19  ;;  %v527_v22 = vld [vmem:[%s3300_s29 + $0x5e8] sm:$0xff]  ;;  %v505_v23 = vld [vmem:[%s3300_s29 + $0x538] sm:$0xff] }
 0x159   : > { %v3868_v28 = vpop.f32.mrb[6].mxu1  ;;  %v3870_v29 = vpop.f32.mrb[6].mxu0 }
 0x15a   : > { %1115 = vmatmul.mubr.f32.gmra.mrb[112].mxu0 %v506_v24  ;;  %v1393_v30 = vpop.f32.mrb[7].mxu1  ;;  %2814 = vmatmul.mubr.f32.gmra.mrb[112].mxu1 %v463_v25  ;;  %v853_v31 = vpop.f32.mrb[7].mxu0  ;;  %v531_v24 = vld [vmem:[%s3300_s29 + $0x608] sm:$0xff]  ;;  %v508_v25 = vld [vmem:[%s3300_s29 + $0x550] sm:$0xff] }
 0x15b   : > { %1119 = vmatprep.mubr.f32.mxu0 %v510_v26  ;;  %2816 = vmatprep.mubr.f32.mxu1 %v466_v27 }
 0x15d   : > { %v3876_v36 = vpop.f32.mrb[8].mxu1  ;;  %v3878_v37 = vpop.f32.mrb[8].mxu0 }
 0x15e   : > { %1120 = vmatmul.mubr.f32.gmra.mrb[114].mxu0 %v509_v32  ;;  %v1398_v38 = vpop.f32.mrb[9].mxu1  ;;  %2817 = vmatmul.mubr.f32.gmra.mrb[114].mxu1 %v469_v33  ;;  %v858_v39 = vpop.f32.mrb[9].mxu0  ;;  %v530_v32 = vld [vmem:[%s3300_s29 + $0x600] sm:$0xff]  ;;  %v511_v33 = vld [vmem:[%s3300_s29 + $0x568] sm:$0xff] }
 0x15f   : > { %1124 = vmatprep.mubr.f32.mxu0 %v513_v34  ;;  %2819 = vmatprep.mubr.f32.mxu1 %v472_v35  ;;  %v534_v34 = vld [vmem:[%s3300_s29 + $0x620] sm:$0xff] }
 0x160   : > { %v514_v35 = vld [vmem:[%s3300_s29 + $0x580] sm:$0xff] }
 0x161   : > { %v3884_v44 = vpop.f32.mrb[10].mxu1  ;;  %v3886_v45 = vpop.f32.mrb[10].mxu0 }
 0x162   : > { %1125 = vmatmul.mubr.f32.gmra.mrb[116].mxu0 %v512_v40  ;;  %v1403_v46 = vpop.f32.mrb[11].mxu1  ;;  %2820 = vmatmul.mubr.f32.gmra.mrb[116].mxu1 %v475_v41  ;;  %v863_v47 = vpop.f32.mrb[11].mxu0 }
 0x163   : > { %1129 = vmatprep.mubr.f32.mxu0 %v516_v42  ;;  %2822 = vmatprep.mubr.f32.mxu1 %v478_v43  ;;  %v533_v42 = vld [vmem:[%s3300_s29 + $0x618] sm:$0xff]  ;;  %v520_v47 = vld [vmem:[%s3300_s29 + $0x5b0] sm:$0xff] }
 0x164   : > { %v517_v43 = vld [vmem:[%s3300_s29 + $0x598] sm:$0xff] }
 0x165   : > { %v3892_v52 = vpop.f32.mrb[12].mxu1  ;;  %v3894_v53 = vpop.f32.mrb[12].mxu0  ;;  %v537_v46 = vld [vmem:[%s3300_s29 + $0x638] sm:$0xff] }
 0x166   : > { %1130 = vmatmul.mubr.f32.gmra.mrb[118].mxu0 %v515_v48  ;;  %v1408_v54 = vpop.f32.mrb[13].mxu1  ;;  %2823 = vmatmul.mubr.f32.gmra.mrb[118].mxu1 %v481_v49  ;;  %v868_v55 = vpop.f32.mrb[13].mxu0 }
 0x167   : > { %1134 = vmatprep.mubr.f32.mxu0 %v519_v50  ;;  %2825 = vmatprep.mubr.f32.mxu1 %v484_v51  ;;  %v536_v54 = vld [vmem:[%s3300_s29 + $0x630] sm:$0xff]  ;;  %v523_v55 = vld [vmem:[%s3300_s29 + $0x5c8] sm:$0xff] }
 0x169   : > { %v3900_v60 = vpop.f32.mrb[14].mxu1  ;;  %v3902_v61 = vpop.f32.mrb[14].mxu0 }
 0x16a   : > { %1135 = vmatmul.mubr.f32.gmra.mrb[120].mxu0 %v518_v56  ;;  %v1413_v62 = vpop.f32.mrb[15].mxu1  ;;  %2826 = vmatmul.mubr.f32.gmra.mrb[120].mxu1 %v487_v57  ;;  %v873_v63 = vpop.f32.mrb[15].mxu0  ;;  %v540_v56 = vld [vmem:[%s3300_s29 + $0x650] sm:$0xff]  ;;  %v526_v57 = vld [vmem:[%s3300_s29 + $0x5e0] sm:$0xff] }
 0x16b   : > { %1139 = vmatprep.mubr.f32.mxu0 %v522_v58  ;;  %2828 = vmatprep.mubr.f32.mxu1 %v490_v59 }
 0x16d   : > { %v3908_v6 = vpop.f32.mrb[16].mxu1  ;;  %v3910_v7 = vpop.f32.mrb[16].mxu0 }
 0x16e   : > { %1140 = vmatmul.mubr.f32.gmra.mrb[122].mxu0 %v521_v1  ;;  %v1418_v8 = vpop.f32.mrb[17].mxu1  ;;  %2829 = vmatmul.mubr.f32.gmra.mrb[122].mxu1 %v493_v2  ;;  %v878_v9 = vpop.f32.mrb[17].mxu0  ;;  %v539_v1 = vld [vmem:[%s3300_s29 + $0x648] sm:$0xff]  ;;  %v529_v2 = vld [vmem:[%s3300_s29 + $0x5f8] sm:$0xff] }
 0x16f   : > { %1144 = vmatprep.mubr.f32.mxu0 %v525_v3  ;;  %2831 = vmatprep.mubr.f32.mxu1 %v496_v4  ;;  %v543_v3 = vld [vmem:[%s3300_s29 + $0x668] sm:$0xff]  ;;  %v532_v4 = vld [vmem:[%s3300_s29 + $0x610] sm:$0xff] }
 0x171   : > { %v3916_v16 = vpop.f32.mrb[18].mxu1  ;;  %v3918_v17 = vpop.f32.mrb[18].mxu0 }
 0x172   : > { %1145 = vmatmul.mubr.f32.gmra.mrb[124].mxu0 %v524_v10  ;;  %v1423_v18 = vpop.f32.mrb[19].mxu1  ;;  %2832 = vmatmul.mubr.f32.gmra.mrb[124].mxu1 %v499_v11  ;;  %v883_v19 = vpop.f32.mrb[19].mxu0 }
 0x173   : > { %1149 = vmatprep.mubr.f32.mxu0 %v528_v14  ;;  %2834 = vmatprep.mubr.f32.mxu1 %v502_v15  ;;  %v542_v14 = vld [vmem:[%s3300_s29 + $0x660] sm:$0xff]  ;;  %v535_v15 = vld [vmem:[%s3300_s29 + $0x628] sm:$0xff] }
 0x174   : > { %v546_v18 = vld [vmem:[%s3300_s29 + $0x680] sm:$0xff] }
 0x175   : > { %v3924_v26 = vpop.f32.mrb[20].mxu1  ;;  %v3926_v27 = vpop.f32.mrb[20].mxu0  ;;  %v538_v19 = vld [vmem:[%s3300_s29 + $0x640] sm:$0xff] }
 0x176   : > { %1150 = vmatmul.mubr.f32.gmra.mrb[126].mxu0 %v527_v22  ;;  %v1428_v30 = vpop.f32.mrb[21].mxu1  ;;  %2835 = vmatmul.mubr.f32.gmra.mrb[126].mxu1 %v505_v23  ;;  %v888_v31 = vpop.f32.mrb[21].mxu0 }
 0x177   : > { %1154 = vmatprep.mubr.f32.mxu0 %v531_v24  ;;  %2837 = vmatprep.mubr.f32.mxu1 %v508_v25  ;;  %v545_v30 = vld [vmem:[%s3300_s29 + $0x678] sm:$0xff] }
 0x178   : > { %v541_v31 = vld [vmem:[%s3300_s29 + $0x658] sm:$0xff] }
 0x179   : > { %v3932_v38 = vpop.f32.mrb[22].mxu1  ;;  %v3934_v39 = vpop.f32.mrb[22].mxu0 }
 0x17a   : > { %1155 = vmatmul.mubr.f32.gmra.mrb[128].mxu0 %v530_v32  ;;  %v1433_v40 = vpop.f32.mrb[23].mxu1  ;;  %2838 = vmatmul.mubr.f32.gmra.mrb[128].mxu1 %v511_v33  ;;  %v893_v41 = vpop.f32.mrb[23].mxu0  ;;  %v549_v32 = vld [vmem:[%s3300_s29 + $0x698] sm:$0xff]  ;;  %v544_v33 = vld [vmem:[%s3300_s29 + $0x670] sm:$0xff] }
 0x17b   : > { %1159 = vmatprep.mubr.f32.mxu0 %v534_v34  ;;  %2840 = vmatprep.mubr.f32.mxu1 %v514_v35 }
 0x17d   : > { %v3940_v48 = vpop.f32.mrb[24].mxu1  ;;  %v3942_v49 = vpop.f32.mrb[24].mxu0 }
 0x17e   : > { %1160 = vmatmul.mubr.f32.gmra.mrb[130].mxu0 %v533_v42  ;;  %v1438_v50 = vpop.f32.mrb[25].mxu1  ;;  %2841 = vmatmul.mubr.f32.gmra.mrb[130].mxu1 %v517_v43  ;;  %v898_v51 = vpop.f32.mrb[25].mxu0  ;;  %v548_v42 = vld [vmem:[%s3300_s29 + $0x690] sm:$0xff]  ;;  %v547_v43 = vld [vmem:[%s3300_s29 + $0x688] sm:$0xff] }
 0x17f   : > { %1164 = vmatprep.mubr.f32.mxu0 %v537_v46  ;;  %2843 = vmatprep.mubr.f32.mxu1 %v520_v47  ;;  %v552_v46 = vld [vmem:[%s3300_s29 + $0x6b0] sm:$0xff]  ;;  %v550_v47 = vld [vmem:[%s3300_s29 + $0x6a0] sm:$0xff] }
 0x181   : > { %v3948_v58 = vpop.f32.mrb[26].mxu1  ;;  %v3950_v59 = vpop.f32.mrb[26].mxu0 }
 0x182   : > { %1165 = vmatmul.mubr.f32.gmra.mrb[132].mxu0 %v536_v54  ;;  %v1443_v62 = vpop.f32.mrb[27].mxu1  ;;  %2844 = vmatmul.mubr.f32.gmra.mrb[132].mxu1 %v523_v55  ;;  %v903_v63 = vpop.f32.mrb[27].mxu0 }
 0x183   : > { %1169 = vmatprep.mubr.f32.mxu0 %v540_v56  ;;  %2846 = vmatprep.mubr.f32.mxu1 %v526_v57  ;;  %v551_v56 = vld [vmem:[%s3300_s29 + $0x6a8] sm:$0xff]  ;;  %v553_v57 = vld [vmem:[%s3300_s29 + $0x6b8] sm:$0xff]  ;;  %v556_v63 = vld [vmem:[%s3300_s29 + $0x6d0] sm:$0xff] }
 0x184   : > { %v555_v62 = vld [vmem:[%s3300_s29 + $0x6c8] sm:$0xff] }
 0x185   : > { %v3956_v8 = vpop.f32.mrb[28].mxu1  ;;  %v3958_v9 = vpop.f32.mrb[28].mxu0 }
 0x186   : > { %4702 = vst [vmem:[#allocation5_spill] sm:$0xff] %v3956_v8  ;;  %1170 = vmatmul.mubr.f32.gmra.mrb[134].mxu0 %v539_v1  ;;  %v1448_v10 = vpop.f32.mrb[29].mxu1  ;;  %2847 = vmatmul.mubr.f32.gmra.mrb[134].mxu1 %v529_v2  ;;  %v908_v11 = vpop.f32.mrb[29].mxu0  ;;  %v612_v8 = vld [vmem:[%s3300_s29 + $0x890] sm:$0xff] }
 0x187   : > { %1174 = vmatprep.mubr.f32.mxu0 %v543_v3  ;;  %2849 = vmatprep.mubr.f32.mxu1 %v532_v4  ;;  %v554_v10 = vld [vmem:[%s3300_s29 + $0x6c0] sm:$0xff]  ;;  %v559_v11 = vld [vmem:[%s3300_s29 + $0x6e8] sm:$0xff] }
 0x189   : > { %v3964_v22 = vpop.f32.mrb[30].mxu1  ;;  %v3966_v23 = vpop.f32.mrb[30].mxu0 }
 0x18a   : > { %4703 = vst [vmem:[#allocation6_spill] sm:$0xff] %v3964_v22  ;;  %1175 = vmatmul.mubr.f32.gmra.mrb[136].mxu0 %v542_v14  ;;  %v1453_v24 = vpop.f32.mrb[31].mxu1  ;;  %2850 = vmatmul.mubr.f32.gmra.mrb[136].mxu1 %v535_v15  ;;  %v913_v25 = vpop.f32.mrb[31].mxu0  ;;  %v558_v14 = vld [vmem:[%s3300_s29 + $0x6e0] sm:$0xff] }
 0x18b   : > { %1179 = vmatprep.mubr.f32.mxu0 %v546_v18  ;;  %2852 = vmatprep.mubr.f32.mxu1 %v538_v19  ;;  %v562_v15 = vld [vmem:[%s3300_s29 + $0x700] sm:$0xff] }
 0x18c   : > { %v670_v22 = vld [vmem:[%s3300_s29 + $0xa60] sm:$0xff] }
 0x18d   : > { %v3972_v34 = vpop.f32.mrb[32].mxu1  ;;  %v3974_v35 = vpop.f32.mrb[32].mxu0 }
 0x18e   : > { %4704 = vst [vmem:[#allocation7_spill] sm:$0xff] %v3972_v34  ;;  %1180 = vmatmul.mubr.f32.gmra.mrb[138].mxu0 %v545_v30  ;;  %v1458_v40 = vpop.f32.mrb[33].mxu1  ;;  %2853 = vmatmul.mubr.f32.gmra.mrb[138].mxu1 %v541_v31  ;;  %v918_v41 = vpop.f32.mrb[33].mxu0  ;;  %v557_v30 = vld [vmem:[%s3300_s29 + $0x6d8] sm:$0xff] }
 0x18f   : > { %1184 = vmatprep.mubr.f32.mxu0 %v549_v32  ;;  %2855 = vmatprep.mubr.f32.mxu1 %v544_v33  ;;  %v565_v31 = vld [vmem:[%s3300_s29 + $0x718] sm:$0xff]  ;;  %v568_v33 = vld [vmem:[%s3300_s29 + $0x730] sm:$0xff] }
 0x190   : > { %v561_v32 = vld [vmem:[%s3300_s29 + $0x6f8] sm:$0xff] }
 0x191   : > { %v3980_v50 = vpop.f32.mrb[34].mxu1  ;;  %v3982_v51 = vpop.f32.mrb[34].mxu0 }
 0x192   : > { %4705 = vst [vmem:[#allocation8_spill] sm:$0xff] %v3980_v50  ;;  %1185 = vmatmul.mubr.f32.gmra.mrb[140].mxu0 %v548_v42  ;;  %v1463_v54 = vpop.f32.mrb[35].mxu1  ;;  %2856 = vmatmul.mubr.f32.gmra.mrb[140].mxu1 %v547_v43  ;;  %v923_v55 = vpop.f32.mrb[35].mxu0  ;;  %v667_v50 = vld [vmem:[%s3300_s29 + $0xa48] sm:$0xff] }
 0x193   : > { %1189 = vmatprep.mubr.f32.mxu0 %v552_v46  ;;  %2858 = vmatprep.mubr.f32.mxu1 %v550_v47  ;;  %v560_v46 = vld [vmem:[%s3300_s29 + $0x6f0] sm:$0xff]  ;;  %v571_v47 = vld [vmem:[%s3300_s29 + $0x748] sm:$0xff]  ;;  %v574_v55 = vld [vmem:[%s3300_s29 + $0x760] sm:$0xff] }
 0x194   : > { %v564_v54 = vld [vmem:[%s3300_s29 + $0x710] sm:$0xff] }
 0x195   : > { %v3988_v1 = vpop.f32.mrb[36].mxu1  ;;  %v3990_v2 = vpop.f32.mrb[36].mxu0 }
 0x196   : > { %4706 = vst [vmem:[#allocation9_spill] sm:$0xff] %v3988_v1  ;;  %1190 = vmatmul.mubr.f32.gmra.mrb[142].mxu0 %v551_v56  ;;  %v1468_v3 = vpop.f32.mrb[37].mxu1  ;;  %2859 = vmatmul.mubr.f32.gmra.mrb[142].mxu1 %v553_v57  ;;  %v928_v4 = vpop.f32.mrb[37].mxu0 }
 0x197   : > { %1194 = vmatprep.mubr.f32.mxu0 %v555_v62  ;;  %2861 = vmatprep.mubr.f32.mxu1 %v556_v63  ;;  %v563_v3 = vld [vmem:[%s3300_s29 + $0x708] sm:$0xff]  ;;  %v577_v4 = vld [vmem:[%s3300_s29 + $0x778] sm:$0xff] }
 0x199   : > { %v3996_v18 = vpop.f32.mrb[38].mxu1  ;;  %v3998_v19 = vpop.f32.mrb[38].mxu0 }
 0x19a   : > { %4707 = vst [vmem:[#allocation10_spill] sm:$0xff] %v3996_v18  ;;  %1195 = vmatmul.mubr.f32.gmra.mrb[144].mxu0 %v554_v10  ;;  %v1473_v24 = vpop.f32.mrb[39].mxu1  ;;  %2862 = vmatmul.mubr.f32.gmra.mrb[144].mxu1 %v559_v11  ;;  %v933_v25 = vpop.f32.mrb[39].mxu0  ;;  %v567_v10 = vld [vmem:[%s3300_s29 + $0x728] sm:$0xff]  ;;  %v580_v11 = vld [vmem:[%s3300_s29 + $0x790] sm:$0xff] }
 0x19b   : > { %1199 = vmatprep.mubr.f32.mxu0 %v558_v14  ;;  %2864 = vmatprep.mubr.f32.mxu1 %v562_v15 }
 0x19d   : > { %v4004_v40 = vpop.f32.mrb[40].mxu1  ;;  %v4006_v41 = vpop.f32.mrb[40].mxu0 }
 0x19e   : > { %4708 = vst [vmem:[#allocation11_spill] sm:$0xff] %v4004_v40  ;;  %1200 = vmatmul.mubr.f32.gmra.mrb[146].mxu0 %v557_v30  ;;  %v1478_v42 = vpop.f32.mrb[41].mxu1  ;;  %2865 = vmatmul.mubr.f32.gmra.mrb[146].mxu1 %v565_v31  ;;  %v938_v43 = vpop.f32.mrb[41].mxu0  ;;  %v566_v30 = vld [vmem:[%s3300_s29 + $0x720] sm:$0xff]  ;;  %v583_v31 = vld [vmem:[%s3300_s29 + $0x7a8] sm:$0xff] }
 0x19f   : > { %1204 = vmatprep.mubr.f32.mxu0 %v561_v32  ;;  %2867 = vmatprep.mubr.f32.mxu1 %v568_v33  ;;  %v570_v32 = vld [vmem:[%s3300_s29 + $0x740] sm:$0xff] }
 0x1a0   : > { %v586_v33 = vld [vmem:[%s3300_s29 + $0x7c0] sm:$0xff] }
 0x1a1   : > { %v4012_v56 = vpop.f32.mrb[42].mxu1  ;;  %v4014_v57 = vpop.f32.mrb[42].mxu0 }
 0x1a2   : > { %4709 = vst [vmem:[#allocation12_spill] sm:$0xff] %v4012_v56  ;;  %1205 = vmatmul.mubr.f32.gmra.mrb[148].mxu0 %v560_v46  ;;  %v1483_v62 = vpop.f32.mrb[43].mxu1  ;;  %2868 = vmatmul.mubr.f32.gmra.mrb[148].mxu1 %v571_v47  ;;  %v943_v63 = vpop.f32.mrb[43].mxu0 }
 0x1a3   : > { %1209 = vmatprep.mubr.f32.mxu0 %v564_v54  ;;  %2870 = vmatprep.mubr.f32.mxu1 %v574_v55  ;;  %v569_v54 = vld [vmem:[%s3300_s29 + $0x738] sm:$0xff]  ;;  %v592_v63 = vld [vmem:[%s3300_s29 + $0x7f0] sm:$0xff] }
 0x1a4   : > { %v589_v55 = vld [vmem:[%s3300_s29 + $0x7d8] sm:$0xff] }
 0x1a5   : > { %v4020_v14 = vpop.f32.mrb[44].mxu1  ;;  %v4022_v15 = vpop.f32.mrb[44].mxu0  ;;  %v573_v62 = vld [vmem:[%s3300_s29 + $0x758] sm:$0xff] }
 0x1a6   : > { %4710 = vst [vmem:[#allocation13_spill] sm:$0xff] %v4020_v14  ;;  %1210 = vmatmul.mubr.f32.gmra.mrb[150].mxu0 %v563_v3  ;;  %v1488_v24 = vpop.f32.mrb[45].mxu1  ;;  %2871 = vmatmul.mubr.f32.gmra.mrb[150].mxu1 %v577_v4  ;;  %v948_v25 = vpop.f32.mrb[45].mxu0 }
 0x1a7   : > { %1214 = vmatprep.mubr.f32.mxu0 %v567_v10  ;;  %2873 = vmatprep.mubr.f32.mxu1 %v580_v11  ;;  %v572_v24 = vld [vmem:[%s3300_s29 + $0x750] sm:$0xff]  ;;  %v595_v25 = vld [vmem:[%s3300_s29 + $0x808] sm:$0xff] }
 0x1a9   : > { %v4028_v42 = vpop.f32.mrb[46].mxu1  ;;  %v4030_v43 = vpop.f32.mrb[46].mxu0 }
 0x1aa   : > { %4711 = vst [vmem:[#allocation14_spill] sm:$0xff] %v4028_v42  ;;  %1215 = vmatmul.mubr.f32.gmra.mrb[152].mxu0 %v566_v30  ;;  %v1493_v46 = vpop.f32.mrb[47].mxu1  ;;  %2874 = vmatmul.mubr.f32.gmra.mrb[152].mxu1 %v583_v31  ;;  %v953_v47 = vpop.f32.mrb[47].mxu0  ;;  %v576_v30 = vld [vmem:[%s3300_s29 + $0x770] sm:$0xff]  ;;  %v598_v31 = vld [vmem:[%s3300_s29 + $0x820] sm:$0xff] }
 0x1ab   : > { %1219 = vmatprep.mubr.f32.mxu0 %v570_v32  ;;  %2876 = vmatprep.mubr.f32.mxu1 %v586_v33 }
 0x1ad   : > { %v4036_v3 = vpop.f32.mrb[48].mxu1  ;;  %v4038_v4 = vpop.f32.mrb[48].mxu0 }
 0x1ae   : > { %4712 = vst [vmem:[#allocation15_spill] sm:$0xff] %v4036_v3  ;;  %1220 = vmatmul.mubr.f32.gmra.mrb[154].mxu0 %v569_v54  ;;  %v1498_v10 = vpop.f32.mrb[49].mxu1  ;;  %2877 = vmatmul.mubr.f32.gmra.mrb[154].mxu1 %v589_v55  ;;  %v958_v11 = vpop.f32.mrb[49].mxu0  ;;  %v575_v54 = vld [vmem:[%s3300_s29 + $0x768] sm:$0xff]  ;;  %v601_v55 = vld [vmem:[%s3300_s29 + $0x838] sm:$0xff] }
 0x1af   : > { %1224 = vmatprep.mubr.f32.mxu0 %v573_v62  ;;  %2879 = vmatprep.mubr.f32.mxu1 %v592_v63  ;;  %v579_v62 = vld [vmem:[%s3300_s29 + $0x788] sm:$0xff]  ;;  %v604_v63 = vld [vmem:[%s3300_s29 + $0x850] sm:$0xff] }
 0x1b1   : > { %v4044_v32 = vpop.f32.mrb[50].mxu1  ;;  %v4046_v33 = vpop.f32.mrb[50].mxu0 }
 0x1b2   : > { %4713 = vst [vmem:[#allocation16_spill] sm:$0xff] %v4044_v32  ;;  %1225 = vmatmul.mubr.f32.gmra.mrb[156].mxu0 %v572_v24  ;;  %v1503_v46 = vpop.f32.mrb[51].mxu1  ;;  %2880 = vmatmul.mubr.f32.gmra.mrb[156].mxu1 %v595_v25  ;;  %v963_v47 = vpop.f32.mrb[51].mxu0  ;;  %v578_v25 = vld [vmem:[%s3300_s29 + $0x780] sm:$0xff] }
 0x1b3   : > { %1229 = vmatprep.mubr.f32.mxu0 %v576_v30  ;;  %2882 = vmatprep.mubr.f32.mxu1 %v598_v31  ;;  %v607_v30 = vld [vmem:[%s3300_s29 + $0x868] sm:$0xff]  ;;  %v582_v31 = vld [vmem:[%s3300_s29 + $0x7a0] sm:$0xff] }
 0x1b4   : > { %v610_v46 = vld [vmem:[%s3300_s29 + $0x880] sm:$0xff] }
 0x1b5   : > { %v4052_v10 = vpop.f32.mrb[52].mxu1  ;;  %v4054_v11 = vpop.f32.mrb[52].mxu0 }
 0x1b6   : > { %4714 = vst [vmem:[#allocation17_spill] sm:$0xff] %v4052_v10  ;;  %1230 = vmatmul.mubr.f32.gmra.mrb[158].mxu0 %v575_v54  ;;  %v1508_v3 = vpop.f32.mrb[53].mxu1  ;;  %2883 = vmatmul.mubr.f32.gmra.mrb[158].mxu1 %v601_v55  ;;  %v968_v24 = vpop.f32.mrb[53].mxu0  ;;  %v581_v54 = vld [vmem:[%s3300_s29 + $0x798] sm:$0xff] }
 0x1b7   : > { %1234 = vmatprep.mubr.f32.mxu0 %v579_v62  ;;  %2885 = vmatprep.mubr.f32.mxu1 %v604_v63  ;;  %v613_v55 = vld [vmem:[%s3300_s29 + $0x898] sm:$0xff]  ;;  %v616_v63 = vld [vmem:[%s3300_s29 + $0x8b0] sm:$0xff] }
 0x1b8   : > { %v585_v62 = vld [vmem:[%s3300_s29 + $0x7b8] sm:$0xff] }
 0x1b9   : > { %v4060_v47 = vpop.f32.mrb[54].mxu1  ;;  %v4062_v32 = vpop.f32.mrb[54].mxu0 }
 0x1ba   : > { %4715 = vst [vmem:[#allocation18_spill] sm:$0xff] %v4060_v47  ;;  %1235 = vmatmul.mubr.f32.gmra.mrb[160].mxu0 %v578_v25  ;;  %v1513_v10 = vpop.f32.mrb[55].mxu1  ;;  %2886 = vmatmul.mubr.f32.gmra.mrb[160].mxu1 %v607_v30  ;;  %v973_v3 = vpop.f32.mrb[55].mxu0  ;;  %v584_v25 = vld [vmem:[%s3300_s29 + $0x7b0] sm:$0xff]  ;;  %v619_v30 = vld [vmem:[%s3300_s29 + $0x8c8] sm:$0xff] }
 0x1bb   : > { %1239 = vmatprep.mubr.f32.mxu0 %v582_v31  ;;  %2888 = vmatprep.mubr.f32.mxu1 %v610_v46  ;;  %v588_v31 = vld [vmem:[%s3300_s29 + $0x7d0] sm:$0xff]  ;;  %v622_v46 = vld [vmem:[%s3300_s29 + $0x8e0] sm:$0xff] }
 0x1bd   : > { %v4068_v24 = vpop.f32.mrb[56].mxu1  ;;  %v4070_v14 = vpop.f32.mrb[56].mxu0 }
 0x1be   : > { %4716 = vst [vmem:[#allocation19_spill] sm:$0xff] %v4068_v24  ;;  %1240 = vmatmul.mubr.f32.gmra.mrb[162].mxu0 %v581_v54  ;;  %v1518_v47 = vpop.f32.mrb[57].mxu1  ;;  %2889 = vmatmul.mubr.f32.gmra.mrb[162].mxu1 %v613_v55  ;;  %v978_v10 = vpop.f32.mrb[57].mxu0  ;;  %v587_v54 = vld [vmem:[%s3300_s29 + $0x7c8] sm:$0xff]  ;;  %v625_v55 = vld [vmem:[%s3300_s29 + $0x8f8] sm:$0xff] }
 0x1bf   : > { %1244 = vmatprep.mubr.f32.mxu0 %v585_v62  ;;  %2891 = vmatprep.mubr.f32.mxu1 %v616_v63  ;;  %v591_v62 = vld [vmem:[%s3300_s29 + $0x7e8] sm:$0xff]  ;;  %v628_v63 = vld [vmem:[%s3300_s29 + $0x910] sm:$0xff] }
 0x1c1   : > { %v4076_v3 = vpop.f32.mrb[58].mxu1  ;;  %v4078_v42 = vpop.f32.mrb[58].mxu0 }
 0x1c2   : > { %4717 = vst [vmem:[#allocation20_spill] sm:$0xff] %v4076_v3  ;;  %1245 = vmatmul.mubr.f32.gmra.mrb[164].mxu0 %v584_v25  ;;  %v1523_v24 = vpop.f32.mrb[59].mxu1  ;;  %2892 = vmatmul.mubr.f32.gmra.mrb[164].mxu1 %v619_v30  ;;  %v983_v47 = vpop.f32.mrb[59].mxu0  ;;  %v590_v25 = vld [vmem:[%s3300_s29 + $0x7e0] sm:$0xff]  ;;  %v631_v30 = vld [vmem:[%s3300_s29 + $0x928] sm:$0xff] }
 0x1c3   : > { %1249 = vmatprep.mubr.f32.mxu0 %v588_v31  ;;  %2894 = vmatprep.mubr.f32.mxu1 %v622_v46  ;;  %v594_v31 = vld [vmem:[%s3300_s29 + $0x800] sm:$0xff] }
 0x1c4   : > { %v634_v46 = vld [vmem:[%s3300_s29 + $0x940] sm:$0xff] }
 0x1c5   : > { %v4084_v10 = vpop.f32.mrb[60].mxu1  ;;  %v4086_v40 = vpop.f32.mrb[60].mxu0 }
 0x1c6   : > { %4718 = vst [vmem:[#allocation21_spill] sm:$0xff] %v4084_v10  ;;  %1250 = vmatmul.mubr.f32.gmra.mrb[166].mxu0 %v587_v54  ;;  %v1528_v3 = vpop.f32.mrb[61].mxu1  ;;  %2895 = vmatmul.mubr.f32.gmra.mrb[166].mxu1 %v625_v55  ;;  %v988_v24 = vpop.f32.mrb[61].mxu0  ;;  %v593_v55 = vld [vmem:[%s3300_s29 + $0x7f8] sm:$0xff] }
 0x1c7   : > { %1254 = vmatprep.mubr.f32.mxu0 %v591_v62  ;;  %2897 = vmatprep.mubr.f32.mxu1 %v628_v63  ;;  %v637_v62 = vld [vmem:[%s3300_s29 + $0x958] sm:$0xff]  ;;  %v640_v24 = vld [vmem:[%s3300_s29 + $0x970] sm:$0xff] }
 0x1c8   : > { %v597_v63 = vld [vmem:[%s3300_s29 + $0x818] sm:$0xff] }
 0x1c9   : > { %v4092_v47 = vpop.f32.mrb[62].mxu1  ;;  %v4094_v56 = vpop.f32.mrb[62].mxu0 }
 0x1ca   : > { %4719 = vst [vmem:[#allocation22_spill] sm:$0xff] %v4092_v47  ;;  %1255 = vmatmul.mubr.f32.gmra.mrb[168].mxu0 %v590_v25  ;;  %v1533_v54 = vpop.f32.mrb[63].mxu1  ;;  %2898 = vmatmul.mubr.f32.gmra.mrb[168].mxu1 %v631_v30  ;;  %v993_v3 = vpop.f32.mrb[63].mxu0  ;;  %v596_v30 = vld [vmem:[%s3300_s29 + $0x810] sm:$0xff] }
 0x1cb   : > { %1259 = vmatprep.mubr.f32.mxu0 %v594_v31  ;;  %2900 = vmatprep.mubr.f32.mxu1 %v634_v46  ;;  %v643_v31 = vld [vmem:[%s3300_s29 + $0x988] sm:$0xff]  ;;  %v600_v46 = vld [vmem:[%s3300_s29 + $0x830] sm:$0xff]  ;;  %v646_v3 = vld [vmem:[%s3300_s29 + $0x9a0] sm:$0xff] }
 0x1cd   : > { %v4100_v10 = vpop.f32.mrb[64].mxu1  ;;  %v4102_v47 = vpop.f32.mrb[64].mxu0 }
 0x1ce   : > { %4720 = vst [vmem:[#allocation23_spill] sm:$0xff] %v4100_v10  ;;  %1260 = vmatmul.mubr.f32.gmra.mrb[170].mxu0 %v593_v55  ;;  %v1538_v25 = vpop.f32.mrb[65].mxu1  ;;  %2901 = vmatmul.mubr.f32.gmra.mrb[170].mxu1 %v637_v62  ;;  %v998_v54 = vpop.f32.mrb[65].mxu0 }
 0x1cf   : > { %1264 = vmatprep.mubr.f32.mxu0 %v597_v63  ;;  %2903 = vmatprep.mubr.f32.mxu1 %v640_v24  ;;  %v599_v63 = vld [vmem:[%s3300_s29 + $0x828] sm:$0xff]  ;;  %v649_v24 = vld [vmem:[%s3300_s29 + $0x9b8] sm:$0xff]  ;;  %v652_v54 = vld [vmem:[%s3300_s29 + $0x9d0] sm:$0xff] }
 0x1d0   : > { %v603_v25 = vld [vmem:[%s3300_s29 + $0x848] sm:$0xff] }
 0x1d1   : > { %v4110_v1 = vpop.f32.mrb[66].mxu1  ;;  %v4112_v10 = vpop.f32.mrb[66].mxu0 }
 0x1d2   : > { %4721 = vst [vmem:[#allocation24_spill] sm:$0xff] %v4110_v1  ;;  %1265 = vmatmul.mubr.f32.gmra.mrb[172].mxu0 %v596_v30  ;;  %v1543_v55 = vpop.f32.mrb[67].mxu1  ;;  %2904 = vmatmul.mubr.f32.gmra.mrb[172].mxu1 %v643_v31  ;;  %v1003_v62 = vpop.f32.mrb[67].mxu0 }
 0x1d3   : > { %1269 = vmatprep.mubr.f32.mxu0 %v600_v46  ;;  %2906 = vmatprep.mubr.f32.mxu1 %v646_v3  ;;  %v602_v46 = vld [vmem:[%s3300_s29 + $0x840] sm:$0xff]  ;;  %v655_v3 = vld [vmem:[%s3300_s29 + $0x9e8] sm:$0xff] }
 0x1d4   : > { %v606_v55 = vld [vmem:[%s3300_s29 + $0x860] sm:$0xff] }
 0x1d5   : > { %v4118_v18 = vpop.f32.mrb[68].mxu1  ;;  %v4120_v1 = vpop.f32.mrb[68].mxu0  ;;  %v658_v62 = vld [vmem:[%s3300_s29 + $0xa00] sm:$0xff] }
 0x1d6   : > { %4722 = vst [vmem:[#allocation25_spill] sm:$0xff] %v4118_v18  ;;  %1270 = vmatmul.mubr.f32.gmra.mrb[174].mxu0 %v599_v63  ;;  %v1548_v30 = vpop.f32.mrb[69].mxu1  ;;  %2907 = vmatmul.mubr.f32.gmra.mrb[174].mxu1 %v649_v24  ;;  %v1008_v31 = vpop.f32.mrb[69].mxu0 }
 0x1d7   : > { %1274 = vmatprep.mubr.f32.mxu0 %v603_v25  ;;  %2909 = vmatprep.mubr.f32.mxu1 %v652_v54  ;;  %v605_v25 = vld [vmem:[%s3300_s29 + $0x858] sm:$0xff]  ;;  %v664_v31 = vld [vmem:[%s3300_s29 + $0xa30] sm:$0xff] }
 0x1d8   : > { %v661_v54 = vld [vmem:[%s3300_s29 + $0xa18] sm:$0xff] }
 0x1d9   : > { %v4126_v34 = vpop.f32.mrb[70].mxu1  ;;  %v4128_v18 = vpop.f32.mrb[70].mxu0  ;;  %v609_v30 = vld [vmem:[%s3300_s29 + $0x878] sm:$0xff] }
 0x1da   : > { %4723 = vst [vmem:[#allocation26_spill] sm:$0xff] %v4126_v34  ;;  %1275 = vmatmul.mubr.f32.gmra.mrb[176].mxu0 %v602_v46  ;;  %v1553_v63 = vpop.f32.mrb[71].mxu1  ;;  %2910 = vmatmul.mubr.f32.gmra.mrb[176].mxu1 %v655_v3  ;;  %v1013_v24 = vpop.f32.mrb[71].mxu0  ;;  %v608_v34 = vld [vmem:[%s3300_s29 + $0x870] sm:$0xff] }
 0x1db   : > { %1279 = vmatprep.mubr.f32.mxu0 %v606_v55  ;;  %2912 = vmatprep.mubr.f32.mxu1 %v658_v62 }
 0x1dd   : > { %v2755_v46 = vpop.f32.mrb[72].mxu1  ;;  %v4139_v3 = vpop.f32.mrb[72].mxu0 }
 0x1de   : > { %v1627_v55 = vadd.f32 %v2755_v46, %v3854_v13  ;;  %1280 = vmatmul.mubr.f32.gmra.mrb[178].mxu0 %v605_v25  ;;  %v1621_v62 = vpop.f32.mrb[73].mxu1  ;;  %2913 = vmatmul.mubr.f32.gmra.mrb[178].mxu1 %v661_v54  ;;  %v1018_v63 = vpop.f32.mrb[73].mxu0  ;;  %v611_v46 = vld [vmem:[%s3300_s29 + $0x888] sm:$0xff] }
 0x1df   : > { %v1622_v24 = vadd.f32 %v1621_v62, %v3846_v0  ;;  %1284 = vmatprep.mubr.f32.mxu0 %v609_v30  ;;  %2915 = vmatprep.mubr.f32.mxu1 %v664_v31  ;;  %v615_v62 = vld [vmem:[%s3300_s29 + $0x8a8] sm:$0xff]  ;;  %v676_v63 = vld [vmem:[%s3300_s29 + $0xa90] sm:$0xff] }
 0x1e0   : > { %2342 = vst.msk [vmem:[%s4137_s19 + $0x8] sm:$0xff] %vm2340_vm0, %v1627_v55  ;;  %v673_v55 = vld [vmem:[%s3300_s29 + $0xa78] sm:$0xff] }
 0x1e1   : > { %2341 = vst.msk [vmem:[%s4137_s19] sm:$0xff] %vm2340_vm0, %v1622_v24  ;;  %v2758_v13 = vpop.f32.mrb[74].mxu1  ;;  %v4151_v25 = vpop.f32.mrb[74].mxu0  ;;  %v614_v24 = vld [vmem:[%s3300_s29 + $0x8a0] sm:$0xff] }
 0x1e2   : > { %v1637_v0 = vadd.f32 %v2758_v13, %v3870_v29  ;;  %1285 = vmatmul.mubr.f32.gmra.mrb[180].mxu0 %v608_v34  ;;  %v1631_v54 = vpop.f32.mrb[75].mxu1  ;;  %2916 = vmatmul.mubr.f32.gmra.mrb[180].mxu1 %v667_v50  ;;  %v1023_v30 = vpop.f32.mrb[75].mxu0  ;;  %v679_v13 = vld [vmem:[%s3300_s29 + $0xaa8] sm:$0xff] }
 0x1e3   : > { %v1632_v31 = vadd.f32 %v1631_v54, %v3862_v21  ;;  %1289 = vmatprep.mubr.f32.mxu0 %v612_v8  ;;  %2918 = vmatprep.mubr.f32.mxu1 %v670_v22  ;;  %v682_v54 = vld [vmem:[%s3300_s29 + $0xac0] sm:$0xff] }
 0x1e4   : > { %2344 = vst.msk [vmem:[%s4137_s19 + $0x18] sm:$0xff] %vm2340_vm0, %v1637_v0  ;;  %v618_v0 = vld [vmem:[%s3300_s29 + $0x8c0] sm:$0xff] }
 0x1e5   : > { %2343 = vst.msk [vmem:[%s4137_s19 + $0x10] sm:$0xff] %vm2340_vm0, %v1632_v31  ;;  %v2761_v29 = vpop.f32.mrb[76].mxu1  ;;  %v4163_v34 = vpop.f32.mrb[76].mxu0 }
 0x1e6   : > { %v1647_v21 = vadd.f32 %v2761_v29, %v3886_v45  ;;  %1290 = vmatmul.mubr.f32.gmra.mrb[182].mxu0 %v611_v46  ;;  %v1641_v8 = vpop.f32.mrb[77].mxu1  ;;  %2919 = vmatmul.mubr.f32.gmra.mrb[182].mxu1 %v673_v55  ;;  %v1028_v22 = vpop.f32.mrb[77].mxu0  ;;  %v621_v29 = vld [vmem:[%s3300_s29 + $0x8d8] sm:$0xff] }
 0x1e7   : > { %v1642_v50 = vadd.f32 %v1641_v8, %v3878_v37  ;;  %1294 = vmatprep.mubr.f32.mxu0 %v615_v62  ;;  %2921 = vmatprep.mubr.f32.mxu1 %v676_v63  ;;  %v617_v62 = vld [vmem:[%s3300_s29 + $0x8b8] sm:$0xff] }
 0x1e8   : > { %2346 = vst.msk [vmem:[%s4137_s19 + $0x28] sm:$0xff] %vm2340_vm0, %v1647_v21  ;;  %v685_v63 = vld [vmem:[%s3300_s29 + $0xad8] sm:$0xff]  ;;  %v688_v21 = vld [vmem:[%s3300_s29 + $0xaf0] sm:$0xff] }
 0x1e9   : > { %2345 = vst.msk [vmem:[%s4137_s19 + $0x20] sm:$0xff] %vm2340_vm0, %v1642_v50  ;;  %v2764_v45 = vpop.f32.mrb[78].mxu1  ;;  %v4175_v30 = vpop.f32.mrb[78].mxu0 }
 0x1ea   : > { %v1657_v37 = vadd.f32 %v2764_v45, %v3902_v61  ;;  %1295 = vmatmul.mubr.f32.gmra.mrb[184].mxu0 %v614_v24  ;;  %v1651_v31 = vpop.f32.mrb[79].mxu1  ;;  %2922 = vmatmul.mubr.f32.gmra.mrb[184].mxu1 %v679_v13  ;;  %v1033_v46 = vpop.f32.mrb[79].mxu0  ;;  %v620_v13 = vld [vmem:[%s3300_s29 + $0x8d0] sm:$0xff]  ;;  %v694_v45 = vld [vmem:[%s3300_s29 + $0xb20] sm:$0xff] }
 0x1eb   : > { %v1652_v55 = vadd.f32 %v1651_v31, %v3894_v53  ;;  %1299 = vmatprep.mubr.f32.mxu0 %v618_v0  ;;  %2924 = vmatprep.mubr.f32.mxu1 %v682_v54  ;;  %v691_v0 = vld [vmem:[%s3300_s29 + $0xb08] sm:$0xff]  ;;  %v624_v54 = vld [vmem:[%s3300_s29 + $0x8f0] sm:$0xff] }
 0x1ec   : > { %2348 = vst.msk [vmem:[%s4137_s19 + $0x38] sm:$0xff] %vm2340_vm0, %v1657_v37 }
 0x1ed   : > { %2347 = vst.msk [vmem:[%s4137_s19 + $0x30] sm:$0xff] %vm2340_vm0, %v1652_v55  ;;  %v2767_v61 = vpop.f32.mrb[80].mxu1  ;;  %v4187_v8 = vpop.f32.mrb[80].mxu0 }
 0x1ee   : > { %v1667_v53 = vadd.f32 %v2767_v61, %v3918_v17  ;;  %1300 = vmatmul.mubr.f32.gmra.mrb[186].mxu0 %v617_v62  ;;  %v1661_v22 = vpop.f32.mrb[81].mxu1  ;;  %2925 = vmatmul.mubr.f32.gmra.mrb[186].mxu1 %v685_v63  ;;  %v1038_v50 = vpop.f32.mrb[81].mxu0  ;;  %v623_v62 = vld [vmem:[%s3300_s29 + $0x8e8] sm:$0xff]  ;;  %v697_v63 = vld [vmem:[%s3300_s29 + $0xb38] sm:$0xff] }
 0x1ef   : > { %v1662_v24 = vadd.f32 %v1661_v22, %v3910_v7  ;;  %1304 = vmatprep.mubr.f32.mxu0 %v621_v29  ;;  %2927 = vmatprep.mubr.f32.mxu1 %v688_v21  ;;  %v627_v29 = vld [vmem:[%s3300_s29 + $0x908] sm:$0xff]  ;;  %v700_v21 = vld [vmem:[%s3300_s29 + $0xb50] sm:$0xff] }
 0x1f0   : > { %2350 = vst.msk [vmem:[%s4137_s19 + $0x48] sm:$0xff] %vm2340_vm0, %v1667_v53 }
 0x1f1   : > { %2349 = vst.msk [vmem:[%s4137_s19 + $0x40] sm:$0xff] %vm2340_vm0, %v1662_v24  ;;  %v2770_v17 = vpop.f32.mrb[82].mxu1  ;;  %v4199_v37 = vpop.f32.mrb[82].mxu0  ;;  %v626_v24 = vld [vmem:[%s3300_s29 + $0x900] sm:$0xff] }
 0x1f2   : > { %v1677_v7 = vadd.f32 %v2770_v17, %v3934_v39  ;;  %1305 = vmatmul.mubr.f32.gmra.mrb[188].mxu0 %v620_v13  ;;  %v1671_v31 = vpop.f32.mrb[83].mxu1  ;;  %2928 = vmatmul.mubr.f32.gmra.mrb[188].mxu1 %v691_v0  ;;  %v1043_v46 = vpop.f32.mrb[83].mxu0  ;;  %v703_v13 = vld [vmem:[%s3300_s29 + $0xb68] sm:$0xff]  ;;  %v630_v0 = vld [vmem:[%s3300_s29 + $0x920] sm:$0xff] }
 0x1f3   : > { %v1672_v55 = vadd.f32 %v1671_v31, %v3926_v27  ;;  %1309 = vmatprep.mubr.f32.mxu0 %v624_v54  ;;  %2930 = vmatprep.mubr.f32.mxu1 %v694_v45  ;;  %v706_v54 = vld [vmem:[%s3300_s29 + $0xb80] sm:$0xff]  ;;  %v629_v46 = vld [vmem:[%s3300_s29 + $0x918] sm:$0xff] }
 0x1f4   : > { %2352 = vst.msk [vmem:[%s4137_s19 + $0x58] sm:$0xff] %vm2340_vm0, %v1677_v7 }
 0x1f5   : > { %2351 = vst.msk [vmem:[%s4137_s19 + $0x50] sm:$0xff] %vm2340_vm0, %v1672_v55  ;;  %v2773_v39 = vpop.f32.mrb[84].mxu1  ;;  %v4211_v61 = vpop.f32.mrb[84].mxu0  ;;  %v709_v55 = vld [vmem:[%s3300_s29 + $0xb98] sm:$0xff] }
 0x1f6   : > { %v1687_v27 = vadd.f32 %v2773_v39, %v3950_v59  ;;  %1310 = vmatmul.mubr.f32.gmra.mrb[190].mxu0 %v623_v62  ;;  %v1681_v53 = vpop.f32.mrb[85].mxu1  ;;  %2931 = vmatmul.mubr.f32.gmra.mrb[190].mxu1 %v697_v63  ;;  %v1048_v22 = vpop.f32.mrb[85].mxu0  ;;  %v633_v62 = vld [vmem:[%s3300_s29 + $0x938] sm:$0xff]  ;;  %v712_v63 = vld [vmem:[%s3300_s29 + $0xbb0] sm:$0xff] }
 0x1f7   : > { %v1682_v50 = vadd.f32 %v1681_v53, %v3942_v49  ;;  %1314 = vmatprep.mubr.f32.mxu0 %v627_v29  ;;  %2933 = vmatprep.mubr.f32.mxu1 %v700_v21  ;;  %v632_v53 = vld [vmem:[%s3300_s29 + $0x930] sm:$0xff]  ;;  %v715_v22 = vld [vmem:[%s3300_s29 + $0xbc8] sm:$0xff] }
 0x1f8   : > { %2354 = vst.msk [vmem:[%s4137_s19 + $0x68] sm:$0xff] %vm2340_vm0, %v1687_v27 }
 0x1f9   : > { %2353 = vst.msk [vmem:[%s4137_s19 + $0x60] sm:$0xff] %vm2340_vm0, %v1682_v50  ;;  %v2776_v59 = vpop.f32.mrb[86].mxu1  ;;  %v4223_v45 = vpop.f32.mrb[86].mxu0  ;;  %v636_v50 = vld [vmem:[%s3300_s29 + $0x950] sm:$0xff] }
 0x1fa   : > { %v1697_v49 = vadd.f32 %v2776_v59, %v3966_v23  ;;  %1315 = vmatmul.mubr.f32.gmra.mrb[192].mxu0 %v626_v24  ;;  %v1691_v17 = vpop.f32.mrb[87].mxu1  ;;  %2934 = vmatmul.mubr.f32.gmra.mrb[192].mxu1 %v703_v13  ;;  %v1053_v7 = vpop.f32.mrb[87].mxu0  ;;  %v718_v24 = vld [vmem:[%s3300_s29 + $0xbe0] sm:$0xff] }
 0x1fb   : > { %v1692_v31 = vadd.f32 %v1691_v17, %v3958_v9  ;;  %1319 = vmatprep.mubr.f32.mxu0 %v630_v0  ;;  %2936 = vmatprep.mubr.f32.mxu1 %v706_v54  ;;  %v721_v17 = vld [vmem:[%s3300_s29 + $0xbf8] sm:$0xff]  ;;  %v639_v7 = vld [vmem:[%s3300_s29 + $0x968] sm:$0xff] }
 0x1fc   : > { %2356 = vst.msk [vmem:[%s4137_s19 + $0x78] sm:$0xff] %vm2340_vm0, %v1697_v49  ;;  %v635_v49 = vld [vmem:[%s3300_s29 + $0x948] sm:$0xff] }
 0x1fd   : > { %2355 = vst.msk [vmem:[%s4137_s19 + $0x70] sm:$0xff] %vm2340_vm0, %v1692_v31  ;;  %v2779_v23 = vpop.f32.mrb[88].mxu1  ;;  %v4235_v29 = vpop.f32.mrb[88].mxu0  ;;  %v724_v31 = vld [vmem:[%s3300_s29 + $0xc10] sm:$0xff] }
 0x1fe   : > { %v1707_v9 = vadd.f32 %v2779_v23, %v3982_v51  ;;  %1320 = vmatmul.mubr.f32.gmra.mrb[194].mxu0 %v629_v46  ;;  %v1701_v21 = vpop.f32.mrb[89].mxu1  ;;  %2937 = vmatmul.mubr.f32.gmra.mrb[194].mxu1 %v709_v55  ;;  %v1058_v39 = vpop.f32.mrb[89].mxu0  ;;  %v638_v23 = vld [vmem:[%s3300_s29 + $0x960] sm:$0xff] }
 0x1ff   : > { %v1702_v27 = vadd.f32 %v1701_v21, %v3974_v35  ;;  %1324 = vmatprep.mubr.f32.mxu0 %v633_v62  ;;  %2939 = vmatprep.mubr.f32.mxu1 %v712_v63  ;;  %v642_v21 = vld [vmem:[%s3300_s29 + $0x980] sm:$0xff] }
 0x200   : > { %2358 = vst.msk [vmem:[%s4137_s19 + $0x88] sm:$0xff] %vm2340_vm0, %v1707_v9  ;;  %v727_v9 = vld [vmem:[%s3300_s29 + $0xc28] sm:$0xff]  ;;  %v730_v39 = vld [vmem:[%s3300_s29 + $0xc40] sm:$0xff] }
 0x201   : > { %2357 = vst.msk [vmem:[%s4137_s19 + $0x80] sm:$0xff] %vm2340_vm0, %v1702_v27  ;;  %v2782_v51 = vpop.f32.mrb[90].mxu1  ;;  %v4247_v13 = vpop.f32.mrb[90].mxu0 }
 0x202   : > { %v1717_v35 = vadd.f32 %v2782_v51, %v3998_v19  ;;  %1325 = vmatmul.mubr.f32.gmra.mrb[196].mxu0 %v632_v53  ;;  %v1711_v0 = vpop.f32.mrb[91].mxu1  ;;  %2940 = vmatmul.mubr.f32.gmra.mrb[196].mxu1 %v715_v22  ;;  %v1063_v54 = vpop.f32.mrb[91].mxu0  ;;  %v733_v51 = vld [vmem:[%s3300_s29 + $0xc58] sm:$0xff] }
 0x203   : > { %v1712_v59 = vadd.f32 %v1711_v0, %v3990_v2  ;;  %1329 = vmatprep.mubr.f32.mxu0 %v636_v50  ;;  %2942 = vmatprep.mubr.f32.mxu1 %v718_v24  ;;  %v641_v24 = vld [vmem:[%s3300_s29 + $0x978] sm:$0xff]  ;;  %v736_v0 = vld [vmem:[%s3300_s29 + $0xc70] sm:$0xff] }
 0x204   : > { %2360 = vst.msk [vmem:[%s4137_s19 + $0x98] sm:$0xff] %vm2340_vm0, %v1717_v35  ;;  %v645_v35 = vld [vmem:[%s3300_s29 + $0x998] sm:$0xff] }
 0x205   : > { %2359 = vst.msk [vmem:[%s4137_s19 + $0x90] sm:$0xff] %vm2340_vm0, %v1712_v59  ;;  %v2785_v19 = vpop.f32.mrb[92].mxu1  ;;  %v4259_v46 = vpop.f32.mrb[92].mxu0 }
 0x206   : > { %v1727_v2 = vadd.f32 %v2785_v19, %v4014_v57  ;;  %1330 = vmatmul.mubr.f32.gmra.mrb[198].mxu0 %v635_v49  ;;  %v1721_v55 = vpop.f32.mrb[93].mxu1  ;;  %2943 = vmatmul.mubr.f32.gmra.mrb[198].mxu1 %v721_v17  ;;  %v1068_v62 = vpop.f32.mrb[93].mxu0  ;;  %v648_v19 = vld [vmem:[%s3300_s29 + $0x9b0] sm:$0xff] }
 0x207   : > { %v1722_v63 = vadd.f32 %v1721_v55, %v4006_v41  ;;  %1334 = vmatprep.mubr.f32.mxu0 %v639_v7  ;;  %2945 = vmatprep.mubr.f32.mxu1 %v724_v31  ;;  %v644_v7 = vld [vmem:[%s3300_s29 + $0x990] sm:$0xff]  ;;  %v739_v31 = vld [vmem:[%s3300_s29 + $0xc88] sm:$0xff] }
 0x208   : > { %2362 = vst.msk [vmem:[%s4137_s19 + $0xa8] sm:$0xff] %vm2340_vm0, %v1727_v2  ;;  %v742_v2 = vld [vmem:[%s3300_s29 + $0xca0] sm:$0xff] }
 0x209   : > { %2361 = vst.msk [vmem:[%s4137_s19 + $0xa0] sm:$0xff] %vm2340_vm0, %v1722_v63  ;;  %v2788_v57 = vpop.f32.mrb[94].mxu1  ;;  %v4271_v27 = vpop.f32.mrb[94].mxu0 }
 0x20a   : > { %v1737_v41 = vadd.f32 %v2788_v57, %v4030_v43  ;;  %1335 = vmatmul.mubr.f32.gmra.mrb[200].mxu0 %v638_v23  ;;  %v1731_v53 = vpop.f32.mrb[95].mxu1  ;;  %2946 = vmatmul.mubr.f32.gmra.mrb[200].mxu1 %v727_v9  ;;  %v1073_v22 = vpop.f32.mrb[95].mxu0  ;;  %v647_v9 = vld [vmem:[%s3300_s29 + $0x9a8] sm:$0xff]  ;;  %v748_v57 = vld [vmem:[%s3300_s29 + $0xcd0] sm:$0xff] }
 0x20b   : > { %v1732_v50 = vadd.f32 %v1731_v53, %v4022_v15  ;;  %1339 = vmatprep.mubr.f32.mxu0 %v642_v21  ;;  %2948 = vmatprep.mubr.f32.mxu1 %v730_v39  ;;  %v745_v21 = vld [vmem:[%s3300_s29 + $0xcb8] sm:$0xff]  ;;  %v651_v39 = vld [vmem:[%s3300_s29 + $0x9c8] sm:$0xff] }
 0x20c   : > { %2364 = vst.msk [vmem:[%s4137_s19 + $0xb8] sm:$0xff] %vm2340_vm0, %v1737_v41 }
 0x20d   : > { %2363 = vst.msk [vmem:[%s4137_s19 + $0xb0] sm:$0xff] %vm2340_vm0, %v1732_v50  ;;  %v2791_v43 = vpop.f32.mrb[96].mxu1  ;;  %v4283_v54 = vpop.f32.mrb[96].mxu0 }
 0x20e   : > { %v1747_v15 = vadd.f32 %v2791_v43, %v4046_v33  ;;  %1340 = vmatmul.mubr.f32.gmra.mrb[202].mxu0 %v641_v24  ;;  %v1741_v59 = vpop.f32.mrb[97].mxu1  ;;  %2949 = vmatmul.mubr.f32.gmra.mrb[202].mxu1 %v733_v51  ;;  %v1078_v49 = vpop.f32.mrb[97].mxu0  ;;  %v650_v24 = vld [vmem:[%s3300_s29 + $0x9c0] sm:$0xff]  ;;  %v751_v51 = vld [vmem:[%s3300_s29 + $0xce8] sm:$0xff] }
 0x20f   : > { %v1742_v17 = vadd.f32 %v1741_v59, %v4038_v4  ;;  %1344 = vmatprep.mubr.f32.mxu0 %v645_v35  ;;  %2951 = vmatprep.mubr.f32.mxu1 %v736_v0  ;;  %v654_v35 = vld [vmem:[%s3300_s29 + $0x9e0] sm:$0xff] }
 0x210   : > { %2366 = vst.msk [vmem:[%s4137_s19 + $0xc8] sm:$0xff] %vm2340_vm0, %v1747_v15  ;;  %v754_v0 = vld [vmem:[%s3300_s29 + $0xd00] sm:$0xff] }
 0x211   : > { %2365 = vst.msk [vmem:[%s4137_s19 + $0xc0] sm:$0xff] %vm2340_vm0, %v1742_v17  ;;  %v2794_v33 = vpop.f32.mrb[98].mxu1  ;;  %v4295_v55 = vpop.f32.mrb[98].mxu0  ;;  %v653_v17 = vld [vmem:[%s3300_s29 + $0x9d8] sm:$0xff] }
 0x212   : > { %v1757_v4 = vadd.f32 %v2794_v33, %v4062_v32  ;;  %1345 = vmatmul.mubr.f32.gmra.mrb[204].mxu0 %v644_v7  ;;  %v1751_v62 = vpop.f32.mrb[99].mxu1  ;;  %2952 = vmatmul.mubr.f32.gmra.mrb[204].mxu1 %v739_v31  ;;  %v1083_v63 = vpop.f32.mrb[99].mxu0  ;;  %v757_v7 = vld [vmem:[%s3300_s29 + $0xd18] sm:$0xff] }
 0x213   : > { %v1752_v23 = vadd.f32 %v1751_v62, %v4054_v11  ;;  %1349 = vmatprep.mubr.f32.mxu0 %v648_v19  ;;  %2954 = vmatprep.mubr.f32.mxu1 %v742_v2  ;;  %v657_v31 = vld [vmem:[%s3300_s29 + $0x9f8] sm:$0xff]  ;;  %v760_v19 = vld [vmem:[%s3300_s29 + $0xd30] sm:$0xff] }
 0x214   : > { %2368 = vst.msk [vmem:[%s4137_s19 + $0xd8] sm:$0xff] %vm2340_vm0, %v1757_v4  ;;  %v656_v63 = vld [vmem:[%s3300_s29 + $0x9f0] sm:$0xff] }
 0x215   : > { %2367 = vst.msk [vmem:[%s4137_s19 + $0xd0] sm:$0xff] %vm2340_vm0, %v1752_v23  ;;  %v2797_v32 = vpop.f32.mrb[100].mxu1  ;;  %v4307_v41 = vpop.f32.mrb[100].mxu0  ;;  %v763_v23 = vld [vmem:[%s3300_s29 + $0xd48] sm:$0xff] }
 0x216   : > { %v1767_v11 = vadd.f32 %v2797_v32, %v4078_v42  ;;  %1350 = vmatmul.mubr.f32.gmra.mrb[206].mxu0 %v647_v9  ;;  %v1761_v53 = vpop.f32.mrb[101].mxu1  ;;  %2955 = vmatmul.mubr.f32.gmra.mrb[206].mxu1 %v745_v21  ;;  %v1088_v22 = vpop.f32.mrb[101].mxu0  ;;  %v660_v9 = vld [vmem:[%s3300_s29 + $0xa10] sm:$0xff]  ;;  %v766_v21 = vld [vmem:[%s3300_s29 + $0xd60] sm:$0xff] }
 0x217   : > { %v1762_v50 = vadd.f32 %v1761_v53, %v4070_v14  ;;  %1354 = vmatprep.mubr.f32.mxu0 %v651_v39  ;;  %2957 = vmatprep.mubr.f32.mxu1 %v748_v57  ;;  %v659_v53 = vld [vmem:[%s3300_s29 + $0xa08] sm:$0xff]  ;;  %v769_v22 = vld [vmem:[%s3300_s29 + $0xd78] sm:$0xff] }
 0x218   : > { %2370 = vst.msk [vmem:[%s4137_s19 + $0xe8] sm:$0xff] %vm2340_vm0, %v1767_v11 }
 0x219   : > { %2369 = vst.msk [vmem:[%s4137_s19 + $0xe0] sm:$0xff] %vm2340_vm0, %v1762_v50  ;;  %v2800_v42 = vpop.f32.mrb[102].mxu1  ;;  %v4319_v43 = vpop.f32.mrb[102].mxu0 }
 0x21a   : > { %v1777_v14 = vadd.f32 %v2800_v42, %v4094_v56  ;;  %1355 = vmatmul.mubr.f32.gmra.mrb[208].mxu0 %v650_v24  ;;  %v1771_v15 = vpop.f32.mrb[103].mxu1  ;;  %2958 = vmatmul.mubr.f32.gmra.mrb[208].mxu1 %v751_v51  ;;  %v1093_v59 = vpop.f32.mrb[103].mxu0 }
 0x21b   : > { %v1772_v49 = vadd.f32 %v1771_v15, %v4086_v40  ;;  %1359 = vmatprep.mubr.f32.mxu0 %v654_v35  ;;  %2960 = vmatprep.mubr.f32.mxu1 %v754_v0 }
 0x21c   : > { %2372 = vst.msk [vmem:[%s4137_s19 + $0xf8] sm:$0xff] %vm2340_vm0, %v1777_v14 }
 0x21d   : > { %2371 = vst.msk [vmem:[%s4137_s19 + $0xf0] sm:$0xff] %vm2340_vm0, %v1772_v49  ;;  %v2803_v56 = vpop.f32.mrb[104].mxu1  ;;  %v4331_v2 = vpop.f32.mrb[104].mxu0 }
 0x21e   : > { %v1787_v40 = vadd.f32 %v2803_v56, %v4112_v10  ;;  %1360 = vmatmul.mubr.f32.gmra.mrb[210].mxu0 %v653_v17  ;;  %v1781_v33 = vpop.f32.mrb[105].mxu1  ;;  %2961 = vmatmul.mubr.f32.gmra.mrb[210].mxu1 %v757_v7  ;;  %v1098_v4 = vpop.f32.mrb[105].mxu0 }
 0x21f   : > { %v1782_v62 = vadd.f32 %v1781_v33, %v4102_v47  ;;  %1364 = vmatprep.mubr.f32.mxu0 %v657_v31  ;;  %2963 = vmatprep.mubr.f32.mxu1 %v760_v19 }
 0x220   : > { %2374 = vst.msk [vmem:[%s4137_s19 + $0x108] sm:$0xff] %vm2340_vm0, %v1787_v40 }
 0x221   : > { %2373 = vst.msk [vmem:[%s4137_s19 + $0x100] sm:$0xff] %vm2340_vm0, %v1782_v62  ;;  %v2806_v10 = vpop.f32.mrb[106].mxu1  ;;  %v4343_v39 = vpop.f32.mrb[106].mxu0 }
 0x222   : > { %v1797_v57 = vadd.f32 %v2806_v10, %v4128_v18  ;;  %1365 = vmatmul.mubr.f32.gmra.mrb[212].mxu0 %v656_v63  ;;  %v1791_v47 = vpop.f32.mrb[107].mxu1  ;;  %2964 = vmatmul.mubr.f32.gmra.mrb[212].mxu1 %v763_v23  ;;  %v1103_v32 = vpop.f32.mrb[107].mxu0 }
 0x223   : > { %v1792_v11 = vadd.f32 %v1791_v47, %v4120_v1  ;;  %1369 = vmatprep.mubr.f32.mxu0 %v660_v9  ;;  %2966 = vmatprep.mubr.f32.mxu1 %v766_v21 }
 0x224   : > { %2376 = vst.msk [vmem:[%s4137_s19 + $0x118] sm:$0xff] %vm2340_vm0, %v1797_v57 }
 0x225   : > { %2375 = vst.msk [vmem:[%s4137_s19 + $0x110] sm:$0xff] %vm2340_vm0, %v1792_v11  ;;  %v2809_v50 = vpop.f32.mrb[108].mxu1  ;;  %v4353_v24 = vpop.f32.mrb[108].mxu0 }
 0x226   : > { %v1807_v18 = vadd.f32 %v2809_v50, %v4151_v25  ;;  %1370 = vmatmul.mubr.f32.gmra.mrb[214].mxu0 %v659_v53  ;;  %v1801_v51 = vpop.f32.mrb[109].mxu1  ;;  %2967 = vmatmul.mubr.f32.gmra.mrb[214].mxu1 %v769_v22  ;;  %v1108_v1 = vpop.f32.mrb[109].mxu0 }
 0x227   : > { %v1802_v35 = vadd.f32 %v1801_v51, %v4139_v3 }
 0x228   : > { %2378 = vst.msk [vmem:[%s4137_s19 + $0x128] sm:$0xff] %vm2340_vm0, %v1807_v18 }
 0x229   : > { %2377 = vst.msk [vmem:[%s4137_s19 + $0x120] sm:$0xff] %vm2340_vm0, %v1802_v35  ;;  %v2812_v0 = vpop.f32.mrb[110].mxu1  ;;  %v4361_v42 = vpop.f32.mrb[110].mxu0 }
 0x22a   : > { %v1817_v14 = vadd.f32 %v2812_v0, %v4175_v30  ;;  %v1811_v15 = vpop.f32.mrb[111].mxu1  ;;  %v1113_v59 = vpop.f32.mrb[111].mxu0 }
 0x22b   : > { %v1812_v25 = vadd.f32 %v1811_v15, %v4163_v34 }
 0x22c   : > { %2380 = vst.msk [vmem:[%s4137_s19 + $0x138] sm:$0xff] %vm2340_vm0, %v1817_v14 }
 0x22d   : > { %2379 = vst.msk [vmem:[%s4137_s19 + $0x130] sm:$0xff] %vm2340_vm0, %v1812_v25  ;;  %v2815_v3 = vpop.f32.mrb[112].mxu1  ;;  %v4369_v49 = vpop.f32.mrb[112].mxu0 }
 0x22e   : > { %v1827_v17 = vadd.f32 %v2815_v3, %v4199_v37  ;;  %v1821_v7 = vpop.f32.mrb[113].mxu1  ;;  %v1118_v31 = vpop.f32.mrb[113].mxu0 }
 0x22f   : > { %v1822_v19 = vadd.f32 %v1821_v7, %v4187_v8 }
 0x230   : > { %2382 = vst.msk [vmem:[%s4137_s19 + $0x148] sm:$0xff] %vm2340_vm0, %v1827_v17 }
 0x231   : > { %2381 = vst.msk [vmem:[%s4137_s19 + $0x140] sm:$0xff] %vm2340_vm0, %v1822_v19  ;;  %v2818_v34 = vpop.f32.mrb[114].mxu1  ;;  %v1121_v30 = vpop.f32.mrb[114].mxu0 }
 0x232   : > { %v1837_v56 = vadd.f32 %v2818_v34, %v4223_v45  ;;  %v1831_v40 = vpop.f32.mrb[115].mxu1  ;;  %v1123_v33 = vpop.f32.mrb[115].mxu0 }
 0x233   : > { %v1832_v4 = vadd.f32 %v1831_v40, %v4211_v61 }
 0x234   : > { %2384 = vst.msk [vmem:[%s4137_s19 + $0x158] sm:$0xff] %vm2340_vm0, %v1837_v56 }
 0x235   : > { %2383 = vst.msk [vmem:[%s4137_s19 + $0x150] sm:$0xff] %vm2340_vm0, %v1832_v4  ;;  %v2821_v8 = vpop.f32.mrb[116].mxu1  ;;  %v1126_v37 = vpop.f32.mrb[116].mxu0 }
 0x236   : > { %v1847_v62 = vadd.f32 %v2821_v8, %v4247_v13  ;;  %v1841_v63 = vpop.f32.mrb[117].mxu1  ;;  %v1128_v23 = vpop.f32.mrb[117].mxu0 }
 0x237   : > { %v1842_v9 = vadd.f32 %v1841_v63, %v4235_v29 }
 0x238   : > { %2386 = vst.msk [vmem:[%s4137_s19 + $0x168] sm:$0xff] %vm2340_vm0, %v1847_v62 }
 0x239   : > { %2385 = vst.msk [vmem:[%s4137_s19 + $0x160] sm:$0xff] %vm2340_vm0, %v1842_v9  ;;  %v2824_v61 = vpop.f32.mrb[118].mxu1  ;;  %v1131_v45 = vpop.f32.mrb[118].mxu0 }
 0x23a   : > { %v1857_v21 = vadd.f32 %v2824_v61, %v4271_v27  ;;  %v1851_v10 = vpop.f32.mrb[119].mxu1  ;;  %v1133_v57 = vpop.f32.mrb[119].mxu0 }
 0x23b   : > { %v1852_v47 = vadd.f32 %v1851_v10, %v4259_v46 }
 0x23c   : > { %2388 = vst.msk [vmem:[%s4137_s19 + $0x178] sm:$0xff] %vm2340_vm0, %v1857_v21 }
 0x23d   : > { %2387 = vst.msk [vmem:[%s4137_s19 + $0x170] sm:$0xff] %vm2340_vm0, %v1852_v47  ;;  %v2827_v29 = vpop.f32.mrb[120].mxu1  ;;  %v1136_v13 = vpop.f32.mrb[120].mxu0 }
 0x23e   : > { %v1867_v32 = vadd.f32 %v2827_v29, %v4295_v55  ;;  %v1861_v11 = vpop.f32.mrb[121].mxu1  ;;  %v1138_v53 = vpop.f32.mrb[121].mxu0 }
 0x23f   : > { %v1862_v22 = vadd.f32 %v1861_v11, %v4283_v54 }
 0x240   : > { %2390 = vst.msk [vmem:[%s4137_s19 + $0x188] sm:$0xff] %vm2340_vm0, %v1867_v32 }
 0x241   : > { %2389 = vst.msk [vmem:[%s4137_s19 + $0x180] sm:$0xff] %vm2340_vm0, %v1862_v22  ;;  %v2830_v46 = vpop.f32.mrb[122].mxu1  ;;  %v1141_v27 = vpop.f32.mrb[122].mxu0 }
 0x242   : > { %v1877_v50 = vadd.f32 %v2830_v46, %v4319_v43  ;;  %v1871_v18 = vpop.f32.mrb[123].mxu1  ;;  %v1143_v51 = vpop.f32.mrb[123].mxu0 }
 0x243   : > { %v1872_v1 = vadd.f32 %v1871_v18, %v4307_v41 }
 0x244   : > { %2392 = vst.msk [vmem:[%s4137_s19 + $0x198] sm:$0xff] %vm2340_vm0, %v1877_v50 }
 0x245   : > { %2391 = vst.msk [vmem:[%s4137_s19 + $0x190] sm:$0xff] %vm2340_vm0, %v1872_v1  ;;  %v2833_v54 = vpop.f32.mrb[124].mxu1  ;;  %v1146_v55 = vpop.f32.mrb[124].mxu0 }
 0x246   : > { %v1887_v35 = vadd.f32 %v2833_v54, %v4343_v39  ;;  %v1881_v0 = vpop.f32.mrb[125].mxu1  ;;  %v1148_v14 = vpop.f32.mrb[125].mxu0 }
 0x247   : > { %v1882_v15 = vadd.f32 %v1881_v0, %v4331_v2 }
 0x248   : > { %2394 = vst.msk [vmem:[%s4137_s19 + $0x1a8] sm:$0xff] %vm2340_vm0, %v1887_v35 }
 0x249   : > { %2393 = vst.msk [vmem:[%s4137_s19 + $0x1a0] sm:$0xff] %vm2340_vm0, %v1882_v15  ;;  %v2836_v41 = vpop.f32.mrb[126].mxu1  ;;  %v1151_v43 = vpop.f32.mrb[126].mxu0 }
 0x24a   : > { %v1897_v59 = vadd.f32 %v2836_v41, %v4361_v42  ;;  %v1891_v25 = vpop.f32.mrb[127].mxu1  ;;  %v1153_v3 = vpop.f32.mrb[127].mxu0 }
 0x24b   : > { %v1892_v17 = vadd.f32 %v1891_v25, %v4353_v24 }
 0x24c   : > { %2396 = vst.msk [vmem:[%s4137_s19 + $0x1b8] sm:$0xff] %vm2340_vm0, %v1897_v59 }
 0x24d   : > { %2395 = vst.msk [vmem:[%s4137_s19 + $0x1b0] sm:$0xff] %vm2340_vm0, %v1892_v17  ;;  %v2839_v2 = vpop.f32.mrb[128].mxu1  ;;  %v1156_v39 = vpop.f32.mrb[128].mxu0 }
 0x24e   : > { %v1907_v7 = vadd.f32 %v2839_v2, %v1121_v30  ;;  %v1901_v31 = vpop.f32.mrb[129].mxu1  ;;  %v1158_v19 = vpop.f32.mrb[129].mxu0 }
 0x24f   : > { %v1902_v34 = vadd.f32 %v1901_v31, %v4369_v49 }
 0x250   : > { %2398 = vst.msk [vmem:[%s4137_s19 + $0x1c8] sm:$0xff] %vm2340_vm0, %v1907_v7 }
 0x251   : > { %2397 = vst.msk [vmem:[%s4137_s19 + $0x1c0] sm:$0xff] %vm2340_vm0, %v1902_v34  ;;  %v2842_v24 = vpop.f32.mrb[130].mxu1  ;;  %v1161_v42 = vpop.f32.mrb[130].mxu0 }
 0x252   : > { %v1917_v56 = vadd.f32 %v2842_v24, %v1131_v45  ;;  %v1911_v40 = vpop.f32.mrb[131].mxu1  ;;  %v1163_v33 = vpop.f32.mrb[131].mxu0 }
 0x253   : > { %v1912_v4 = vadd.f32 %v1911_v40, %v1126_v37 }
 0x254   : > { %2400 = vst.msk [vmem:[%s4137_s19 + $0x1d8] sm:$0xff] %vm2340_vm0, %v1917_v56 }
 0x255   : > { %2399 = vst.msk [vmem:[%s4137_s19 + $0x1d0] sm:$0xff] %vm2340_vm0, %v1912_v4  ;;  %v2845_v30 = vpop.f32.mrb[132].mxu1  ;;  %v1166_v49 = vpop.f32.mrb[132].mxu0 }
 0x256   : > { %v1927_v8 = vadd.f32 %v2845_v30, %v1141_v27  ;;  %v1921_v62 = vpop.f32.mrb[133].mxu1  ;;  %v1168_v63 = vpop.f32.mrb[133].mxu0 }
 0x257   : > { %v1922_v23 = vadd.f32 %v1921_v62, %v1136_v13 }
 0x258   : > { %2402 = vst.msk [vmem:[%s4137_s19 + $0x1e8] sm:$0xff] %vm2340_vm0, %v1927_v8 }
 0x259   : > { %2401 = vst.msk [vmem:[%s4137_s19 + $0x1e0] sm:$0xff] %vm2340_vm0, %v1922_v23  ;;  %v2848_v9 = vpop.f32.mrb[134].mxu1  ;;  %v1171_v37 = vpop.f32.mrb[134].mxu0 }
 0x25a   : > { %v1937_v61 = vadd.f32 %v2848_v9, %v1151_v43  ;;  %v1931_v45 = vpop.f32.mrb[135].mxu1  ;;  %v1173_v21 = vpop.f32.mrb[135].mxu0 }
 0x25b   : > { %v1932_v10 = vadd.f32 %v1931_v45, %v1146_v55 }
 0x25c   : > { %2404 = vst.msk [vmem:[%s4137_s19 + $0x1f8] sm:$0xff] %vm2340_vm0, %v1937_v61 }
 0x25d   : > { %2403 = vst.msk [vmem:[%s4137_s19 + $0x1f0] sm:$0xff] %vm2340_vm0, %v1932_v10  ;;  %v2851_v57 = vpop.f32.mrb[136].mxu1  ;;  %v1176_v47 = vpop.f32.mrb[136].mxu0 }
 0x25e   : > { %v1947_v29 = vadd.f32 %v2851_v57, %v1161_v42  ;;  %v1941_v13 = vpop.f32.mrb[137].mxu1  ;;  %v1178_v32 = vpop.f32.mrb[137].mxu0 }
 0x25f   : > { %v1942_v11 = vadd.f32 %v1941_v13, %v1156_v39 }
 0x260   : > { %2406 = vst.msk [vmem:[%s4137_s19 + $0x208] sm:$0xff] %vm2340_vm0, %v1947_v29 }
 0x261   : > { %2405 = vst.msk [vmem:[%s4137_s19 + $0x200] sm:$0xff] %vm2340_vm0, %v1942_v11  ;;  %v2854_v53 = vpop.f32.mrb[138].mxu1  ;;  %v1181_v22 = vpop.f32.mrb[138].mxu0 }
 0x262   : > { %v1957_v46 = vadd.f32 %v2854_v53, %v1171_v37  ;;  %v1951_v27 = vpop.f32.mrb[139].mxu1  ;;  %v1183_v50 = vpop.f32.mrb[139].mxu0 }
 0x263   : > { %v1952_v18 = vadd.f32 %v1951_v27, %v1166_v49 }
 0x264   : > { %2408 = vst.msk [vmem:[%s4137_s19 + $0x218] sm:$0xff] %vm2340_vm0, %v1957_v46 }
 0x265   : > { %2407 = vst.msk [vmem:[%s4137_s19 + $0x210] sm:$0xff] %vm2340_vm0, %v1952_v18  ;;  %v2857_v51 = vpop.f32.mrb[140].mxu1  ;;  %v1186_v1 = vpop.f32.mrb[140].mxu0 }
 0x266   : > { %v1967_v54 = vadd.f32 %v2857_v51, %v1181_v22  ;;  %v1961_v55 = vpop.f32.mrb[141].mxu1  ;;  %v1188_v35 = vpop.f32.mrb[141].mxu0 }
 0x267   : > { %v1962_v0 = vadd.f32 %v1961_v55, %v1176_v47 }
 0x268   : > { %2410 = vst.msk [vmem:[%s4137_s19 + $0x228] sm:$0xff] %vm2340_vm0, %v1967_v54 }
 0x269   : > { %2409 = vst.msk [vmem:[%s4137_s19 + $0x220] sm:$0xff] %vm2340_vm0, %v1962_v0  ;;  %v2860_v14 = vpop.f32.mrb[142].mxu1  ;;  %v1191_v15 = vpop.f32.mrb[142].mxu0 }
 0x26a   : > { %v1977_v41 = vadd.f32 %v2860_v14, %v1191_v15  ;;  %v1971_v43 = vpop.f32.mrb[143].mxu1  ;;  %v1193_v59 = vpop.f32.mrb[143].mxu0 }
 0x26b   : > { %v1972_v25 = vadd.f32 %v1971_v43, %v1186_v1 }
 0x26c   : > { %2412 = vst.msk [vmem:[%s4137_s19 + $0x238] sm:$0xff] %vm2340_vm0, %v1977_v41 }
 0x26d   : > { %2411 = vst.msk [vmem:[%s4137_s19 + $0x230] sm:$0xff] %vm2340_vm0, %v1972_v25  ;;  %v2863_v3 = vpop.f32.mrb[144].mxu1  ;;  %v1196_v17 = vpop.f32.mrb[144].mxu0 }
 0x26e   : > { %v1981_v2 = vpop.f32.mrb[145].mxu1  ;;  %v1198_v39 = vpop.f32.mrb[145].mxu0 }
 0x26f   : > { %v1982_v7 = vadd.f32 %v1981_v2, %v1196_v17 }
 0x271   : > { %2413 = vst.msk [vmem:[%s4137_s19 + $0x240] sm:$0xff] %vm2340_vm0, %v1982_v7  ;;  %v1201_v31 = vpop.f32.mrb[146].mxu0  ;;  %v2866_v19 = vpop.f32.mrb[146].mxu1 }
 0x272   : > { %v1987_v34 = vadd.f32 %v2863_v3, %v1201_v31  ;;  %v1991_v24 = vpop.f32.mrb[147].mxu1  ;;  %v1203_v42 = vpop.f32.mrb[147].mxu0 }
 0x274   : > { %2414 = vst.msk [vmem:[%s4137_s19 + $0x248] sm:$0xff] %vm2340_vm0, %v1987_v34 }
 0x275   : > { %v1206_v56 = vpop.f32.mrb[148].mxu0  ;;  %v2869_v40 = vpop.f32.mrb[148].mxu1 }
 0x276   : > { %v1992_v33 = vadd.f32 %v1991_v24, %v1206_v56  ;;  %v2001_v4 = vpop.f32.mrb[149].mxu1  ;;  %v1208_v30 = vpop.f32.mrb[149].mxu0 }
 0x278   : > { %2415 = vst.msk [vmem:[%s4137_s19 + $0x250] sm:$0xff] %vm2340_vm0, %v1992_v33 }
 0x279   : > { %v1211_v49 = vpop.f32.mrb[150].mxu0  ;;  %v2872_v8 = vpop.f32.mrb[150].mxu1 }
 0x27a   : > { %v1997_v62 = vadd.f32 %v2866_v19, %v1211_v49  ;;  %v2011_v63 = vpop.f32.mrb[151].mxu1  ;;  %v1213_v23 = vpop.f32.mrb[151].mxu0 }
 0x27c   : > { %2416 = vst.msk [vmem:[%s4137_s19 + $0x258] sm:$0xff] %vm2340_vm0, %v1997_v62 }
 0x27d   : > { %v1216_v9 = vpop.f32.mrb[152].mxu0  ;;  %v2875_v37 = vpop.f32.mrb[152].mxu1 }
 0x27e   : > { %v2002_v61 = vadd.f32 %v2001_v4, %v1216_v9  ;;  %v2021_v45 = vpop.f32.mrb[153].mxu1  ;;  %v1218_v21 = vpop.f32.mrb[153].mxu0 }
 0x280   : > { %2417 = vst.msk [vmem:[%s4137_s19 + $0x260] sm:$0xff] %vm2340_vm0, %v2002_v61 }
 0x281   : > { %v1221_v10 = vpop.f32.mrb[154].mxu0  ;;  %v2878_v57 = vpop.f32.mrb[154].mxu1 }
 0x282   : > { %v2007_v47 = vadd.f32 %v2869_v40, %v1221_v10  ;;  %v2031_v29 = vpop.f32.mrb[155].mxu1  ;;  %v1223_v13 = vpop.f32.mrb[155].mxu0 }
 0x284   : > { %2418 = vst.msk [vmem:[%s4137_s19 + $0x268] sm:$0xff] %vm2340_vm0, %v2007_v47 }
 0x285   : > { %v1226_v32 = vpop.f32.mrb[156].mxu0  ;;  %v2881_v11 = vpop.f32.mrb[156].mxu1 }
 0x286   : > { %v2012_v53 = vadd.f32 %v2011_v63, %v1226_v32  ;;  %v2041_v22 = vpop.f32.mrb[157].mxu1  ;;  %v1228_v46 = vpop.f32.mrb[157].mxu0 }
 0x288   : > { %2419 = vst.msk [vmem:[%s4137_s19 + $0x270] sm:$0xff] %vm2340_vm0, %v2012_v53 }
 0x289   : > { %v1231_v27 = vpop.f32.mrb[158].mxu0  ;;  %v2884_v50 = vpop.f32.mrb[158].mxu1 }
 0x28a   : > { %v2017_v18 = vadd.f32 %v2872_v8, %v1231_v27  ;;  %v2051_v51 = vpop.f32.mrb[159].mxu1  ;;  %v1233_v1 = vpop.f32.mrb[159].mxu0 }
 0x28c   : > { %2420 = vst.msk [vmem:[%s4137_s19 + $0x278] sm:$0xff] %vm2340_vm0, %v2017_v18 }
 0x28d   : > { %v1236_v54 = vpop.f32.mrb[160].mxu0  ;;  %v2887_v55 = vpop.f32.mrb[160].mxu1 }
 0x28e   : > { %v2022_v35 = vadd.f32 %v2021_v45, %v1236_v54  ;;  %v2061_v0 = vpop.f32.mrb[161].mxu1  ;;  %v1238_v14 = vpop.f32.mrb[161].mxu0 }
 0x290   : > { %2421 = vst.msk [vmem:[%s4137_s19 + $0x280] sm:$0xff] %vm2340_vm0, %v2022_v35 }
 0x291   : > { %v1241_v15 = vpop.f32.mrb[162].mxu0  ;;  %v4470_v41 = vpop.f32.mrb[162].mxu1 }
 0x292   : > { %v2027_v43 = vadd.f32 %v2875_v37, %v1241_v15  ;;  %v2071_v59 = vpop.f32.mrb[163].mxu1  ;;  %v1243_v25 = vpop.f32.mrb[163].mxu0 }
 0x294   : > { %2422 = vst.msk [vmem:[%s4137_s19 + $0x288] sm:$0xff] %vm2340_vm0, %v2027_v43 }
 0x295   : > { %v1246_v3 = vpop.f32.mrb[164].mxu0  ;;  %v4474_v17 = vpop.f32.mrb[164].mxu1 }
 0x296   : > { %v2032_v2 = vadd.f32 %v2031_v29, %v1246_v3  ;;  %v4476_v39 = vpop.f32.mrb[165].mxu1  ;;  %v1248_v7 = vpop.f32.mrb[165].mxu0 }
 0x298   : > { %2423 = vst.msk [vmem:[%s4137_s19 + $0x290] sm:$0xff] %vm2340_vm0, %v2032_v2 }
 0x299   : > { %v1251_v31 = vpop.f32.mrb[166].mxu0  ;;  %v4480_v19 = vpop.f32.mrb[166].mxu1 }
 0x29a   : > { %v2037_v34 = vadd.f32 %v2878_v57, %v1251_v31  ;;  %v4482_v24 = vpop.f32.mrb[167].mxu1  ;;  %v1253_v42 = vpop.f32.mrb[167].mxu0 }
 0x29c   : > { %2424 = vst.msk [vmem:[%s4137_s19 + $0x298] sm:$0xff] %vm2340_vm0, %v2037_v34 }
 0x29d   : > { %v1256_v56 = vpop.f32.mrb[168].mxu0  ;;  %v4486_v40 = vpop.f32.mrb[168].mxu1 }
 0x29e   : > { %v2042_v33 = vadd.f32 %v2041_v22, %v1256_v56  ;;  %v4488_v4 = vpop.f32.mrb[169].mxu1  ;;  %v1258_v30 = vpop.f32.mrb[169].mxu0 }
 0x2a0   : > { %2425 = vst.msk [vmem:[%s4137_s19 + $0x2a0] sm:$0xff] %vm2340_vm0, %v2042_v33 }
 0x2a1   : > { %v1261_v49 = vpop.f32.mrb[170].mxu0  ;;  %v4492_v8 = vpop.f32.mrb[170].mxu1 }
 0x2a2   : > { %v2047_v62 = vadd.f32 %v2881_v11, %v1261_v49  ;;  %v4494_v63 = vpop.f32.mrb[171].mxu1  ;;  %v1263_v23 = vpop.f32.mrb[171].mxu0 }
 0x2a4   : > { %2426 = vst.msk [vmem:[%s4137_s19 + $0x2a8] sm:$0xff] %vm2340_vm0, %v2047_v62 }
 0x2a5   : > { %v1266_v9 = vpop.f32.mrb[172].mxu0  ;;  %v4498_v37 = vpop.f32.mrb[172].mxu1 }
 0x2a6   : > { %v2052_v61 = vadd.f32 %v2051_v51, %v1266_v9  ;;  %v4500_v45 = vpop.f32.mrb[173].mxu1  ;;  %v1268_v21 = vpop.f32.mrb[173].mxu0 }
 0x2a8   : > { %2427 = vst.msk [vmem:[%s4137_s19 + $0x2b0] sm:$0xff] %vm2340_vm0, %v2052_v61 }
 0x2a9   : > { %v1271_v10 = vpop.f32.mrb[174].mxu0  ;;  %v4504_v57 = vpop.f32.mrb[174].mxu1 }
 0x2aa   : > { %v2057_v47 = vadd.f32 %v2884_v50, %v1271_v10  ;;  %v4506_v29 = vpop.f32.mrb[175].mxu1  ;;  %v1273_v13 = vpop.f32.mrb[175].mxu0 }
 0x2ac   : > { %2428 = vst.msk [vmem:[%s4137_s19 + $0x2b8] sm:$0xff] %vm2340_vm0, %v2057_v47 }
 0x2ad   : > { %v1276_v32 = vpop.f32.mrb[176].mxu0  ;;  %v4510_v11 = vpop.f32.mrb[176].mxu1 }
 0x2ae   : > { %v2062_v53 = vadd.f32 %v2061_v0, %v1276_v32  ;;  %v4512_v22 = vpop.f32.mrb[177].mxu1  ;;  %v1278_v46 = vpop.f32.mrb[177].mxu0 }
 0x2b0   : > { %2429 = vst.msk [vmem:[%s4137_s19 + $0x2c0] sm:$0xff] %vm2340_vm0, %v2062_v53 }
 0x2b1   : > { %v1281_v27 = vpop.f32.mrb[178].mxu0  ;;  %v4516_v18 = vpop.f32.mrb[178].mxu1 }
 0x2b2   : > { %v2067_v50 = vadd.f32 %v2887_v55, %v1281_v27  ;;  %v4518_v51 = vpop.f32.mrb[179].mxu1  ;;  %v1283_v1 = vpop.f32.mrb[179].mxu0 }
 0x2b4   : > { %2430 = vst.msk [vmem:[%s4137_s19 + $0x2c8] sm:$0xff] %vm2340_vm0, %v2067_v50 }
 0x2b5   : > { %v1286_v54 = vpop.f32.mrb[180].mxu0  ;;  %v2917_v35 = vpop.f32.mrb[180].mxu1 }
 0x2b6   : > { %v2072_v0 = vadd.f32 %v2071_v59, %v1286_v54  ;;  %v2167_v14 = vadd.f32 %v2917_v35, %v3852_v12  ;;  %v2161_v15 = vpop.f32.mrb[181].mxu1  ;;  %v1288_v43 = vpop.f32.mrb[181].mxu0 }
 0x2b7   : > { %v2162_v25 = vadd.f32 %v2161_v15, %v3844_v5  ;;  %v4725_v15 = vld [vmem:[#allocation5_spill] sm:$0xff] }
 0x2b8   : > { %2431 = vst.msk [vmem:[%s4137_s19 + $0x2d0] sm:$0xff] %vm2340_vm0, %v2072_v0  ;;  %2450 = vst.msk [vmem:[%s4137_s19 + $0x368] sm:$0xff] %vm2340_vm0, %v2167_v14 }
 0x2b9   : > { %2449 = vst.msk [vmem:[%s4137_s19 + $0x360] sm:$0xff] %vm2340_vm0, %v2162_v25  ;;  %v1291_v55 = vpop.f32.mrb[182].mxu0  ;;  %v2920_v3 = vpop.f32.mrb[182].mxu1 }
 0x2ba   : > { %v2077_v2 = vadd.f32 %v4470_v41, %v1291_v55  ;;  %v2177_v59 = vadd.f32 %v2920_v3, %v3868_v28  ;;  %v2171_v12 = vpop.f32.mrb[183].mxu1  ;;  %v1293_v7 = vpop.f32.mrb[183].mxu0 }
 0x2bb   : > { %v2172_v31 = vadd.f32 %v2171_v12, %v3860_v20  ;;  %v4727_v12 = vld [vmem:[#allocation7_spill] sm:$0xff] }
 0x2bc   : > { %2432 = vst.msk [vmem:[%s4137_s19 + $0x2d8] sm:$0xff] %vm2340_vm0, %v2077_v2  ;;  %2452 = vst.msk [vmem:[%s4137_s19 + $0x378] sm:$0xff] %vm2340_vm0, %v2177_v59 }
 0x2bd   : > { %2451 = vst.msk [vmem:[%s4137_s19 + $0x370] sm:$0xff] %vm2340_vm0, %v2172_v31  ;;  %v1296_v5 = vpop.f32.mrb[184].mxu0  ;;  %v2923_v34 = vpop.f32.mrb[184].mxu1 }
 0x2be   : > { %v2082_v42 = vadd.f32 %v4476_v39, %v1296_v5  ;;  %v2187_v41 = vadd.f32 %v2923_v34, %v3884_v44  ;;  %v2181_v28 = vpop.f32.mrb[185].mxu1  ;;  %v1298_v56 = vpop.f32.mrb[185].mxu0 }
 0x2bf   : > { %v2182_v33 = vadd.f32 %v2181_v28, %v3876_v36  ;;  %v4729_v56 = vld [vmem:[#allocation9_spill] sm:$0xff] }
 0x2c0   : > { %2433 = vst.msk [vmem:[%s4137_s19 + $0x2e0] sm:$0xff] %vm2340_vm0, %v2082_v42  ;;  %2454 = vst.msk [vmem:[%s4137_s19 + $0x388] sm:$0xff] %vm2340_vm0, %v2187_v41 }
 0x2c1   : > { %2453 = vst.msk [vmem:[%s4137_s19 + $0x380] sm:$0xff] %vm2340_vm0, %v2182_v33  ;;  %v1301_v20 = vpop.f32.mrb[186].mxu0  ;;  %v2926_v30 = vpop.f32.mrb[186].mxu1 }
 0x2c2   : > { %v2087_v49 = vadd.f32 %v4474_v17, %v1301_v20  ;;  %v2197_v39 = vadd.f32 %v2926_v30, %v3900_v60  ;;  %v2191_v44 = vpop.f32.mrb[187].mxu1  ;;  %v1303_v62 = vpop.f32.mrb[187].mxu0 }
 0x2c3   : > { %v2192_v23 = vadd.f32 %v2191_v44, %v3892_v52 }
 0x2c4   : > { %2434 = vst.msk [vmem:[%s4137_s19 + $0x2e8] sm:$0xff] %vm2340_vm0, %v2087_v49  ;;  %2456 = vst.msk [vmem:[%s4137_s19 + $0x398] sm:$0xff] %vm2340_vm0, %v2197_v39 }
 0x2c5   : > { %2455 = vst.msk [vmem:[%s4137_s19 + $0x390] sm:$0xff] %vm2340_vm0, %v2192_v23  ;;  %v1306_v36 = vpop.f32.mrb[188].mxu0  ;;  %v2929_v9 = vpop.f32.mrb[188].mxu1  ;;  %v4731_v23 = vld [vmem:[#allocation11_spill] sm:$0xff] }
 0x2c6   : > { %v2092_v61 = vadd.f32 %v4482_v24, %v1306_v36  ;;  %v2207_v17 = vadd.f32 %v2929_v9, %v3916_v16  ;;  %v2201_v60 = vpop.f32.mrb[189].mxu1  ;;  %v1308_v21 = vpop.f32.mrb[189].mxu0 }
 0x2c7   : > { %v2202_v10 = vadd.f32 %v2201_v60, %v3908_v6 }
 0x2c8   : > { %2435 = vst.msk [vmem:[%s4137_s19 + $0x2f0] sm:$0xff] %vm2340_vm0, %v2092_v61  ;;  %2458 = vst.msk [vmem:[%s4137_s19 + $0x3a8] sm:$0xff] %vm2340_vm0, %v2207_v17 }
 0x2c9   : > { %2457 = vst.msk [vmem:[%s4137_s19 + $0x3a0] sm:$0xff] %vm2340_vm0, %v2202_v10  ;;  %v1311_v52 = vpop.f32.mrb[190].mxu0  ;;  %v2932_v47 = vpop.f32.mrb[190].mxu1 }
 0x2ca   : > { %v2097_v13 = vadd.f32 %v4480_v19, %v1311_v52  ;;  %v2217_v24 = vadd.f32 %v2932_v47, %v3932_v38  ;;  %v2211_v16 = vpop.f32.mrb[191].mxu1  ;;  %v1313_v32 = vpop.f32.mrb[191].mxu0  ;;  %v4733_v52 = vld [vmem:[#allocation13_spill] sm:$0xff] }
 0x2cb   : > { %v2212_v53 = vadd.f32 %v2211_v16, %v3924_v26 }
 0x2cc   : > { %2436 = vst.msk [vmem:[%s4137_s19 + $0x2f8] sm:$0xff] %vm2340_vm0, %v2097_v13  ;;  %2460 = vst.msk [vmem:[%s4137_s19 + $0x3b8] sm:$0xff] %vm2340_vm0, %v2217_v24 }
 0x2cd   : > { %2459 = vst.msk [vmem:[%s4137_s19 + $0x3b0] sm:$0xff] %vm2340_vm0, %v2212_v53  ;;  %v1316_v6 = vpop.f32.mrb[192].mxu0  ;;  %v2935_v46 = vpop.f32.mrb[192].mxu1 }
 0x2ce   : > { %v2102_v27 = vadd.f32 %v4488_v4, %v1316_v6  ;;  %v2227_v19 = vadd.f32 %v2935_v46, %v3948_v58  ;;  %v2221_v38 = vpop.f32.mrb[193].mxu1  ;;  %v1318_v50 = vpop.f32.mrb[193].mxu0  ;;  %v4724_v4 = vld [vmem:[#allocation6_spill] sm:$0xff]  ;;  %v4735_v46 = vld [vmem:[#allocation15_spill] sm:$0xff] }
 0x2cf   : > { %v2222_v1 = vadd.f32 %v2221_v38, %v3940_v48 }
 0x2d0   : > { %2437 = vst.msk [vmem:[%s4137_s19 + $0x300] sm:$0xff] %vm2340_vm0, %v2102_v27  ;;  %2462 = vst.msk [vmem:[%s4137_s19 + $0x3c8] sm:$0xff] %vm2340_vm0, %v2227_v19 }
 0x2d1   : > { %2461 = vst.msk [vmem:[%s4137_s19 + $0x3c0] sm:$0xff] %vm2340_vm0, %v2222_v1  ;;  %v1321_v26 = vpop.f32.mrb[194].mxu0  ;;  %v2938_v54 = vpop.f32.mrb[194].mxu1 }
 0x2d2   : > { %v2107_v35 = vadd.f32 %v4486_v40, %v1321_v26  ;;  %v2237_v0 = vadd.f32 %v2938_v54, %v4724_v4  ;;  %v2231_v58 = vpop.f32.mrb[195].mxu1  ;;  %v1323_v14 = vpop.f32.mrb[195].mxu0  ;;  %v4726_v40 = vld [vmem:[#allocation8_spill] sm:$0xff] }
 0x2d3   : > { %v2232_v43 = vadd.f32 %v2231_v58, %v4725_v15 }
 0x2d4   : > { %2438 = vst.msk [vmem:[%s4137_s19 + $0x308] sm:$0xff] %vm2340_vm0, %v2107_v35  ;;  %2464 = vst.msk [vmem:[%s4137_s19 + $0x3d8] sm:$0xff] %vm2340_vm0, %v2237_v0  ;;  %v4737_v35 = vld [vmem:[#allocation17_spill] sm:$0xff] }
 0x2d5   : > { %2463 = vst.msk [vmem:[%s4137_s19 + $0x3d0] sm:$0xff] %vm2340_vm0, %v2232_v43  ;;  %v1326_v48 = vpop.f32.mrb[196].mxu0  ;;  %v2941_v25 = vpop.f32.mrb[196].mxu1 }
 0x2d6   : > { %v2112_v55 = vadd.f32 %v4494_v63, %v1326_v48  ;;  %v2247_v3 = vadd.f32 %v2941_v25, %v4726_v40  ;;  %v2241_v2 = vpop.f32.mrb[197].mxu1  ;;  %v1328_v59 = vpop.f32.mrb[197].mxu0  ;;  %v4728_v63 = vld [vmem:[#allocation10_spill] sm:$0xff]  ;;  %v4739_v25 = vld [vmem:[#allocation19_spill] sm:$0xff] }
 0x2d7   : > { %v2242_v7 = vadd.f32 %v2241_v2, %v4727_v12 }
 0x2d8   : > { %2439 = vst.msk [vmem:[%s4137_s19 + $0x310] sm:$0xff] %vm2340_vm0, %v2112_v55  ;;  %2466 = vst.msk [vmem:[%s4137_s19 + $0x3e8] sm:$0xff] %vm2340_vm0, %v2247_v3 }
 0x2d9   : > { %2465 = vst.msk [vmem:[%s4137_s19 + $0x3e0] sm:$0xff] %vm2340_vm0, %v2242_v7  ;;  %v1331_v31 = vpop.f32.mrb[198].mxu0  ;;  %v2944_v5 = vpop.f32.mrb[198].mxu1 }
 0x2da   : > { %v2117_v34 = vadd.f32 %v4492_v8, %v1331_v31  ;;  %v2257_v42 = vadd.f32 %v2944_v5, %v4728_v63  ;;  %v2251_v41 = vpop.f32.mrb[199].mxu1  ;;  %v1333_v28 = vpop.f32.mrb[199].mxu0  ;;  %v4730_v8 = vld [vmem:[#allocation12_spill] sm:$0xff]  ;;  %v4741_v31 = vld [vmem:[#allocation21_spill] sm:$0xff] }
 0x2db   : > { %v2252_v33 = vadd.f32 %v2251_v41, %v4729_v56 }
 0x2dc   : > { %2440 = vst.msk [vmem:[%s4137_s19 + $0x318] sm:$0xff] %vm2340_vm0, %v2117_v34  ;;  %2468 = vst.msk [vmem:[%s4137_s19 + $0x3f8] sm:$0xff] %vm2340_vm0, %v2257_v42 }
 0x2dd   : > { %2467 = vst.msk [vmem:[%s4137_s19 + $0x3f0] sm:$0xff] %vm2340_vm0, %v2252_v33  ;;  %v1336_v20 = vpop.f32.mrb[200].mxu0  ;;  %v2947_v30 = vpop.f32.mrb[200].mxu1  ;;  %v4743_v33 = vld [vmem:[#allocation23_spill] sm:$0xff] }
 0x2de   : > { %v2122_v49 = vadd.f32 %v4500_v45, %v1336_v20  ;;  %v2267_v39 = vadd.f32 %v2947_v30, %v4730_v8  ;;  %v2261_v44 = vpop.f32.mrb[201].mxu1  ;;  %v1338_v62 = vpop.f32.mrb[201].mxu0  ;;  %v4732_v45 = vld [vmem:[#allocation14_spill] sm:$0xff] }
 0x2df   : > { %v2262_v36 = vadd.f32 %v2261_v44, %v4731_v23  ;;  %v4745_v23 = vld [vmem:[#allocation25_spill] sm:$0xff] }
 0x2e0   : > { %2441 = vst.msk [vmem:[%s4137_s19 + $0x320] sm:$0xff] %vm2340_vm0, %v2122_v49  ;;  %2470 = vst.msk [vmem:[%s4137_s19 + $0x408] sm:$0xff] %vm2340_vm0, %v2267_v39  ;;  %v4744_v39 = vld [vmem:[#allocation26_spill] sm:$0xff] }
 0x2e1   : > { %2469 = vst.msk [vmem:[%s4137_s19 + $0x400] sm:$0xff] %vm2340_vm0, %v2262_v36  ;;  %v1341_v9 = vpop.f32.mrb[202].mxu0  ;;  %v2950_v61 = vpop.f32.mrb[202].mxu1 }
 0x2e2   : > { %v2127_v17 = vadd.f32 %v4498_v37, %v1341_v9  ;;  %v2277_v60 = vadd.f32 %v2950_v61, %v4732_v45  ;;  %v2271_v21 = vpop.f32.mrb[203].mxu1  ;;  %v1343_v10 = vpop.f32.mrb[203].mxu0  ;;  %v4734_v37 = vld [vmem:[#allocation16_spill] sm:$0xff] }
 0x2e3   : > { %v2272_v47 = vadd.f32 %v2271_v21, %v4733_v52 }
 0x2e4   : > { %2442 = vst.msk [vmem:[%s4137_s19 + $0x328] sm:$0xff] %vm2340_vm0, %v2127_v17  ;;  %2472 = vst.msk [vmem:[%s4137_s19 + $0x418] sm:$0xff] %vm2340_vm0, %v2277_v60 }
 0x2e5   : > { %2471 = vst.msk [vmem:[%s4137_s19 + $0x410] sm:$0xff] %vm2340_vm0, %v2272_v47  ;;  %v1346_v13 = vpop.f32.mrb[204].mxu0  ;;  %v2953_v24 = vpop.f32.mrb[204].mxu1 }
 0x2e6   : > { %v2132_v16 = vadd.f32 %v4506_v29, %v1346_v13  ;;  %v2287_v32 = vadd.f32 %v2953_v24, %v4734_v37  ;;  %v2281_v53 = vpop.f32.mrb[205].mxu1  ;;  %v1348_v6 = vpop.f32.mrb[205].mxu0  ;;  %v4736_v29 = vld [vmem:[#allocation18_spill] sm:$0xff] }
 0x2e7   : > { %v2282_v27 = vadd.f32 %v2281_v53, %v4735_v46 }
 0x2e8   : > { %2443 = vst.msk [vmem:[%s4137_s19 + $0x330] sm:$0xff] %vm2340_vm0, %v2132_v16  ;;  %2474 = vst.msk [vmem:[%s4137_s19 + $0x428] sm:$0xff] %vm2340_vm0, %v2287_v32 }
 0x2e9   : > { %2473 = vst.msk [vmem:[%s4137_s19 + $0x420] sm:$0xff] %vm2340_vm0, %v2282_v27  ;;  %v1351_v19 = vpop.f32.mrb[206].mxu0  ;;  %v2956_v38 = vpop.f32.mrb[206].mxu1 }
 0x2ea   : > { %v2137_v50 = vadd.f32 %v4504_v57, %v1351_v19  ;;  %v2297_v1 = vadd.f32 %v2956_v38, %v4736_v29  ;;  %v2291_v26 = vpop.f32.mrb[207].mxu1  ;;  %v1353_v54 = vpop.f32.mrb[207].mxu0  ;;  %v4738_v57 = vld [vmem:[#allocation20_spill] sm:$0xff] }
 0x2eb   : > { %v2292_v4 = vadd.f32 %v2291_v26, %v4737_v35 }
 0x2ec   : > { %2444 = vst.msk [vmem:[%s4137_s19 + $0x338] sm:$0xff] %vm2340_vm0, %v2137_v50  ;;  %2476 = vst.msk [vmem:[%s4137_s19 + $0x438] sm:$0xff] %vm2340_vm0, %v2297_v1 }
 0x2ed   : > { %2475 = vst.msk [vmem:[%s4137_s19 + $0x430] sm:$0xff] %vm2340_vm0, %v2292_v4  ;;  %v1356_v0 = vpop.f32.mrb[208].mxu0  ;;  %v2959_v58 = vpop.f32.mrb[208].mxu1 }
 0x2ee   : > { %v2142_v14 = vadd.f32 %v4512_v22, %v1356_v0  ;;  %v2307_v15 = vadd.f32 %v2959_v58, %v4738_v57  ;;  %v2301_v43 = vpop.f32.mrb[209].mxu1  ;;  %v1358_v48 = vpop.f32.mrb[209].mxu0  ;;  %v4740_v22 = vld [vmem:[#allocation22_spill] sm:$0xff] }
 0x2ef   : > { %v2302_v55 = vadd.f32 %v2301_v43, %v4739_v25 }
 0x2f0   : > { %2445 = vst.msk [vmem:[%s4137_s19 + $0x340] sm:$0xff] %vm2340_vm0, %v2142_v14  ;;  %2478 = vst.msk [vmem:[%s4137_s19 + $0x448] sm:$0xff] %vm2340_vm0, %v2307_v15 }
 0x2f1   : > { %2477 = vst.msk [vmem:[%s4137_s19 + $0x440] sm:$0xff] %vm2340_vm0, %v2302_v55  ;;  %v1361_v40 = vpop.f32.mrb[210].mxu0  ;;  %v2962_v3 = vpop.f32.mrb[210].mxu1 }
 0x2f2   : > { %v2147_v2 = vadd.f32 %v4510_v11, %v1361_v40  ;;  %v2317_v59 = vadd.f32 %v2962_v3, %v4740_v22  ;;  %v2311_v12 = vpop.f32.mrb[211].mxu1  ;;  %v1363_v7 = vpop.f32.mrb[211].mxu0  ;;  %v4742_v11 = vld [vmem:[#allocation24_spill] sm:$0xff] }
 0x2f3   : > { %v2312_v5 = vadd.f32 %v2311_v12, %v4741_v31 }
 0x2f4   : > { %2446 = vst.msk [vmem:[%s4137_s19 + $0x348] sm:$0xff] %vm2340_vm0, %v2147_v2  ;;  %2480 = vst.msk [vmem:[%s4137_s19 + $0x458] sm:$0xff] %vm2340_vm0, %v2317_v59 }
 0x2f5   : > { %2479 = vst.msk [vmem:[%s4137_s19 + $0x450] sm:$0xff] %vm2340_vm0, %v2312_v5  ;;  %v1366_v34 = vpop.f32.mrb[212].mxu0  ;;  %v2965_v63 = vpop.f32.mrb[212].mxu1 }
 0x2f6   : > { %v2152_v42 = vadd.f32 %v4518_v51, %v1366_v34  ;;  %v2327_v41 = vadd.f32 %v2965_v63, %v4742_v11  ;;  %v2321_v28 = vpop.f32.mrb[213].mxu1  ;;  %v1368_v56 = vpop.f32.mrb[213].mxu0 }
 0x2f7   : > { %v2322_v20 = vadd.f32 %v2321_v28, %v4743_v33 }
 0x2f8   : > { %2447 = vst.msk [vmem:[%s4137_s19 + $0x350] sm:$0xff] %vm2340_vm0, %v2152_v42  ;;  %2482 = vst.msk [vmem:[%s4137_s19 + $0x468] sm:$0xff] %vm2340_vm0, %v2327_v41 }
 0x2f9   : > { %2481 = vst.msk [vmem:[%s4137_s19 + $0x460] sm:$0xff] %vm2340_vm0, %v2322_v20  ;;  %v1371_v30 = vpop.f32.mrb[214].mxu0  ;;  %v2968_v49 = vpop.f32.mrb[214].mxu1 }
 0x2fa   : > { %v2157_v8 = vadd.f32 %v4516_v18, %v1371_v30  ;;  %v2337_v51 = vadd.f32 %v2968_v49, %v4744_v39  ;;  %v2331_v44 = vpop.f32.mrb[215].mxu1  ;;  %v1373_v62 = vpop.f32.mrb[215].mxu0 }
 0x2fb   : > { %v2332_v36 = vadd.f32 %v2331_v44, %v4745_v23 }
 0x2fc   : > { %2448 = vst.msk [vmem:[%s4137_s19 + $0x358] sm:$0xff] %vm2340_vm0, %v2157_v8  ;;  %2484 = vst.msk [vmem:[%s4137_s19 + $0x478] sm:$0xff] %vm2340_vm0, %v2337_v51 }
 0x2fd   : > { %2483 = vst.msk [vmem:[%s4137_s19 + $0x470] sm:$0xff] %vm2340_vm0, %v2332_v36 }
 0x2fe PF: > { %p13_p8 = scmp.ge.s32.totalorder %s3237_s17, 4   ;;  %s4746_s12 = smov %s3183_s13 }
 0x2ff   : > { %s4747_s13 = smov %s3187_s14  ;;  %s4748_s14 = smov %s3247_s20 }
 0x300   : > { %s4749_s15 = smov %s3237_s17  ;;  %15 = sbr.rel (!%p13_p8) target bundleno = 3 (0x3), region = 72 }
 0x307   :  { %2507 = vsyncpa [#allocation3], 1 }
 0x308   :  { %2509 = vsyncpa [#allocation3 + $0x1], 1 }

</bundles_post_ra>
